<compile_context>
chip_gen: v7x
topology: tpu7x:2x2x1
jax: 0.10.0
libtpu: 0.0.40
codegen_flags: <defaults>
</compile_context>

<pallas_src>
import functools

import jax
import jax.numpy as jnp
from jax.experimental import pallas as pl
from jax.experimental.pallas import tpu as pltpu

EPS = 1e-5
LANE = 128
VMEM_LIMIT = 48 * 1024 * 1024  # safe on v5e/v6e (128 MiB) and v7x (64 MiB) parts


def _round_up(x, m):
    return (x + m - 1) // m * m


# ----------------------------- Pallas kernels ------------------------------


def _conv3x3_s1_kernel(x_ref, sc_ref, sh_ref, w_ref, y_ref, st_ref, *,
                       apply_act, pad_out):
    """3x3 / stride-1 / pad-1 conv on one NHWC image tile, as 9 shifted MXU dots.

    x_ref : (1, Ho+2, Wo+2, Cin)   spatially padded input tile (bf16)
    sc_ref, sh_ref : (1, Cpad)     folded BN scale/shift; when apply_act=True they
                                   (plus ReLU) are applied to the input tile, fusing
                                   the previous conv's BN+ReLU into this kernel.
    w_ref : (9, Cin, Cpad)         tap-major conv weights (bf16)
    y_ref : pre-BN conv output (spatially padded when pad_out=True)
    st_ref: (1, 2, Cpad)           per-block partial [sum, sum_sq] for BatchNorm
    """
    hh, wh, cin = x_ref.shape[1], x_ref.shape[2], x_ref.shape[3]
    ho, wo = hh - 2, wh - 2
    cpad = w_ref.shape[2]

    a = x_ref[0]
    if apply_act:
        sc = sc_ref[...].reshape(1, 1, cpad)
        sh = sh_ref[...].reshape(1, 1, cpad)
        a = jnp.maximum(a.astype(jnp.float32) * sc + sh, 0.0)
        # conv pads the *post-activation* map with zeros: re-zero the 1px border.
        row = jax.lax.broadcasted_iota(jnp.int32, (hh, wh, 1), 0)
        col = jax.lax.broadcasted_iota(jnp.int32, (hh, wh, 1), 1)
        interior = (row >= 1) & (row <= hh - 2) & (col >= 1) & (col <= wh - 2)
        a = jnp.where(interior, a, 0.0)
    a = a.astype(jnp.bfloat16)

    acc = jnp.zeros((ho * wo, cpad), jnp.float32)
    for dy in range(3):
        for dx in range(3):
            tap = a[dy:dy + ho, dx:dx + wo, :].reshape(ho * wo, cin)
            acc = acc + jnp.dot(tap, w_ref[dy * 3 + dx],
                                preferred_element_type=jnp.float32)

    # partial BN statistics for this block (reduced across the grid in the wrapper)
    st_ref[0, 0:1, :] = jnp.sum(acc, axis=0, keepdims=True)
    st_ref[0, 1:2, :] = jnp.sum(acc * acc, axis=0, keepdims=True)

    y = acc.reshape(ho, wo, cpad)
    if pad_out:
        y_ref[...] = jnp.zeros_like(y_ref)                     # zero border for the next conv
        y_ref[0, 1:1 + ho, 1:1 + wo, :] = y.astype(y_ref.dtype)
    else:
        y_ref[0] = y.astype(y_ref.dtype)


def _conv3x3_s2_ds_kernel(ph_ref, w1_ref, wd_ref, y1_ref, res_ref, s1_ref, sd_ref):
    """Fused: 3x3/stride-2/pad-1 conv1 + 1x1/stride-2 downsample conv (one image).

    ph_ref : (1, 4, Ho+2, Wo+2, Cin)  phase-decomposed padded input: plane ry*2+rx
             holds xpad[2i+ry, 2j+rx], so every conv tap is a unit-stride slice.
    """
    hh, wh, cin = ph_ref.shape[2], ph_ref.shape[3], ph_ref.shape[4]
    ho, wo = hh - 2, wh - 2
    cpad = w1_ref.shape[2]

    acc = jnp.zeros((ho * wo, cpad), jnp.float32)
    for dy in range(3):
        for dx in range(3):
            plane = (dy % 2) * 2 + (dx % 2)
            qy, qx = dy // 2, dx // 2
            tap = ph_ref[0, plane, qy:qy + ho, qx:qx + wo, :]
            acc = acc + jnp.dot(tap.reshape(ho * wo, cin).astype(jnp.bfloat16),
                                w1_ref[dy * 3 + dx],
                                preferred_element_type=jnp.float32)

    s1_ref[0, 0:1, :] = jnp.sum(acc, axis=0, keepdims=True)
    s1_ref[0, 1:2, :] = jnp.sum(acc * acc, axis=0, keepdims=True)
    y1_ref[...] = jnp.zeros_like(y1_ref)                        # zero 1px border for conv2
    y1_ref[0, 1:1 + ho, 1:1 + wo, :] = acc.reshape(ho, wo, cpad).astype(y1_ref.dtype)

    # 1x1 stride-2 downsample conv = single tap on phase (1,1) (= x[2i, 2j])
    tap_d = ph_ref[0, 3, 0:ho, 0:wo, :]
    r = jnp.dot(tap_d.reshape(ho * wo, cin).astype(jnp.bfloat16), wd_ref[...],
                preferred_element_type=jnp.float32)
    sd_ref[0, 0:1, :] = jnp.sum(r, axis=0, keepdims=True)
    sd_ref[0, 1:2, :] = jnp.sum(r * r, axis=0, keepdims=True)
    res_ref[0] = r.reshape(ho, wo, cpad).astype(res_ref.dtype)


def _bn_add_relu_kernel(y2_ref, res_ref, s2_ref, t2_ref, sd_ref, td_ref, o_ref):
    """out = relu( BN2(y2) + BN_d(res) ), both BNs folded to scale/shift FMAs."""
    cpad = o_ref.shape[-1]
    y = (y2_ref[0].astype(jnp.float32) * s2_ref[...].reshape(1, 1, cpad)
         + t2_ref[...].reshape(1, 1, cpad))
    r = (res_ref[0].astype(jnp.float32) * sd_ref[...].reshape(1, 1, cpad)
         + td_ref[...].reshape(1, 1, cpad))
    o_ref[0] = jnp.maximum(y + r, 0.0).astype(o_ref.dtype)


# ---------------------------- pallas_call wrappers ---------------------------


def _mosaic_params():
    return pltpu.CompilerParams(dimension_semantics=("parallel",),
                                vmem_limit_bytes=VMEM_LIMIT)


def _conv_s1_call(xpad, scale, shift, w_taps, *, apply_act, pad_out):
    n, hh, wh, cin = xpad.shape
    ho, wo = hh - 2, wh - 2
    cpad = w_taps.shape[2]
    if scale is None:  # unused when apply_act=False, but the signature is fixed
        scale = jnp.zeros((1, cpad), jnp.float32)
        shift = jnp.zeros((1, cpad), jnp.float32)
    if pad_out:
        y_shape, y_dtype, y_block = (n, hh, wh, cpad), jnp.bfloat16, (1, hh, wh, cpad)
    else:
        y_shape, y_dtype, y_block = (n, ho, wo, cpad), jnp.float32, (1, ho, wo, cpad)
    kernel = functools.partial(_conv3x3_s1_kernel, apply_act=apply_act, pad_out=pad_out)
    flops = 2 * n * ho * wo * cin * cpad * 9
    out_bytes = n * y_shape[1] * y_shape[2] * cpad * jnp.dtype(y_dtype).itemsize
    bytes_accessed = (xpad.size * xpad.dtype.itemsize + w_taps.size * 2
                      + out_bytes + n * 2 * cpad * 4)
    return pl.pallas_call(
        kernel,
        out_shape=(jax.ShapeDtypeStruct(y_shape, y_dtype),
                   jax.ShapeDtypeStruct((n, 2, cpad), jnp.float32)),
        grid_spec=pltpu.PrefetchScalarGridSpec(
            num_scalar_prefetch=0,
            grid=(n,),
            in_specs=[
                pl.BlockSpec((1, hh, wh, cin), lambda i: (i, 0, 0, 0)),
                pl.BlockSpec((1, cpad), lambda i: (0, 0)),
                pl.BlockSpec((1, cpad), lambda i: (0, 0)),
                pl.BlockSpec((9, cin, cpad), lambda i: (0, 0, 0)),
            ],
            out_specs=[
                pl.BlockSpec(y_block, lambda i: (i, 0, 0, 0)),
                pl.BlockSpec((1, 2, cpad), lambda i: (i, 0, 0)),
            ]),
        compiler_params=_mosaic_params(),
        cost_estimate=pl.CostEstimate(flops=flops, transcendentals=0,
                                      bytes_accessed=bytes_accessed),
    )(xpad, scale, shift, w_taps)


def _conv_s2_ds_call(phases, w1, wd):
    n, _, hh, wh, cin = phases.shape
    ho, wo = hh - 2, wh - 2
    cpad = w1.shape[2]
    flops = 2 * n * ho * wo * cin * cpad * 10
    bytes_accessed = (phases.size * 2 + (w1.size + wd.size) * 2
                      + n * hh * wh * cpad * 2 + n * ho * wo * cpad * 4
                      + 2 * n * 2 * cpad * 4)
    return pl.pallas_call(
        _conv3x3_s2_ds_kernel,
        out_shape=(jax.ShapeDtypeStruct((n, hh, wh, cpad), jnp.bfloat16),  # y1 (padded, pre-BN)
                   jax.ShapeDtypeStruct((n, ho, wo, cpad), jnp.float32),   # residual (pre-BN)
                   jax.ShapeDtypeStruct((n, 2, cpad), jnp.float32),        # BN1 partial stats
                   jax.ShapeDtypeStruct((n, 2, cpad), jnp.float32)),       # BNd partial stats
        grid_spec=pltpu.PrefetchScalarGridSpec(
            num_scalar_prefetch=0,
            grid=(n,),
            in_specs=[
                pl.BlockSpec((1, 4, hh, wh, cin), lambda i: (i, 0, 0, 0, 0)),
                pl.BlockSpec((9, cin, cpad), lambda i: (0, 0, 0)),
                pl.BlockSpec((cin, cpad), lambda i: (0, 0)),
            ],
            out_specs=[
                pl.BlockSpec((1, hh, wh, cpad), lambda i: (i, 0, 0, 0)),
                pl.BlockSpec((1, ho, wo, cpad), lambda i: (i, 0, 0, 0)),
                pl.BlockSpec((1, 2, cpad), lambda i: (i, 0, 0)),
                pl.BlockSpec((1, 2, cpad), lambda i: (i, 0, 0)),
            ]),
        compiler_params=_mosaic_params(),
        cost_estimate=pl.CostEstimate(flops=flops, transcendentals=0,
                                      bytes_accessed=bytes_accessed),
    )(phases, w1, wd)


def _bn_add_relu_call(y2, res, s2, t2, sd, td):
    n, ho, wo, cpad = y2.shape
    bytes_accessed = (y2.size * 4 + res.size * res.dtype.itemsize
                      + 4 * cpad * 4 + n * ho * wo * cpad * 4)
    return pl.pallas_call(
        _bn_add_relu_kernel,
        out_shape=jax.ShapeDtypeStruct((n, ho, wo, cpad), jnp.float32),
        grid_spec=pltpu.PrefetchScalarGridSpec(
            num_scalar_prefetch=0,
            grid=(n,),
            in_specs=[
                pl.BlockSpec((1, ho, wo, cpad), lambda i: (i, 0, 0, 0)),
                pl.BlockSpec((1, ho, wo, cpad), lambda i: (i, 0, 0, 0)),
                pl.BlockSpec((1, cpad), lambda i: (0, 0)),
                pl.BlockSpec((1, cpad), lambda i: (0, 0)),
                pl.BlockSpec((1, cpad), lambda i: (0, 0)),
                pl.BlockSpec((1, cpad), lambda i: (0, 0)),
            ],
            out_specs=pl.BlockSpec((1, ho, wo, cpad), lambda i: (i, 0, 0, 0))),
        compiler_params=_mosaic_params(),
        cost_estimate=pl.CostEstimate(flops=6 * n * ho * wo * cpad, transcendentals=0,
                                      bytes_accessed=bytes_accessed),
    )(y2, res, s2, t2, sd, td)


# ------------------------------- JAX glue -----------------------------------


def _make_phases(x_nhwc):
    """Phase decomposition for the 3x3 / stride-2 / pad-1 conv: plane ry*2+rx holds
    xpad[2i+ry, 2j+rx], so tap (dy,dx) = plane ((dy%2)*2+dx%2) at offset (dy//2, dx//2)."""
    xp = jnp.pad(x_nhwc, ((0, 0), (1, 3), (1, 3), (0, 0)))      # (n, h+4, w+4, c)
    planes = [xp[:, ry::2, rx::2, :] for ry in (0, 1) for rx in (0, 1)]
    return jnp.stack(planes, axis=1)                            # (n, 4, h//2+2, w//2+2, c)


def _prep_w3x3(w_oihw, cpad, cin_pad=None):
    # (Cout, Cin, 3, 3) -> (9, Cin[_pad], Cpad), tap-major, zero-padded, bf16
    cout, cin = w_oihw.shape[0], w_oihw.shape[1]
    wt = jnp.transpose(w_oihw, (2, 3, 1, 0)).reshape(9, cin, cout)
    if cin_pad is not None and cin_pad > cin:
        wt = jnp.pad(wt, ((0, 0), (0, cin_pad - cin), (0, 0)))
    wt = jnp.pad(wt, ((0, 0), (0, 0), (0, cpad - cout)))
    return wt.astype(jnp.bfloat16)


def _prep_w1x1(w_oihw, cpad):
    cout, cin = w_oihw.shape[0], w_oihw.shape[1]
    wt = jnp.transpose(w_oihw.reshape(cout, cin), (1, 0))
    return jnp.pad(wt, ((0, 0), (0, cpad - cout))).astype(jnp.bfloat16)


def _fold_bn(stats, count, gamma, beta, cpad):
    """Partial [sum, sum_sq] per block -> per-channel (scale, shift) such that
    BN(y) == y*scale + shift (training-mode batch stats, biased var, eps=1e-5).
    Padded channels get gamma=0 => scale=shift=0, so they stay zero everywhere."""
    total = jnp.sum(stats, axis=0)                   # (2, cpad)
    mean = total[0] / count
    var = jnp.maximum(total[1] / count - mean * mean, 0.0)
    g = jnp.pad(gamma.astype(jnp.float32), (0, cpad - gamma.shape[0]))
    b = jnp.pad(beta.astype(jnp.float32), (0, cpad - beta.shape[0]))
    scale = g * jax.lax.rsqrt(var + EPS)
    shift = b - mean * scale
    return scale.reshape(1, cpad), shift.reshape(1, cpad)


def basic_block_forward(x_nchw, params, in_ch, out_ch):
    stride = 2 if in_ch != out_ch else 1
    n, _, h, w = x_nchw.shape
    assert h % stride == 0 and w % stride == 0
    ho, wo = h // stride, w // stride
    count = n * ho * wo                              # BN reduces over N, H, W
    cpad = _round_up(out_ch, LANE)

    x_f32 = jnp.transpose(x_nchw, (0, 2, 3, 1)).astype(jnp.float32)   # NCHW -> NHWC
    x_bf16 = x_f32.astype(jnp.bfloat16)

    w1 = _prep_w3x3(params["w1"], cpad)
    w2 = _prep_w3x3(params["w2"], cpad, cin_pad=cpad)

    if stride == 2:
        # conv1 (3x3 s2) + downsample (1x1 s2) fused in one kernel over the same input
        phases = _make_phases(x_bf16)
        wd = _prep_w1x1(params["wd"], cpad)
        y1p, res, s1, sd = _conv_s2_ds_call(phases, w1, wd)
        scale1, shift1 = _fold_bn(s1, count, params["g1"], params["b1"], cpad)
        scaled, shiftd = _fold_bn(sd, count, params["gd"], params["bd"], cpad)
    else:
        xpad = jnp.pad(x_bf16, ((0, 0), (1, 1), (1, 1), (0, 0)))
        y1p, s1 = _conv_s1_call(xpad, None, None, w1, apply_act=False, pad_out=True)
        scale1, shift1 = _fold_bn(s1, count, params["g1"], params["b1"], cpad)
        res = jnp.pad(x_f32, ((0, 0), (0, 0), (0, 0), (0, cpad - in_ch)))  # identity branch
        scaled = jnp.ones((1, cpad), jnp.float32)
        shiftd = jnp.zeros((1, cpad), jnp.float32)

    # conv2: BN1+ReLU applied to the input tile inside the kernel (no extra HBM pass)
    y2, s2 = _conv_s1_call(y1p, scale1, shift1, w2, apply_act=True, pad_out=False)
    scale2, shift2 = _fold_bn(s2, count, params["g2"], params["b2"], cpad)

    # BN2 + downsample/identity-BN + residual add + ReLU, all fused
    out = _bn_add_relu_call(y2, res, scale2, shift2, scaled, shiftd)
    out = out[..., :out_ch]                          # drop lane padding
    return jnp.transpose(out, (0, 3, 1, 2))          # back to NCHW


# ------------------------------ reference -----------------------------------


def _ref_conv(x, w, stride, pad):
    return jax.lax.conv_general_dilated(
        x, w, (stride, stride), [(pad, pad), (pad, pad)],
        dimension_numbers=("NCHW", "OIHW", "NCHW"))


def _ref_bn(y, g, b):
    mean = y.mean(axis=(0, 2, 3), keepdims=True)
    var = jnp.square(y - mean).mean(axis=(0, 2, 3), keepdims=True)
    return (y - mean) * jax.lax.rsqrt(var + EPS) * g.reshape(1, -1, 1, 1) + b.reshape(1, -1, 1, 1)


def basic_block_reference(x, params, in_ch, out_ch):
    stride = 2 if in_ch != out_ch else 1
    y = _ref_conv(x, params["w1"], stride, 1)
    y = jnp.maximum(_ref_bn(y, params["g1"], params["b1"]), 0.0)
    y = _ref_conv(y, params["w2"], 1, 1)
    y = _ref_bn(y, params["g2"], params["b2"])
    if in_ch != out_ch:
        res = _ref_bn(_ref_conv(x, params["wd"], 2, 0), params["gd"], params["bd"])
    else:
        res = x
    return jnp.maximum(y + res, 0.0)


# --------------------------------- main --------------------------------------


if __name__ == "__main__":
    key = jax.random.PRNGKey(0)
    fwd = jax.jit(basic_block_forward, static_argnums=(2, 3))

    # --- case 1: in_ch != out_ch  (stride 2 + 1x1 downsample branch) ---
    in_ch, out_ch = 4, 8
    N, H, W = 2, 16, 16
    k_x, k_w1, k_w2, k_wd, key = jax.random.split(key, 5)
    x = jax.random.normal(k_x, (N, in_ch, H, W), dtype=jnp.float32)
    params = {
        "w1": 0.1 * jax.random.normal(k_w1, (out_ch, in_ch, 3, 3), dtype=jnp.float32),
        "w2": 0.1 * jax.random.normal(k_w2, (out_ch, out_ch, 3, 3), dtype=jnp.float32),
        "wd": 0.1 * jax.random.normal(k_wd, (out_ch, in_ch, 1, 1), dtype=jnp.float32),
        "g1": jnp.ones((out_ch,), jnp.float32), "b1": jnp.zeros((out_ch,), jnp.float32),
        "g2": jnp.ones((out_ch,), jnp.float32), "b2": jnp.zeros((out_ch,), jnp.float32),
        "gd": jnp.ones((out_ch,), jnp.float32), "bd": jnp.zeros((out_ch,), jnp.float32),
    }
    out = jax.block_until_ready(fwd(x, params, in_ch, out_ch))
    ref = basic_block_reference(x, params, in_ch, out_ch)
    assert out.shape == (N, out_ch, H // 2, W // 2), out.shape
    # bf16-MXU kernel vs f32 reference
    assert jnp.allclose(out, ref, atol=5e-2, rtol=5e-2), float(jnp.max(jnp.abs(out - ref)))

    # --- case 2: in_ch == out_ch  (stride 1, identity residual) ---
    c2 = 8
    k_x2, k_w1b, k_w2b, key = jax.random.split(key, 4)
    x2 = jax.random.normal(k_x2, (N, c2, H, W), dtype=jnp.float32)
    params2 = {
        "w1": 0.1 * jax.random.normal(k_w1b, (c2, c2, 3, 3), dtype=jnp.float32),
        "w2": 0.1 * jax.random.normal(k_w2b, (c2, c2, 3, 3), dtype=jnp.float32),
        "g1": jnp.ones((c2,), jnp.float32), "b1": jnp.zeros((c2,), jnp.float32),
        "g2": jnp.ones((c2,), jnp.float32), "b2": jnp.zeros((c2,), jnp.float32),
    }
    out2 = jax.block_until_ready(fwd(x2, params2, c2, c2))
    ref2 = basic_block_reference(x2, params2, c2, c2)
    assert out2.shape == (N, c2, H, W), out2.shape
    assert jnp.allclose(out2, ref2, atol=5e-2, rtol=5e-2), float(jnp.max(jnp.abs(out2 - ref2)))

    print("KERNEL_OK")
</pallas_src>

<mosaic_0001>
module attributes {stable_mosaic.version = 11 : i64} {
  func.func @_conv3x3_s2_ds_kernel(%arg0: i32, %arg1: memref<1x4x10x10x4xbf16, #tpu.memory_space<vmem>>, %arg2: memref<9x4x128xbf16, #tpu.memory_space<vmem>>, %arg3: memref<4x128xbf16, #tpu.memory_space<vmem>>, %arg4: memref<1x10x10x128xbf16, #tpu.memory_space<vmem>>, %arg5: memref<1x8x8x128xf32, #tpu.memory_space<vmem>>, %arg6: memref<1x2x128xf32, #tpu.memory_space<vmem>>, %arg7: memref<1x2x128xf32, #tpu.memory_space<vmem>>) attributes {dimension_semantics = [#tpu.dimension_semantics<parallel>], iteration_bounds = array<i64: 2>, scalar_prefetch = 0 : i64, scratch_operands = 0 : i64, tpu.core_type = #tpu.core_type<tc>, window_params = [{transform_indices = @transform_0, window_bounds = array<i64: 1, 4, 10, 10, 4>}, {pipeline_mode = #tpu.pipeline_mode<synchronous>, transform_indices = @transform_1, window_bounds = array<i64: 9, 4, 128>}, {pipeline_mode = #tpu.pipeline_mode<synchronous>, transform_indices = @transform_2, window_bounds = array<i64: 4, 128>}, {transform_indices = @transform_3, window_bounds = array<i64: 1, 10, 10, 128>}, {transform_indices = @transform_4, window_bounds = array<i64: 1, 8, 8, 128>}, {transform_indices = @transform_5, window_bounds = array<i64: 1, 2, 128>}, {transform_indices = @transform_6, window_bounds = array<i64: 1, 2, 128>}]} {
    %cst = arith.constant 0.000000e+00 : f32
    %0 = vector.broadcast %cst : f32 to vector<64x128xf32>
    %c0 = arith.constant 0 : index
    %c0_0 = arith.constant 0 : index
    %c0_1 = arith.constant 0 : index
    %c0_2 = arith.constant 0 : index
    %c0_3 = arith.constant 0 : index
    %1 = vector.load %arg1[%c0, %c0_0, %c0_1, %c0_2, %c0_3] : memref<1x4x10x10x4xbf16, #tpu.memory_space<vmem>>, vector<1x1x8x8x4xbf16>
    %2 = vector.shape_cast %1 : vector<1x1x8x8x4xbf16> to vector<8x8x4xbf16>
    %3 = vector.shape_cast %2 : vector<8x8x4xbf16> to vector<64x4xbf16>
    %c0_4 = arith.constant 0 : index
    %c0_5 = arith.constant 0 : index
    %c0_6 = arith.constant 0 : index
    %4 = vector.load %arg2[%c0_4, %c0_5, %c0_6] : memref<9x4x128xbf16, #tpu.memory_space<vmem>>, vector<1x4x128xbf16>
    %5 = vector.shape_cast %4 : vector<1x4x128xbf16> to vector<4x128xbf16>
    %cst_7 = arith.constant dense<0.000000e+00> : vector<64x128xf32>
    %6 = tpu.matmul %3, %5, %cst_7 {dimension_numbers = #tpu.dot_dimension_numbers<[1], [0], [0], [1], [0, 0, 1, 1], [], []>} : vector<64x4xbf16>, vector<4x128xbf16>, vector<64x128xf32> -> vector<64x128xf32>
    %7 = arith.addf %0, %6 : vector<64x128xf32>
    %c0_8 = arith.constant 0 : index
    %c1 = arith.constant 1 : index
    %c0_9 = arith.constant 0 : index
    %c0_10 = arith.constant 0 : index
    %c0_11 = arith.constant 0 : index
    %8 = vector.load %arg1[%c0_8, %c1, %c0_9, %c0_10, %c0_11] : memref<1x4x10x10x4xbf16, #tpu.memory_space<vmem>>, vector<1x1x8x8x4xbf16>
    %9 = vector.shape_cast %8 : vector<1x1x8x8x4xbf16> to vector<8x8x4xbf16>
    %10 = vector.shape_cast %9 : vector<8x8x4xbf16> to vector<64x4xbf16>
    %c1_12 = arith.constant 1 : index
    %c0_13 = arith.constant 0 : index
    %c0_14 = arith.constant 0 : index
    %11 = vector.load %arg2[%c1_12, %c0_13, %c0_14] : memref<9x4x128xbf16, #tpu.memory_space<vmem>>, vector<1x4x128xbf16>
    %12 = vector.shape_cast %11 : vector<1x4x128xbf16> to vector<4x128xbf16>
    %cst_15 = arith.constant dense<0.000000e+00> : vector<64x128xf32>
    %13 = tpu.matmul %10, %12, %cst_15 {dimension_numbers = #tpu.dot_dimension_numbers<[1], [0], [0], [1], [0, 0, 1, 1], [], []>} : vector<64x4xbf16>, vector<4x128xbf16>, vector<64x128xf32> -> vector<64x128xf32>
    %14 = arith.addf %7, %13 : vector<64x128xf32>
    %c0_16 = arith.constant 0 : index
    %c0_17 = arith.constant 0 : index
    %c0_18 = arith.constant 0 : index
    %c1_19 = arith.constant 1 : index
    %c0_20 = arith.constant 0 : index
    %15 = vector.load %arg1[%c0_16, %c0_17, %c0_18, %c1_19, %c0_20] : memref<1x4x10x10x4xbf16, #tpu.memory_space<vmem>>, vector<1x1x8x8x4xbf16>
    %16 = vector.shape_cast %15 : vector<1x1x8x8x4xbf16> to vector<8x8x4xbf16>
    %17 = vector.shape_cast %16 : vector<8x8x4xbf16> to vector<64x4xbf16>
    %c2 = arith.constant 2 : index
    %c0_21 = arith.constant 0 : index
    %c0_22 = arith.constant 0 : index
    %18 = vector.load %arg2[%c2, %c0_21, %c0_22] : memref<9x4x128xbf16, #tpu.memory_space<vmem>>, vector<1x4x128xbf16>
    %19 = vector.shape_cast %18 : vector<1x4x128xbf16> to vector<4x128xbf16>
    %cst_23 = arith.constant dense<0.000000e+00> : vector<64x128xf32>
    %20 = tpu.matmul %17, %19, %cst_23 {dimension_numbers = #tpu.dot_dimension_numbers<[1], [0], [0], [1], [0, 0, 1, 1], [], []>} : vector<64x4xbf16>, vector<4x128xbf16>, vector<64x128xf32> -> vector<64x128xf32>
    %21 = arith.addf %14, %20 : vector<64x128xf32>
    %c0_24 = arith.constant 0 : index
    %c2_25 = arith.constant 2 : index
    %c0_26 = arith.constant 0 : index
    %c0_27 = arith.constant 0 : index
    %c0_28 = arith.constant 0 : index
    %22 = vector.load %arg1[%c0_24, %c2_25, %c0_26, %c0_27, %c0_28] : memref<1x4x10x10x4xbf16, #tpu.memory_space<vmem>>, vector<1x1x8x8x4xbf16>
    %23 = vector.shape_cast %22 : vector<1x1x8x8x4xbf16> to vector<8x8x4xbf16>
    %24 = vector.shape_cast %23 : vector<8x8x4xbf16> to vector<64x4xbf16>
    %c3 = arith.constant 3 : index
    %c0_29 = arith.constant 0 : index
    %c0_30 = arith.constant 0 : index
    %25 = vector.load %arg2[%c3, %c0_29, %c0_30] : memref<9x4x128xbf16, #tpu.memory_space<vmem>>, vector<1x4x128xbf16>
    %26 = vector.shape_cast %25 : vector<1x4x128xbf16> to vector<4x128xbf16>
    %cst_31 = arith.constant dense<0.000000e+00> : vector<64x128xf32>
    %27 = tpu.matmul %24, %26, %cst_31 {dimension_numbers = #tpu.dot_dimension_numbers<[1], [0], [0], [1], [0, 0, 1, 1], [], []>} : vector<64x4xbf16>, vector<4x128xbf16>, vector<64x128xf32> -> vector<64x128xf32>
    %28 = arith.addf %21, %27 : vector<64x128xf32>
    %c0_32 = arith.constant 0 : index
    %c3_33 = arith.constant 3 : index
    %c0_34 = arith.constant 0 : index
    %c0_35 = arith.constant 0 : index
    %c0_36 = arith.constant 0 : index
    %29 = vector.load %arg1[%c0_32, %c3_33, %c0_34, %c0_35, %c0_36] : memref<1x4x10x10x4xbf16, #tpu.memory_space<vmem>>, vector<1x1x8x8x4xbf16>
    %30 = vector.shape_cast %29 : vector<1x1x8x8x4xbf16> to vector<8x8x4xbf16>
    %31 = vector.shape_cast %30 : vector<8x8x4xbf16> to vector<64x4xbf16>
    %c4 = arith.constant 4 : index
    %c0_37 = arith.constant 0 : index
    %c0_38 = arith.constant 0 : index
    %32 = vector.load %arg2[%c4, %c0_37, %c0_38] : memref<9x4x128xbf16, #tpu.memory_space<vmem>>, vector<1x4x128xbf16>
    %33 = vector.shape_cast %32 : vector<1x4x128xbf16> to vector<4x128xbf16>
    %cst_39 = arith.constant dense<0.000000e+00> : vector<64x128xf32>
    %34 = tpu.matmul %31, %33, %cst_39 {dimension_numbers = #tpu.dot_dimension_numbers<[1], [0], [0], [1], [0, 0, 1, 1], [], []>} : vector<64x4xbf16>, vector<4x128xbf16>, vector<64x128xf32> -> vector<64x128xf32>
    %35 = arith.addf %28, %34 : vector<64x128xf32>
    %c0_40 = arith.constant 0 : index
    %c2_41 = arith.constant 2 : index
    %c0_42 = arith.constant 0 : index
    %c1_43 = arith.constant 1 : index
    %c0_44 = arith.constant 0 : index
    %36 = vector.load %arg1[%c0_40, %c2_41, %c0_42, %c1_43, %c0_44] : memref<1x4x10x10x4xbf16, #tpu.memory_space<vmem>>, vector<1x1x8x8x4xbf16>
    %37 = vector.shape_cast %36 : vector<1x1x8x8x4xbf16> to vector<8x8x4xbf16>
    %38 = vector.shape_cast %37 : vector<8x8x4xbf16> to vector<64x4xbf16>
    %c5 = arith.constant 5 : index
    %c0_45 = arith.constant 0 : index
    %c0_46 = arith.constant 0 : index
    %39 = vector.load %arg2[%c5, %c0_45, %c0_46] : memref<9x4x128xbf16, #tpu.memory_space<vmem>>, vector<1x4x128xbf16>
    %40 = vector.shape_cast %39 : vector<1x4x128xbf16> to vector<4x128xbf16>
    %cst_47 = arith.constant dense<0.000000e+00> : vector<64x128xf32>
    %41 = tpu.matmul %38, %40, %cst_47 {dimension_numbers = #tpu.dot_dimension_numbers<[1], [0], [0], [1], [0, 0, 1, 1], [], []>} : vector<64x4xbf16>, vector<4x128xbf16>, vector<64x128xf32> -> vector<64x128xf32>
    %42 = arith.addf %35, %41 : vector<64x128xf32>
    %c0_48 = arith.constant 0 : index
    %c0_49 = arith.constant 0 : index
    %c1_50 = arith.constant 1 : index
    %c0_51 = arith.constant 0 : index
    %c0_52 = arith.constant 0 : index
    %43 = vector.load %arg1[%c0_48, %c0_49, %c1_50, %c0_51, %c0_52] : memref<1x4x10x10x4xbf16, #tpu.memory_space<vmem>>, vector<1x1x8x8x4xbf16>
    %44 = vector.shape_cast %43 : vector<1x1x8x8x4xbf16> to vector<8x8x4xbf16>
    %45 = vector.shape_cast %44 : vector<8x8x4xbf16> to vector<64x4xbf16>
    %c6 = arith.constant 6 : index
    %c0_53 = arith.constant 0 : index
    %c0_54 = arith.constant 0 : index
    %46 = vector.load %arg2[%c6, %c0_53, %c0_54] : memref<9x4x128xbf16, #tpu.memory_space<vmem>>, vector<1x4x128xbf16>
    %47 = vector.shape_cast %46 : vector<1x4x128xbf16> to vector<4x128xbf16>
    %cst_55 = arith.constant dense<0.000000e+00> : vector<64x128xf32>
    %48 = tpu.matmul %45, %47, %cst_55 {dimension_numbers = #tpu.dot_dimension_numbers<[1], [0], [0], [1], [0, 0, 1, 1], [], []>} : vector<64x4xbf16>, vector<4x128xbf16>, vector<64x128xf32> -> vector<64x128xf32>
    %49 = arith.addf %42, %48 : vector<64x128xf32>
    %c0_56 = arith.constant 0 : index
    %c1_57 = arith.constant 1 : index
    %c1_58 = arith.constant 1 : index
    %c0_59 = arith.constant 0 : index
    %c0_60 = arith.constant 0 : index
    %50 = vector.load %arg1[%c0_56, %c1_57, %c1_58, %c0_59, %c0_60] : memref<1x4x10x10x4xbf16, #tpu.memory_space<vmem>>, vector<1x1x8x8x4xbf16>
    %51 = vector.shape_cast %50 : vector<1x1x8x8x4xbf16> to vector<8x8x4xbf16>
    %52 = vector.shape_cast %51 : vector<8x8x4xbf16> to vector<64x4xbf16>
    %c7 = arith.constant 7 : index
    %c0_61 = arith.constant 0 : index
    %c0_62 = arith.constant 0 : index
    %53 = vector.load %arg2[%c7, %c0_61, %c0_62] : memref<9x4x128xbf16, #tpu.memory_space<vmem>>, vector<1x4x128xbf16>
    %54 = vector.shape_cast %53 : vector<1x4x128xbf16> to vector<4x128xbf16>
    %cst_63 = arith.constant dense<0.000000e+00> : vector<64x128xf32>
    %55 = tpu.matmul %52, %54, %cst_63 {dimension_numbers = #tpu.dot_dimension_numbers<[1], [0], [0], [1], [0, 0, 1, 1], [], []>} : vector<64x4xbf16>, vector<4x128xbf16>, vector<64x128xf32> -> vector<64x128xf32>
    %56 = arith.addf %49, %55 : vector<64x128xf32>
    %c0_64 = arith.constant 0 : index
    %c0_65 = arith.constant 0 : index
    %c1_66 = arith.constant 1 : index
    %c1_67 = arith.constant 1 : index
    %c0_68 = arith.constant 0 : index
    %57 = vector.load %arg1[%c0_64, %c0_65, %c1_66, %c1_67, %c0_68] : memref<1x4x10x10x4xbf16, #tpu.memory_space<vmem>>, vector<1x1x8x8x4xbf16>
    %58 = vector.shape_cast %57 : vector<1x1x8x8x4xbf16> to vector<8x8x4xbf16>
    %59 = vector.shape_cast %58 : vector<8x8x4xbf16> to vector<64x4xbf16>
    %c8 = arith.constant 8 : index
    %c0_69 = arith.constant 0 : index
    %c0_70 = arith.constant 0 : index
    %60 = vector.load %arg2[%c8, %c0_69, %c0_70] : memref<9x4x128xbf16, #tpu.memory_space<vmem>>, vector<1x4x128xbf16>
    %61 = vector.shape_cast %60 : vector<1x4x128xbf16> to vector<4x128xbf16>
    %cst_71 = arith.constant dense<0.000000e+00> : vector<64x128xf32>
    %62 = tpu.matmul %59, %61, %cst_71 {dimension_numbers = #tpu.dot_dimension_numbers<[1], [0], [0], [1], [0, 0, 1, 1], [], []>} : vector<64x4xbf16>, vector<4x128xbf16>, vector<64x128xf32> -> vector<64x128xf32>
    %63 = arith.addf %56, %62 : vector<64x128xf32>
    %cst_72 = arith.constant dense<0.000000e+00> : vector<128xf32>
    %64 = vector.multi_reduction <add>, %63, %cst_72 [0] : vector<64x128xf32> to vector<128xf32>
    %65 = vector.shape_cast %64 : vector<128xf32> to vector<1x128xf32>
    %c0_73 = arith.constant 0 : index
    %c0_74 = arith.constant 0 : index
    %c0_75 = arith.constant 0 : index
    %66 = vector.load %arg6[%c0_73, %c0_74, %c0_75] : memref<1x2x128xf32, #tpu.memory_space<vmem>>, vector<1x1x128xf32>
    %67 = vector.shape_cast %66 : vector<1x1x128xf32> to vector<1x128xf32>
    %68 = vector.shape_cast %65 : vector<1x128xf32> to vector<1x1x128xf32>
    tpu.vector_store %arg6[%c0_73, %c0_74, %c0_75], %68 {strides = array<i32>} : memref<1x2x128xf32, #tpu.memory_space<vmem>>, vector<1x1x128xf32>,
    %69 = arith.mulf %63, %63 : vector<64x128xf32>
    %cst_76 = arith.constant dense<0.000000e+00> : vector<128xf32>
    %70 = vector.multi_reduction <add>, %69, %cst_76 [0] : vector<64x128xf32> to vector<128xf32>
    %71 = vector.shape_cast %70 : vector<128xf32> to vector<1x128xf32>
    %c0_77 = arith.constant 0 : index
    %c1_78 = arith.constant 1 : index
    %c0_79 = arith.constant 0 : index
    %72 = vector.load %arg6[%c0_77, %c1_78, %c0_79] : memref<1x2x128xf32, #tpu.memory_space<vmem>>, vector<1x1x128xf32>
    %73 = vector.shape_cast %72 : vector<1x1x128xf32> to vector<1x128xf32>
    %74 = vector.shape_cast %71 : vector<1x128xf32> to vector<1x1x128xf32>
    tpu.vector_store %arg6[%c0_77, %c1_78, %c0_79], %74 {strides = array<i32>} : memref<1x2x128xf32, #tpu.memory_space<vmem>>, vector<1x1x128xf32>,
    %cst_80 = arith.constant 0.000000e+00 : bf16
    %75 = vector.broadcast %cst_80 : bf16 to vector<1x10x10x128xbf16>
    %c0_81 = arith.constant 0 : index
    %c0_82 = arith.constant 0 : index
    %c0_83 = arith.constant 0 : index
    %c0_84 = arith.constant 0 : index
    %76 = vector.load %arg4[%c0_81, %c0_82, %c0_83, %c0_84] : memref<1x10x10x128xbf16, #tpu.memory_space<vmem>>, vector<1x10x10x128xbf16>
    tpu.vector_store %arg4[%c0_81, %c0_82, %c0_83, %c0_84], %75 {strides = array<i32>} : memref<1x10x10x128xbf16, #tpu.memory_space<vmem>>, vector<1x10x10x128xbf16>,
    %77 = vector.shape_cast %63 : vector<64x128xf32> to vector<8x8x128xf32>
    %78 = arith.truncf %77 : vector<8x8x128xf32> to vector<8x8x128xbf16>
    %c0_85 = arith.constant 0 : index
    %c1_86 = arith.constant 1 : index
    %c1_87 = arith.constant 1 : index
    %c0_88 = arith.constant 0 : index
    %79 = vector.load %arg4[%c0_85, %c1_86, %c1_87, %c0_88] : memref<1x10x10x128xbf16, #tpu.memory_space<vmem>>, vector<1x8x8x128xbf16>
    %80 = vector.shape_cast %79 : vector<1x8x8x128xbf16> to vector<8x8x128xbf16>
    %81 = vector.shape_cast %78 : vector<8x8x128xbf16> to vector<1x8x8x128xbf16>
    tpu.vector_store %arg4[%c0_85, %c1_86, %c1_87, %c0_88], %81 {strides = array<i32>} : memref<1x10x10x128xbf16, #tpu.memory_space<vmem>>, vector<1x8x8x128xbf16>,
    %c0_89 = arith.constant 0 : index
    %c3_90 = arith.constant 3 : index
    %c0_91 = arith.constant 0 : index
    %c0_92 = arith.constant 0 : index
    %c0_93 = arith.constant 0 : index
    %82 = vector.load %arg1[%c0_89, %c3_90, %c0_91, %c0_92, %c0_93] : memref<1x4x10x10x4xbf16, #tpu.memory_space<vmem>>, vector<1x1x8x8x4xbf16>
    %83 = vector.shape_cast %82 : vector<1x1x8x8x4xbf16> to vector<8x8x4xbf16>
    %84 = vector.shape_cast %83 : vector<8x8x4xbf16> to vector<64x4xbf16>
    %c0_94 = arith.constant 0 : index
    %c0_95 = arith.constant 0 : index
    %85 = vector.load %arg3[%c0_94, %c0_95] : memref<4x128xbf16, #tpu.memory_space<vmem>>, vector<4x128xbf16>
    %cst_96 = arith.constant dense<0.000000e+00> : vector<64x128xf32>
    %86 = tpu.matmul %84, %85, %cst_96 {dimension_numbers = #tpu.dot_dimension_numbers<[1], [0], [0], [1], [0, 0, 1, 1], [], []>} : vector<64x4xbf16>, vector<4x128xbf16>, vector<64x128xf32> -> vector<64x128xf32>
    %cst_97 = arith.constant dense<0.000000e+00> : vector<128xf32>
    %87 = vector.multi_reduction <add>, %86, %cst_97 [0] : vector<64x128xf32> to vector<128xf32>
    %88 = vector.shape_cast %87 : vector<128xf32> to vector<1x128xf32>
    %c0_98 = arith.constant 0 : index
    %c0_99 = arith.constant 0 : index
    %c0_100 = arith.constant 0 : index
    %89 = vector.load %arg7[%c0_98, %c0_99, %c0_100] : memref<1x2x128xf32, #tpu.memory_space<vmem>>, vector<1x1x128xf32>
    %90 = vector.shape_cast %89 : vector<1x1x128xf32> to vector<1x128xf32>
    %91 = vector.shape_cast %88 : vector<1x128xf32> to vector<1x1x128xf32>
    tpu.vector_store %arg7[%c0_98, %c0_99, %c0_100], %91 {strides = array<i32>} : memref<1x2x128xf32, #tpu.memory_space<vmem>>, vector<1x1x128xf32>,
    %92 = arith.mulf %86, %86 : vector<64x128xf32>
    %cst_101 = arith.constant dense<0.000000e+00> : vector<128xf32>
    %93 = vector.multi_reduction <add>, %92, %cst_101 [0] : vector<64x128xf32> to vector<128xf32>
    %94 = vector.shape_cast %93 : vector<128xf32> to vector<1x128xf32>
    %c0_102 = arith.constant 0 : index
    %c1_103 = arith.constant 1 : index
    %c0_104 = arith.constant 0 : index
    %95 = vector.load %arg7[%c0_102, %c1_103, %c0_104] : memref<1x2x128xf32, #tpu.memory_space<vmem>>, vector<1x1x128xf32>
    %96 = vector.shape_cast %95 : vector<1x1x128xf32> to vector<1x128xf32>
    %97 = vector.shape_cast %94 : vector<1x128xf32> to vector<1x1x128xf32>
    tpu.vector_store %arg7[%c0_102, %c1_103, %c0_104], %97 {strides = array<i32>} : memref<1x2x128xf32, #tpu.memory_space<vmem>>, vector<1x1x128xf32>,
    %98 = vector.shape_cast %86 : vector<64x128xf32> to vector<8x8x128xf32>
    %c0_105 = arith.constant 0 : index
    %c0_106 = arith.constant 0 : index
    %c0_107 = arith.constant 0 : index
    %c0_108 = arith.constant 0 : index
    %99 = vector.load %arg5[%c0_105, %c0_106, %c0_107, %c0_108] : memref<1x8x8x128xf32, #tpu.memory_space<vmem>>, vector<1x8x8x128xf32>
    %100 = vector.shape_cast %99 : vector<1x8x8x128xf32> to vector<8x8x128xf32>
    %101 = vector.shape_cast %98 : vector<8x8x128xf32> to vector<1x8x8x128xf32>
    tpu.vector_store %arg5[%c0_105, %c0_106, %c0_107, %c0_108], %101 {strides = array<i32>} : memref<1x8x8x128xf32, #tpu.memory_space<vmem>>, vector<1x8x8x128xf32>,
    return
  }
  func.func @transform_0(%arg0: i32) -> (i32, i32, i32, i32, i32) {
    %c0_i32 = arith.constant 0 : i32
    %c0_i32_0 = arith.constant 0 : i32
    %c0_i32_1 = arith.constant 0 : i32
    %c0_i32_2 = arith.constant 0 : i32
    %c0_i32_3 = arith.constant 0 : i32
    return %arg0, %c0_i32, %c0_i32_0, %c0_i32_1, %c0_i32_2 : i32, i32, i32, i32, i32
  }
  func.func @transform_1(%arg0: i32) -> (i32, i32, i32) {
    %c0_i32 = arith.constant 0 : i32
    %c0_i32_0 = arith.constant 0 : i32
    %c0_i32_1 = arith.constant 0 : i32
    %c0_i32_2 = arith.constant 0 : i32
    return %c0_i32, %c0_i32_0, %c0_i32_1 : i32, i32, i32
  }
  func.func @transform_2(%arg0: i32) -> (i32, i32) {
    %c0_i32 = arith.constant 0 : i32
    %c0_i32_0 = arith.constant 0 : i32
    %c0_i32_1 = arith.constant 0 : i32
    return %c0_i32, %c0_i32_0 : i32, i32
  }
  func.func @transform_3(%arg0: i32) -> (i32, i32, i32, i32) {
    %c0_i32 = arith.constant 0 : i32
    %c0_i32_0 = arith.constant 0 : i32
    %c0_i32_1 = arith.constant 0 : i32
    %c0_i32_2 = arith.constant 0 : i32
    return %arg0, %c0_i32, %c0_i32_0, %c0_i32_1 : i32, i32, i32, i32
  }
  func.func @transform_4(%arg0: i32) -> (i32, i32, i32, i32) {
    %c0_i32 = arith.constant 0 : i32
    %c0_i32_0 = arith.constant 0 : i32
    %c0_i32_1 = arith.constant 0 : i32
    %c0_i32_2 = arith.constant 0 : i32
    return %arg0, %c0_i32, %c0_i32_0, %c0_i32_1 : i32, i32, i32, i32
  }
  func.func @transform_5(%arg0: i32) -> (i32, i32, i32) {
    %c0_i32 = arith.constant 0 : i32
    %c0_i32_0 = arith.constant 0 : i32
    %c0_i32_1 = arith.constant 0 : i32
    return %arg0, %c0_i32, %c0_i32_0 : i32, i32, i32
  }
  func.func @transform_6(%arg0: i32) -> (i32, i32, i32) {
    %c0_i32 = arith.constant 0 : i32
    %c0_i32_0 = arith.constant 0 : i32
    %c0_i32_1 = arith.constant 0 : i32
    return %arg0, %c0_i32, %c0_i32_0 : i32, i32, i32
  }
}

module attributes {stable_mosaic.version = 11 : i64} {
  func.func @_conv3x3_s1_kernel(%arg0: i32, %arg1: memref<1x10x10x128xbf16, #tpu.memory_space<vmem>>, %arg2: memref<1x128xf32, #tpu.memory_space<vmem>>, %arg3: memref<1x128xf32, #tpu.memory_space<vmem>>, %arg4: memref<9x128x128xbf16, #tpu.memory_space<vmem>>, %arg5: memref<1x8x8x128xf32, #tpu.memory_space<vmem>>, %arg6: memref<1x2x128xf32, #tpu.memory_space<vmem>>) attributes {dimension_semantics = [#tpu.dimension_semantics<parallel>], iteration_bounds = array<i64: 2>, scalar_prefetch = 0 : i64, scratch_operands = 0 : i64, tpu.core_type = #tpu.core_type<tc>, window_params = [{transform_indices = @transform_0, window_bounds = array<i64: 1, 10, 10, 128>}, {pipeline_mode = #tpu.pipeline_mode<synchronous>, transform_indices = @transform_1, window_bounds = array<i64: 1, 128>}, {pipeline_mode = #tpu.pipeline_mode<synchronous>, transform_indices = @transform_2, window_bounds = array<i64: 1, 128>}, {pipeline_mode = #tpu.pipeline_mode<synchronous>, transform_indices = @transform_3, window_bounds = array<i64: 9, 128, 128>}, {transform_indices = @transform_4, window_bounds = array<i64: 1, 8, 8, 128>}, {transform_indices = @transform_5, window_bounds = array<i64: 1, 2, 128>}]} {
    %c0 = arith.constant 0 : index
    %c0_0 = arith.constant 0 : index
    %c0_1 = arith.constant 0 : index
    %c0_2 = arith.constant 0 : index
    %0 = vector.load %arg1[%c0, %c0_0, %c0_1, %c0_2] : memref<1x10x10x128xbf16, #tpu.memory_space<vmem>>, vector<1x10x10x128xbf16>
    %1 = vector.shape_cast %0 : vector<1x10x10x128xbf16> to vector<10x10x128xbf16>
    %c0_3 = arith.constant 0 : index
    %c0_4 = arith.constant 0 : index
    %2 = vector.load %arg2[%c0_3, %c0_4] : memref<1x128xf32, #tpu.memory_space<vmem>>, vector<1x128xf32>
    %3 = vector.shape_cast %2 : vector<1x128xf32> to vector<1x1x128xf32>
    %c0_5 = arith.constant 0 : index
    %c0_6 = arith.constant 0 : index
    %4 = vector.load %arg3[%c0_5, %c0_6] : memref<1x128xf32, #tpu.memory_space<vmem>>, vector<1x128xf32>
    %5 = vector.shape_cast %4 : vector<1x128xf32> to vector<1x1x128xf32>
    %6 = arith.extf %1 : vector<10x10x128xbf16> to vector<10x10x128xf32>
    %7 = vector.broadcast %3 : vector<1x1x128xf32> to vector<10x10x128xf32>
    %8 = arith.mulf %6, %7 : vector<10x10x128xf32>
    %9 = vector.broadcast %5 : vector<1x1x128xf32> to vector<10x10x128xf32>
    %10 = arith.addf %8, %9 : vector<10x10x128xf32>
    %cst = arith.constant 0.000000e+00 : f32
    %11 = vector.broadcast %cst : f32 to vector<10x10x128xf32>
    %12 = arith.maximumf %10, %11 : vector<10x10x128xf32>
    %13 = tpu.iota {dimensions = array<i32: 0>} : vector<10x10x1xi32>
    %14 = tpu.iota {dimensions = array<i32: 1>} : vector<10x10x1xi32>
    %c1_i32 = arith.constant 1 : i32
    %15 = vector.broadcast %c1_i32 : i32 to vector<10x10x1xi32>
    %16 = arith.cmpi sge, %13, %15 : vector<10x10x1xi32>
    %c8_i32 = arith.constant 8 : i32
    %17 = vector.broadcast %c8_i32 : i32 to vector<10x10x1xi32>
    %18 = arith.cmpi sle, %13, %17 : vector<10x10x1xi32>
    %19 = arith.andi %16, %18 : vector<10x10x1xi1>
    %c1_i32_7 = arith.constant 1 : i32
    %20 = vector.broadcast %c1_i32_7 : i32 to vector<10x10x1xi32>
    %21 = arith.cmpi sge, %14, %20 : vector<10x10x1xi32>
    %22 = arith.andi %19, %21 : vector<10x10x1xi1>
    %c8_i32_8 = arith.constant 8 : i32
    %23 = vector.broadcast %c8_i32_8 : i32 to vector<10x10x1xi32>
    %24 = arith.cmpi sle, %14, %23 : vector<10x10x1xi32>
    %25 = arith.andi %22, %24 : vector<10x10x1xi1>
    %cst_9 = arith.constant 0.000000e+00 : f32
    %26 = vector.shape_cast %25 : vector<10x10x1xi1> to vector<10x10x1xi1>
    %27 = vector.broadcast %26 : vector<10x10x1xi1> to vector<10x10x128xi1>
    %28 = vector.broadcast %cst_9 : f32 to vector<10x10x128xf32>
    %29 = arith.select %27, %12, %28 : vector<10x10x128xi1>, vector<10x10x128xf32>
    %30 = arith.truncf %29 : vector<10x10x128xf32> to vector<10x10x128xbf16>
    %cst_10 = arith.constant 0.000000e+00 : f32
    %31 = vector.broadcast %cst_10 : f32 to vector<64x128xf32>
    %32 = vector.extract_strided_slice %30 {offsets = [0, 0, 0], sizes = [8, 8, 128], strides = [1, 1, 1]} : vector<10x10x128xbf16> to vector<8x8x128xbf16>
    %33 = vector.shape_cast %32 : vector<8x8x128xbf16> to vector<64x128xbf16>
    %c0_11 = arith.constant 0 : index
    %c0_12 = arith.constant 0 : index
    %c0_13 = arith.constant 0 : index
    %34 = vector.load %arg4[%c0_11, %c0_12, %c0_13] : memref<9x128x128xbf16, #tpu.memory_space<vmem>>, vector<1x128x128xbf16>
    %35 = vector.shape_cast %34 : vector<1x128x128xbf16> to vector<128x128xbf16>
    %cst_14 = arith.constant dense<0.000000e+00> : vector<64x128xf32>
    %36 = tpu.matmul %33, %35, %cst_14 {dimension_numbers = #tpu.dot_dimension_numbers<[1], [0], [0], [1], [0, 0, 1, 1], [], []>} : vector<64x128xbf16>, vector<128x128xbf16>, vector<64x128xf32> -> vector<64x128xf32>
    %37 = arith.addf %31, %36 : vector<64x128xf32>
    %38 = vector.extract_strided_slice %30 {offsets = [0, 1, 0], sizes = [8, 8, 128], strides = [1, 1, 1]} : vector<10x10x128xbf16> to vector<8x8x128xbf16>
    %39 = vector.shape_cast %38 : vector<8x8x128xbf16> to vector<64x128xbf16>
    %c1 = arith.constant 1 : index
    %c0_15 = arith.constant 0 : index
    %c0_16 = arith.constant 0 : index
    %40 = vector.load %arg4[%c1, %c0_15, %c0_16] : memref<9x128x128xbf16, #tpu.memory_space<vmem>>, vector<1x128x128xbf16>
    %41 = vector.shape_cast %40 : vector<1x128x128xbf16> to vector<128x128xbf16>
    %cst_17 = arith.constant dense<0.000000e+00> : vector<64x128xf32>
    %42 = tpu.matmul %39, %41, %cst_17 {dimension_numbers = #tpu.dot_dimension_numbers<[1], [0], [0], [1], [0, 0, 1, 1], [], []>} : vector<64x128xbf16>, vector<128x128xbf16>, vector<64x128xf32> -> vector<64x128xf32>
    %43 = arith.addf %37, %42 : vector<64x128xf32>
    %44 = vector.extract_strided_slice %30 {offsets = [0, 2, 0], sizes = [8, 8, 128], strides = [1, 1, 1]} : vector<10x10x128xbf16> to vector<8x8x128xbf16>
    %45 = vector.shape_cast %44 : vector<8x8x128xbf16> to vector<64x128xbf16>
    %c2 = arith.constant 2 : index
    %c0_18 = arith.constant 0 : index
    %c0_19 = arith.constant 0 : index
    %46 = vector.load %arg4[%c2, %c0_18, %c0_19] : memref<9x128x128xbf16, #tpu.memory_space<vmem>>, vector<1x128x128xbf16>
    %47 = vector.shape_cast %46 : vector<1x128x128xbf16> to vector<128x128xbf16>
    %cst_20 = arith.constant dense<0.000000e+00> : vector<64x128xf32>
    %48 = tpu.matmul %45, %47, %cst_20 {dimension_numbers = #tpu.dot_dimension_numbers<[1], [0], [0], [1], [0, 0, 1, 1], [], []>} : vector<64x128xbf16>, vector<128x128xbf16>, vector<64x128xf32> -> vector<64x128xf32>
    %49 = arith.addf %43, %48 : vector<64x128xf32>
    %50 = vector.extract_strided_slice %30 {offsets = [1, 0, 0], sizes = [8, 8, 128], strides = [1, 1, 1]} : vector<10x10x128xbf16> to vector<8x8x128xbf16>
    %51 = vector.shape_cast %50 : vector<8x8x128xbf16> to vector<64x128xbf16>
    %c3 = arith.constant 3 : index
    %c0_21 = arith.constant 0 : index
    %c0_22 = arith.constant 0 : index
    %52 = vector.load %arg4[%c3, %c0_21, %c0_22] : memref<9x128x128xbf16, #tpu.memory_space<vmem>>, vector<1x128x128xbf16>
    %53 = vector.shape_cast %52 : vector<1x128x128xbf16> to vector<128x128xbf16>
    %cst_23 = arith.constant dense<0.000000e+00> : vector<64x128xf32>
    %54 = tpu.matmul %51, %53, %cst_23 {dimension_numbers = #tpu.dot_dimension_numbers<[1], [0], [0], [1], [0, 0, 1, 1], [], []>} : vector<64x128xbf16>, vector<128x128xbf16>, vector<64x128xf32> -> vector<64x128xf32>
    %55 = arith.addf %49, %54 : vector<64x128xf32>
    %56 = vector.extract_strided_slice %30 {offsets = [1, 1, 0], sizes = [8, 8, 128], strides = [1, 1, 1]} : vector<10x10x128xbf16> to vector<8x8x128xbf16>
    %57 = vector.shape_cast %56 : vector<8x8x128xbf16> to vector<64x128xbf16>
    %c4 = arith.constant 4 : index
    %c0_24 = arith.constant 0 : index
    %c0_25 = arith.constant 0 : index
    %58 = vector.load %arg4[%c4, %c0_24, %c0_25] : memref<9x128x128xbf16, #tpu.memory_space<vmem>>, vector<1x128x128xbf16>
    %59 = vector.shape_cast %58 : vector<1x128x128xbf16> to vector<128x128xbf16>
    %cst_26 = arith.constant dense<0.000000e+00> : vector<64x128xf32>
    %60 = tpu.matmul %57, %59, %cst_26 {dimension_numbers = #tpu.dot_dimension_numbers<[1], [0], [0], [1], [0, 0, 1, 1], [], []>} : vector<64x128xbf16>, vector<128x128xbf16>, vector<64x128xf32> -> vector<64x128xf32>
    %61 = arith.addf %55, %60 : vector<64x128xf32>
    %62 = vector.extract_strided_slice %30 {offsets = [1, 2, 0], sizes = [8, 8, 128], strides = [1, 1, 1]} : vector<10x10x128xbf16> to vector<8x8x128xbf16>
    %63 = vector.shape_cast %62 : vector<8x8x128xbf16> to vector<64x128xbf16>
    %c5 = arith.constant 5 : index
    %c0_27 = arith.constant 0 : index
    %c0_28 = arith.constant 0 : index
    %64 = vector.load %arg4[%c5, %c0_27, %c0_28] : memref<9x128x128xbf16, #tpu.memory_space<vmem>>, vector<1x128x128xbf16>
    %65 = vector.shape_cast %64 : vector<1x128x128xbf16> to vector<128x128xbf16>
    %cst_29 = arith.constant dense<0.000000e+00> : vector<64x128xf32>
    %66 = tpu.matmul %63, %65, %cst_29 {dimension_numbers = #tpu.dot_dimension_numbers<[1], [0], [0], [1], [0, 0, 1, 1], [], []>} : vector<64x128xbf16>, vector<128x128xbf16>, vector<64x128xf32> -> vector<64x128xf32>
    %67 = arith.addf %61, %66 : vector<64x128xf32>
    %68 = vector.extract_strided_slice %30 {offsets = [2, 0, 0], sizes = [8, 8, 128], strides = [1, 1, 1]} : vector<10x10x128xbf16> to vector<8x8x128xbf16>
    %69 = vector.shape_cast %68 : vector<8x8x128xbf16> to vector<64x128xbf16>
    %c6 = arith.constant 6 : index
    %c0_30 = arith.constant 0 : index
    %c0_31 = arith.constant 0 : index
    %70 = vector.load %arg4[%c6, %c0_30, %c0_31] : memref<9x128x128xbf16, #tpu.memory_space<vmem>>, vector<1x128x128xbf16>
    %71 = vector.shape_cast %70 : vector<1x128x128xbf16> to vector<128x128xbf16>
    %cst_32 = arith.constant dense<0.000000e+00> : vector<64x128xf32>
    %72 = tpu.matmul %69, %71, %cst_32 {dimension_numbers = #tpu.dot_dimension_numbers<[1], [0], [0], [1], [0, 0, 1, 1], [], []>} : vector<64x128xbf16>, vector<128x128xbf16>, vector<64x128xf32> -> vector<64x128xf32>
    %73 = arith.addf %67, %72 : vector<64x128xf32>
    %74 = vector.extract_strided_slice %30 {offsets = [2, 1, 0], sizes = [8, 8, 128], strides = [1, 1, 1]} : vector<10x10x128xbf16> to vector<8x8x128xbf16>
    %75 = vector.shape_cast %74 : vector<8x8x128xbf16> to vector<64x128xbf16>
    %c7 = arith.constant 7 : index
    %c0_33 = arith.constant 0 : index
    %c0_34 = arith.constant 0 : index
    %76 = vector.load %arg4[%c7, %c0_33, %c0_34] : memref<9x128x128xbf16, #tpu.memory_space<vmem>>, vector<1x128x128xbf16>
    %77 = vector.shape_cast %76 : vector<1x128x128xbf16> to vector<128x128xbf16>
    %cst_35 = arith.constant dense<0.000000e+00> : vector<64x128xf32>
    %78 = tpu.matmul %75, %77, %cst_35 {dimension_numbers = #tpu.dot_dimension_numbers<[1], [0], [0], [1], [0, 0, 1, 1], [], []>} : vector<64x128xbf16>, vector<128x128xbf16>, vector<64x128xf32> -> vector<64x128xf32>
    %79 = arith.addf %73, %78 : vector<64x128xf32>
    %80 = vector.extract_strided_slice %30 {offsets = [2, 2, 0], sizes = [8, 8, 128], strides = [1, 1, 1]} : vector<10x10x128xbf16> to vector<8x8x128xbf16>
    %81 = vector.shape_cast %80 : vector<8x8x128xbf16> to vector<64x128xbf16>
    %c8 = arith.constant 8 : index
    %c0_36 = arith.constant 0 : index
    %c0_37 = arith.constant 0 : index
    %82 = vector.load %arg4[%c8, %c0_36, %c0_37] : memref<9x128x128xbf16, #tpu.memory_space<vmem>>, vector<1x128x128xbf16>
    %83 = vector.shape_cast %82 : vector<1x128x128xbf16> to vector<128x128xbf16>
    %cst_38 = arith.constant dense<0.000000e+00> : vector<64x128xf32>
    %84 = tpu.matmul %81, %83, %cst_38 {dimension_numbers = #tpu.dot_dimension_numbers<[1], [0], [0], [1], [0, 0, 1, 1], [], []>} : vector<64x128xbf16>, vector<128x128xbf16>, vector<64x128xf32> -> vector<64x128xf32>
    %85 = arith.addf %79, %84 : vector<64x128xf32>
    %cst_39 = arith.constant dense<0.000000e+00> : vector<128xf32>
    %86 = vector.multi_reduction <add>, %85, %cst_39 [0] : vector<64x128xf32> to vector<128xf32>
    %87 = vector.shape_cast %86 : vector<128xf32> to vector<1x128xf32>
    %c0_40 = arith.constant 0 : index
    %c0_41 = arith.constant 0 : index
    %c0_42 = arith.constant 0 : index
    %88 = vector.load %arg6[%c0_40, %c0_41, %c0_42] : memref<1x2x128xf32, #tpu.memory_space<vmem>>, vector<1x1x128xf32>
    %89 = vector.shape_cast %88 : vector<1x1x128xf32> to vector<1x128xf32>
    %90 = vector.shape_cast %87 : vector<1x128xf32> to vector<1x1x128xf32>
    tpu.vector_store %arg6[%c0_40, %c0_41, %c0_42], %90 {strides = array<i32>} : memref<1x2x128xf32, #tpu.memory_space<vmem>>, vector<1x1x128xf32>,
    %91 = arith.mulf %85, %85 : vector<64x128xf32>
    %cst_43 = arith.constant dense<0.000000e+00> : vector<128xf32>
    %92 = vector.multi_reduction <add>, %91, %cst_43 [0] : vector<64x128xf32> to vector<128xf32>
    %93 = vector.shape_cast %92 : vector<128xf32> to vector<1x128xf32>
    %c0_44 = arith.constant 0 : index
    %c1_45 = arith.constant 1 : index
    %c0_46 = arith.constant 0 : index
    %94 = vector.load %arg6[%c0_44, %c1_45, %c0_46] : memref<1x2x128xf32, #tpu.memory_space<vmem>>, vector<1x1x128xf32>
    %95 = vector.shape_cast %94 : vector<1x1x128xf32> to vector<1x128xf32>
    %96 = vector.shape_cast %93 : vector<1x128xf32> to vector<1x1x128xf32>
    tpu.vector_store %arg6[%c0_44, %c1_45, %c0_46], %96 {strides = array<i32>} : memref<1x2x128xf32, #tpu.memory_space<vmem>>, vector<1x1x128xf32>,
    %97 = vector.shape_cast %85 : vector<64x128xf32> to vector<8x8x128xf32>
    %c0_47 = arith.constant 0 : index
    %c0_48 = arith.constant 0 : index
    %c0_49 = arith.constant 0 : index
    %c0_50 = arith.constant 0 : index
    %98 = vector.load %arg5[%c0_47, %c0_48, %c0_49, %c0_50] : memref<1x8x8x128xf32, #tpu.memory_space<vmem>>, vector<1x8x8x128xf32>
    %99 = vector.shape_cast %98 : vector<1x8x8x128xf32> to vector<8x8x128xf32>
    %100 = vector.shape_cast %97 : vector<8x8x128xf32> to vector<1x8x8x128xf32>
    tpu.vector_store %arg5[%c0_47, %c0_48, %c0_49, %c0_50], %100 {strides = array<i32>} : memref<1x8x8x128xf32, #tpu.memory_space<vmem>>, vector<1x8x8x128xf32>,
    return
  }
  func.func @transform_0(%arg0: i32) -> (i32, i32, i32, i32) {
    %c0_i32 = arith.constant 0 : i32
    %c0_i32_0 = arith.constant 0 : i32
    %c0_i32_1 = arith.constant 0 : i32
    %c0_i32_2 = arith.constant 0 : i32
    return %arg0, %c0_i32, %c0_i32_0, %c0_i32_1 : i32, i32, i32, i32
  }
  func.func @transform_1(%arg0: i32) -> (i32, i32) {
    %c0_i32 = arith.constant 0 : i32
    %c0_i32_0 = arith.constant 0 : i32
    %c0_i32_1 = arith.constant 0 : i32
    return %c0_i32, %c0_i32_0 : i32, i32
  }
  func.func @transform_2(%arg0: i32) -> (i32, i32) {
    %c0_i32 = arith.constant 0 : i32
    %c0_i32_0 = arith.constant 0 : i32
    %c0_i32_1 = arith.constant 0 : i32
    return %c0_i32, %c0_i32_0 : i32, i32
  }
  func.func @transform_3(%arg0: i32) -> (i32, i32, i32) {
    %c0_i32 = arith.constant 0 : i32
    %c0_i32_0 = arith.constant 0 : i32
    %c0_i32_1 = arith.constant 0 : i32
    %c0_i32_2 = arith.constant 0 : i32
    return %c0_i32, %c0_i32_0, %c0_i32_1 : i32, i32, i32
  }
  func.func @transform_4(%arg0: i32) -> (i32, i32, i32, i32) {
    %c0_i32 = arith.constant 0 : i32
    %c0_i32_0 = arith.constant 0 : i32
    %c0_i32_1 = arith.constant 0 : i32
    %c0_i32_2 = arith.constant 0 : i32
    return %arg0, %c0_i32, %c0_i32_0, %c0_i32_1 : i32, i32, i32, i32
  }
  func.func @transform_5(%arg0: i32) -> (i32, i32, i32) {
    %c0_i32 = arith.constant 0 : i32
    %c0_i32_0 = arith.constant 0 : i32
    %c0_i32_1 = arith.constant 0 : i32
    return %arg0, %c0_i32, %c0_i32_0 : i32, i32, i32
  }
}

module attributes {stable_mosaic.version = 11 : i64} {
  func.func @_bn_add_relu_kernel(%arg0: i32, %arg1: memref<1x8x8x128xf32, #tpu.memory_space<vmem>>, %arg2: memref<1x8x8x128xf32, #tpu.memory_space<vmem>>, %arg3: memref<1x128xf32, #tpu.memory_space<vmem>>, %arg4: memref<1x128xf32, #tpu.memory_space<vmem>>, %arg5: memref<1x128xf32, #tpu.memory_space<vmem>>, %arg6: memref<1x128xf32, #tpu.memory_space<vmem>>, %arg7: memref<1x8x8x128xf32, #tpu.memory_space<vmem>>) attributes {dimension_semantics = [#tpu.dimension_semantics<parallel>], iteration_bounds = array<i64: 2>, scalar_prefetch = 0 : i64, scratch_operands = 0 : i64, tpu.core_type = #tpu.core_type<tc>, window_params = [{transform_indices = @transform_0, window_bounds = array<i64: 1, 8, 8, 128>}, {transform_indices = @transform_1, window_bounds = array<i64: 1, 8, 8, 128>}, {pipeline_mode = #tpu.pipeline_mode<synchronous>, transform_indices = @transform_2, window_bounds = array<i64: 1, 128>}, {pipeline_mode = #tpu.pipeline_mode<synchronous>, transform_indices = @transform_3, window_bounds = array<i64: 1, 128>}, {pipeline_mode = #tpu.pipeline_mode<synchronous>, transform_indices = @transform_4, window_bounds = array<i64: 1, 128>}, {pipeline_mode = #tpu.pipeline_mode<synchronous>, transform_indices = @transform_5, window_bounds = array<i64: 1, 128>}, {transform_indices = @transform_6, window_bounds = array<i64: 1, 8, 8, 128>}]} {
    %c0 = arith.constant 0 : index
    %c0_0 = arith.constant 0 : index
    %c0_1 = arith.constant 0 : index
    %c0_2 = arith.constant 0 : index
    %0 = vector.load %arg1[%c0, %c0_0, %c0_1, %c0_2] : memref<1x8x8x128xf32, #tpu.memory_space<vmem>>, vector<1x8x8x128xf32>
    %1 = vector.shape_cast %0 : vector<1x8x8x128xf32> to vector<8x8x128xf32>
    %c0_3 = arith.constant 0 : index
    %c0_4 = arith.constant 0 : index
    %2 = vector.load %arg3[%c0_3, %c0_4] : memref<1x128xf32, #tpu.memory_space<vmem>>, vector<1x128xf32>
    %3 = vector.shape_cast %2 : vector<1x128xf32> to vector<1x1x128xf32>
    %4 = vector.broadcast %3 : vector<1x1x128xf32> to vector<8x8x128xf32>
    %5 = arith.mulf %1, %4 : vector<8x8x128xf32>
    %c0_5 = arith.constant 0 : index
    %c0_6 = arith.constant 0 : index
    %6 = vector.load %arg4[%c0_5, %c0_6] : memref<1x128xf32, #tpu.memory_space<vmem>>, vector<1x128xf32>
    %7 = vector.shape_cast %6 : vector<1x128xf32> to vector<1x1x128xf32>
    %8 = vector.broadcast %7 : vector<1x1x128xf32> to vector<8x8x128xf32>
    %9 = arith.addf %5, %8 : vector<8x8x128xf32>
    %c0_7 = arith.constant 0 : index
    %c0_8 = arith.constant 0 : index
    %c0_9 = arith.constant 0 : index
    %c0_10 = arith.constant 0 : index
    %10 = vector.load %arg2[%c0_7, %c0_8, %c0_9, %c0_10] : memref<1x8x8x128xf32, #tpu.memory_space<vmem>>, vector<1x8x8x128xf32>
    %11 = vector.shape_cast %10 : vector<1x8x8x128xf32> to vector<8x8x128xf32>
    %c0_11 = arith.constant 0 : index
    %c0_12 = arith.constant 0 : index
    %12 = vector.load %arg5[%c0_11, %c0_12] : memref<1x128xf32, #tpu.memory_space<vmem>>, vector<1x128xf32>
    %13 = vector.shape_cast %12 : vector<1x128xf32> to vector<1x1x128xf32>
    %14 = vector.broadcast %13 : vector<1x1x128xf32> to vector<8x8x128xf32>
    %15 = arith.mulf %11, %14 : vector<8x8x128xf32>
    %c0_13 = arith.constant 0 : index
    %c0_14 = arith.constant 0 : index
    %16 = vector.load %arg6[%c0_13, %c0_14] : memref<1x128xf32, #tpu.memory_space<vmem>>, vector<1x128xf32>
    %17 = vector.shape_cast %16 : vector<1x128xf32> to vector<1x1x128xf32>
    %18 = vector.broadcast %17 : vector<1x1x128xf32> to vector<8x8x128xf32>
    %19 = arith.addf %15, %18 : vector<8x8x128xf32>
    %20 = arith.addf %9, %19 : vector<8x8x128xf32>
    %cst = arith.constant 0.000000e+00 : f32
    %21 = vector.broadcast %cst : f32 to vector<8x8x128xf32>
    %22 = arith.maximumf %20, %21 : vector<8x8x128xf32>
    %c0_15 = arith.constant 0 : index
    %c0_16 = arith.constant 0 : index
    %c0_17 = arith.constant 0 : index
    %c0_18 = arith.constant 0 : index
    %23 = vector.load %arg7[%c0_15, %c0_16, %c0_17, %c0_18] : memref<1x8x8x128xf32, #tpu.memory_space<vmem>>, vector<1x8x8x128xf32>
    %24 = vector.shape_cast %23 : vector<1x8x8x128xf32> to vector<8x8x128xf32>
    %25 = vector.shape_cast %22 : vector<8x8x128xf32> to vector<1x8x8x128xf32>
    tpu.vector_store %arg7[%c0_15, %c0_16, %c0_17, %c0_18], %25 {strides = array<i32>} : memref<1x8x8x128xf32, #tpu.memory_space<vmem>>, vector<1x8x8x128xf32>,
    return
  }
  func.func @transform_0(%arg0: i32) -> (i32, i32, i32, i32) {
    %c0_i32 = arith.constant 0 : i32
    %c0_i32_0 = arith.constant 0 : i32
    %c0_i32_1 = arith.constant 0 : i32
    %c0_i32_2 = arith.constant 0 : i32
    return %arg0, %c0_i32, %c0_i32_0, %c0_i32_1 : i32, i32, i32, i32
  }
  func.func @transform_1(%arg0: i32) -> (i32, i32, i32, i32) {
    %c0_i32 = arith.constant 0 : i32
    %c0_i32_0 = arith.constant 0 : i32
    %c0_i32_1 = arith.constant 0 : i32
    %c0_i32_2 = arith.constant 0 : i32
    return %arg0, %c0_i32, %c0_i32_0, %c0_i32_1 : i32, i32, i32, i32
  }
  func.func @transform_2(%arg0: i32) -> (i32, i32) {
    %c0_i32 = arith.constant 0 : i32
    %c0_i32_0 = arith.constant 0 : i32
    %c0_i32_1 = arith.constant 0 : i32
    return %c0_i32, %c0_i32_0 : i32, i32
  }
  func.func @transform_3(%arg0: i32) -> (i32, i32) {
    %c0_i32 = arith.constant 0 : i32
    %c0_i32_0 = arith.constant 0 : i32
    %c0_i32_1 = arith.constant 0 : i32
    return %c0_i32, %c0_i32_0 : i32, i32
  }
  func.func @transform_4(%arg0: i32) -> (i32, i32) {
    %c0_i32 = arith.constant 0 : i32
    %c0_i32_0 = arith.constant 0 : i32
    %c0_i32_1 = arith.constant 0 : i32
    return %c0_i32, %c0_i32_0 : i32, i32
  }
  func.func @transform_5(%arg0: i32) -> (i32, i32) {
    %c0_i32 = arith.constant 0 : i32
    %c0_i32_0 = arith.constant 0 : i32
    %c0_i32_1 = arith.constant 0 : i32
    return %c0_i32, %c0_i32_0 : i32, i32
  }
  func.func @transform_6(%arg0: i32) -> (i32, i32, i32, i32) {
    %c0_i32 = arith.constant 0 : i32
    %c0_i32_0 = arith.constant 0 : i32
    %c0_i32_1 = arith.constant 0 : i32
    %c0_i32_2 = arith.constant 0 : i32
    return %arg0, %c0_i32, %c0_i32_0, %c0_i32_1 : i32, i32, i32, i32
  }
}

</mosaic_0001>

<bundles_post_ra>
// kernel: basic_block_forward.5
= control target key start
LH: loop header
LB: loop body
LE: loop exit
PB: predicated region body
PF: predicated region fallthrough
CT: control target
= control target key end

     0   :  { %s510_s21 = smov 0   ;;  %s597_s0 = inlined_call_operand.vmem [shape: f32[2,8,8,128], index: 0, kind: input, shape index: {}]   ;;  %s598_s1 = inlined_call_operand.vmem [shape: f32[2,8,8,128], index: 1, kind: input, shape index: {}]   ;;  %s599_s2 = inlined_call_operand.vmem [shape: f32[1,128], index: 2, kind: input, shape index: {}]   ;;  %s600_s3 = inlined_call_operand.vmem [shape: f32[1,128], index: 3, kind: input, shape index: {}]   ;;  %s601_s4 = inlined_call_operand.vmem [shape: f32[1,128], index: 4, kind: input, shape index: {}]   ;;  %s602_s5 = inlined_call_operand.vmem [shape: f32[1,128], index: 5, kind: input, shape index: {}]   ;;  %s603_s6 = inlined_call_operand.vmem [shape: f32[2,8,8,128], index: 6, kind: output, shape index: {}]  }
   0x1 LB: > { %s439_s22 = sadd.s32 4294967295, %s473_s21   ;;  %p443_p0 = scmp.ge.s32.totalorder %s473_s21, 1  ;;  %s473_s21 = sphi %s510_s21, %s16_s21  }
   0x2   : > { %p222_p1 = scmp.lt.s32.totalorder %s473_s21, 3 }
   0x4   : > { %p223_p2 = pnand %p443_p0, %p222_p1 }
   0x5   : > { %p257_p3 = scmp.lt.s32.totalorder (!%p223_p2), %s439_s22, 1  ;;  %v450_v0 = vld [vmem:[%s599_s2] ss:$0 sm:$0xff] (!%p223_p2) }
   0x6   : > { %226 = sbr.rel (%p223_p2) target bundleno = 35 (0x23), region = 44  ;;  %v452_v1 = vld [vmem:[%s601_s4] ss:$0 sm:$0xff] (!%p223_p2) }
   0x7   : > { %v541_v2 = vld [vmem:[%s600_s3] ss:$0 sm:$0xff] (!%p223_p2) }
   0x8   : > { %v546_v3 = vld [vmem:[%s602_s5] ss:$0 sm:$0xff] (!%p223_p2) }
   0xd   : > { %s605_s22 = smov (!%p257_p3, %s439_s22), 1 }
   0xe   : > { %s518_s23 = sshll.u32 %s605_s22, 6 }
   0xf   : > { %s530_s30 = scalar_lea.vmem %s597_s0, %s518_s23  ;;  %s536_s9 = scalar_lea.vmem %s598_s1, %s518_s23 }
  0x10   : > { %v272_v4 = vld [vmem:[%s530_s30] sm:$0xff]  ;;  %v273_v6 = vld [vmem:[%s530_s30 + $0x8] sm:$0xff]  ;;  %v274_v11 = vld [vmem:[%s530_s30 + $0x10] sm:$0xff]  ;;  %s571_s16 = scalar_lea.vmem %s603_s6, %s518_s23 }
  0x11   : > { %v310_v5 = vld [vmem:[%s536_s9] sm:$0xff]  ;;  %v287_v7 = vmul.f32 %v450_v0, %v272_v4  ;;  %v288_v9 = vmul.f32 %v450_v0, %v273_v6  ;;  %v311_v10 = vld [vmem:[%s536_s9 + $0x8] sm:$0xff]  ;;  %v312_v12 = vld [vmem:[%s536_s9 + $0x10] sm:$0xff]  ;;  %v289_v14 = vmul.f32 %v450_v0, %v274_v11 }
  0x12   : > { %v325_v8 = vmul.f32 %v452_v1, %v310_v5  ;;  %v326_v13 = vmul.f32 %v452_v1, %v311_v10  ;;  %v327_v15 = vmul.f32 %v452_v1, %v312_v12  ;;  %v275_v16 = vld [vmem:[%s530_s30 + $0x18] sm:$0xff]  ;;  %v276_v18 = vld [vmem:[%s530_s30 + $0x20] sm:$0xff]  ;;  %v277_v24 = vld [vmem:[%s530_s30 + $0x28] sm:$0xff] }
  0x13   : > { %v313_v17 = vld [vmem:[%s536_s9 + $0x18] sm:$0xff]  ;;  %v302_v19 = vadd.f32 %v541_v2, %v287_v7  ;;  %v303_v21 = vadd.f32 %v541_v2, %v288_v9  ;;  %v290_v22 = vmul.f32 %v450_v0, %v275_v16  ;;  %v314_v23 = vld [vmem:[%s536_s9 + $0x20] sm:$0xff]  ;;  %v304_v26 = vadd.f32 %v541_v2, %v289_v14  ;;  %v315_v29 = vld [vmem:[%s536_s9 + $0x28] sm:$0xff] }
  0x14   : > { %v340_v20 = vadd.f32 %v546_v3, %v325_v8  ;;  %v341_v25 = vadd.f32 %v546_v3, %v326_v13  ;;  %v342_v27 = vadd.f32 %v546_v3, %v327_v15  ;;  %v328_v28 = vmul.f32 %v452_v1, %v313_v17  ;;  %v278_v38 = vld [vmem:[%s530_s30 + $0x30] sm:$0xff]  ;;  %v279_v44 = vld [vmem:[%s530_s30 + $0x38] sm:$0xff] }
  0x15   : > { %v305_v31 = vadd.f32 %v541_v2, %v290_v22  ;;  %v291_v32 = vmul.f32 %v450_v0, %v276_v18  ;;  %v329_v33 = vmul.f32 %v452_v1, %v314_v23  ;;  %v292_v37 = vmul.f32 %v450_v0, %v277_v24  ;;  %v316_v39 = vld [vmem:[%s536_s9 + $0x30] sm:$0xff]  ;;  %v317_v45 = vld [vmem:[%s536_s9 + $0x38] sm:$0xff] }
  0x16   : > { %v348_v30 = vadd.f32 %v340_v20, %v302_v19  ;;  %v349_v34 = vadd.f32 %v341_v25, %v303_v21  ;;  %v350_v35 = vadd.f32 %v342_v27, %v304_v26  ;;  %v343_v36 = vadd.f32 %v546_v3, %v328_v28 }
  0x17   : > { %v306_v41 = vadd.f32 %v541_v2, %v291_v32  ;;  %v344_v42 = vadd.f32 %v546_v3, %v329_v33  ;;  %v330_v43 = vmul.f32 %v452_v1, %v315_v29  ;;  %v307_v49 = vadd.f32 %v541_v2, %v292_v37 }
  0x18   : > { %v356_v40 = vmax.f32 %v348_v30, 0.0  ;;  %v357_v46 = vmax.f32 %v349_v34, 0.0  ;;  %v358_v47 = vmax.f32 %v350_v35, 0.0  ;;  %v351_v48 = vadd.f32 %v343_v36, %v305_v31 }
  0x19   : > { %v352_v50 = vadd.f32 %v344_v42, %v306_v41  ;;  %v345_v51 = vadd.f32 %v546_v3, %v330_v43  ;;  %v293_v52 = vmul.f32 %v450_v0, %v278_v38  ;;  %v331_v53 = vmul.f32 %v452_v1, %v316_v39 }
  0x1a   : > { %364 = vst [vmem:[%s571_s16] sm:$0xff] %v356_v40  ;;  %365 = vst [vmem:[%s571_s16 + $0x8] sm:$0xff] %v357_v46  ;;  %v359_v54 = vmax.f32 %v351_v48, 0.0  ;;  %v294_v55 = vmul.f32 %v450_v0, %v279_v44  ;;  %v332_v56 = vmul.f32 %v452_v1, %v317_v45 }
  0x1b   : > { %366 = vst [vmem:[%s571_s16 + $0x10] sm:$0xff] %v358_v47  ;;  %v360_v57 = vmax.f32 %v352_v50, 0.0  ;;  %v353_v58 = vadd.f32 %v345_v51, %v307_v49  ;;  %v308_v59 = vadd.f32 %v541_v2, %v293_v52  ;;  %v346_v60 = vadd.f32 %v546_v3, %v331_v53 }
  0x1c   : > { %367 = vst [vmem:[%s571_s16 + $0x18] sm:$0xff] %v359_v54  ;;  %v309_v61 = vadd.f32 %v541_v2, %v294_v55  ;;  %v347_v62 = vadd.f32 %v546_v3, %v332_v56 }
  0x1d   : > { %368 = vst [vmem:[%s571_s16 + $0x20] sm:$0xff] %v360_v57  ;;  %v361_v63 = vmax.f32 %v353_v58, 0.0  ;;  %v354_v4 = vadd.f32 %v346_v60, %v308_v59 }
  0x1e   : > { %v355_v5 = vadd.f32 %v347_v62, %v309_v61 }
  0x1f   : > { %369 = vst [vmem:[%s571_s16 + $0x28] sm:$0xff] %v361_v63  ;;  %v362_v0 = vmax.f32 %v354_v4, 0.0 }
  0x20   : > { %v363_v6 = vmax.f32 %v355_v5, 0.0 }
  0x21   : > { %370 = vst [vmem:[%s571_s16 + $0x30] sm:$0xff] %v362_v0 }
  0x22   : > { %371 = vst [vmem:[%s571_s16 + $0x38] sm:$0xff] %v363_v6 }
  0x23 PF: > { %s16_s21 = sadd.s32 1, %s473_s21  }
  0x24   : > { %p13_p4 = scmp.ge.s32.totalorder %s16_s21, 4  }
  0x26   :  { %15 = sbr.rel (!%p13_p4) target bundleno = 1 (0x1), region = 77 }

// kernel: basic_block_forward.4
= control target key start
LH: loop header
LB: loop body
LE: loop exit
PB: predicated region body
PF: predicated region fallthrough
CT: control target
= control target key end

     0   :  { %s2918_s18 = smov 0   ;;  %s3582_s0 = inlined_call_operand.vmem [shape: bf16[2,10,10,128], index: 0, kind: input, shape index: {}]   ;;  %s3583_s1 = inlined_call_operand.vmem [shape: f32[1,128], index: 1, kind: input, shape index: {}]   ;;  %s3584_s2 = inlined_call_operand.vmem [shape: f32[1,128], index: 2, kind: input, shape index: {}]   ;;  %s3585_s3 = inlined_call_operand.vmem [shape: bf16[9,128,128], index: 3, kind: input, shape index: {}]   ;;  %s3586_s4 = inlined_call_operand.vmem [shape: f32[2,8,8,128], index: 4, kind: output, shape index: {0}]   ;;  %s3587_s5 = inlined_call_operand.vmem [shape: f32[2,2,128], index: 5, kind: output, shape index: {1}]  }
   0x1 LB: > { %s2069_s19 = sadd.s32 4294967295, %s2885_s18   ;;  %p2073_p0 = scmp.ge.s32.totalorder %s2885_s18, 1  ;;  %s2885_s18 = sphi %s2918_s18, %s16_s18  }
   0x2   : > { %p190_p1 = scmp.lt.s32.totalorder %s2885_s18, 3 }
   0x4   : > { %p191_p2 = pnand %p2073_p0, %p190_p1 }
   0x5   : > { %v2807_v0 = vld [vmem:[%s3585_s3 + $0x40] sm:$0xff] (!%p191_p2)   ;;  %p222_p3 = scmp.lt.s32.totalorder (!%p191_p2), %s2069_s19, 1  ;;  %v2809_v2 = vld [vmem:[%s3585_s3 + $0x48] sm:$0xff] (!%p191_p2)   ;;  %v351_v4 = vlaneseq (!%p191_p2)  ;;  %v2811_v5 = vld [vmem:[%s3585_s3 + $0x50] sm:$0xff] (!%p191_p2)   ;;  %v2887_v6 = vmov (!%p191_p2), 0.0|0.0   ;;  %vm842_vm5 = vcmask (!%p191_p2), 1042432  }
   0x6   : > { %194 = sbr.rel (%p191_p2) target bundleno = 433 (0x1b1), region = 36  ;;  %v2808_v1 = vld [vmem:[%s3585_s3 + $0x100] sm:$0xff] (!%p191_p2)   ;;  %2501 = vmatprep.subr.bf16.mxu1 (!%p191_p2), %v2807_v0  ;;  %v2810_v3 = vld [vmem:[%s3585_s3 + $0x108] sm:$0xff] (!%p191_p2)   ;;  %v2945_v7 = vcombine.low (!%p191_p2), %v2887_v6, %v2887_v6  ;;  %v2812_v8 = vld [vmem:[%s3585_s3 + $0x110] sm:$0xff] (!%p191_p2)   ;;  %v2958_v11 = vcombine.high (!%p191_p2), %v2887_v6, %v2887_v6  ;;  %vm460_vm2 = vsmask.f32 (!%p191_p2), 3328 }
   0x7   : > { %2597 = vmatprep.subr.bf16.mxu0 (!%p191_p2), %v2808_v1  ;;  %2502 = vmatpush3.bf16.msra.mxu1 (!%p191_p2), %v2807_v0  ;;  %v2951_v9 = vshrl.u32 (!%p191_p2), %v351_v4, 7  ;;  %v2813_v10 = vld [vmem:[%s3585_s3 + $0x58] sm:$0xff] (!%p191_p2)   ;;  %v2815_v18 = vld [vmem:[%s3585_s3 + $0x60] sm:$0xff] (!%p191_p2)   ;;  %v2817_v22 = vld [vmem:[%s3585_s3 + $0x68] sm:$0xff] (!%p191_p2)   ;;  %vm461_vm3 = vsmask.f32 (!%p191_p2), 7440 }
   0x8   : > { %2598 = vmatpush3.bf16.msra.mxu0 (!%p191_p2), %v2808_v1  ;;  %2503 = vmatprep.subr.bf16.mxu1 (!%p191_p2), %v2809_v2  ;;  %v464_v12 = vshrl.u32 (!%p191_p2), %v2945_v7, 16  ;;  %v2814_v13 = vld [vmem:[%s3585_s3 + $0x118] sm:$0xff] (!%p191_p2)   ;;  %v467_v14 = vshll.u32 (!%p191_p2), %v2945_v7, 16  ;;  %v473_v19 = vshll.u32 (!%p191_p2), %v2958_v11, 16  ;;  %v2816_v20 = vld [vmem:[%s3585_s3 + $0x120] sm:$0xff] (!%p191_p2)   ;;  %v2818_v23 = vld [vmem:[%s3585_s3 + $0x128] sm:$0xff] (!%p191_p2)  }
   0x9   : > { %2599 = vmatprep.subr.bf16.mxu0 (!%p191_p2), %v2810_v3  ;;  %v2966_v15 = vadd.s32 (!%p191_p2), 8, %v2951_v9  ;;  %vm354_vm0 = vcmp.ge.s32.totalorder (!%p191_p2), %v2951_v9, 1  ;;  %v2994_v29 = vld [vmem:[%s3583_s1] ss:$0 sm:$0xff] (!%p191_p2)  ;;  %v2819_v35 = vld [vmem:[%s3585_s3 + $0x70] sm:$0xff] (!%p191_p2)   ;;  %vm3008_vm4 = vmor (!%p191_p2), %vm460_vm2, %vm461_vm3  ;;  %vm843_vm6 = vcmask (!%p191_p2), 1046532  }
   0xa   : > { %v466_v16 = vrot.slane (!%p191_p2), %v464_v12, 4  ;;  %v469_v17 = vrot.slane (!%p191_p2), %v467_v14, 5  ;;  %v475_v25 = vrot.slane (!%p191_p2), %v473_v19, 5  ;;  %v2999_v30 = vld [vmem:[%s3584_s2] ss:$0 sm:$0xff] (!%p191_p2)  ;;  %v2820_v47 = vld [vmem:[%s3585_s3 + $0x130] sm:$0xff] (!%p191_p2)   ;;  %vm3280_vm7 = vmor (!%p191_p2), %vm842_vm5, %vm843_vm6 }
   0xb   : > { %2504 = vmatpush3.bf16.msra.mxu1 (!%p191_p2), %v2809_v2  ;;  %vm361_vm1 = vcmp.le.s32.totalorder (!%p191_p2), %v2966_v15, 8  ;;  %v2821_v57 = vld [vmem:[%s3585_s3 + $0x78] sm:$0xff] (!%p191_p2)   ;;  %vm3361_vm8 = vmpackc.low (!%p191_p2), %vm354_vm0, %vm354_vm0 }
   0xc   : > { %2600 = vmatpush3.bf16.msra.mxu0 (!%p191_p2), %v2810_v3  ;;  %2505 = vmatprep.subr.bf16.mxu1 (!%p191_p2), %v2811_v5  ;;  %v470_v21 = vor.u32 (!%p191_p2), %v469_v17, %v466_v16  ;;  %v2822_v58 = vld [vmem:[%s3585_s3 + $0x138] sm:$0xff] (!%p191_p2)  }
   0xd   : > { %s3595_s19 = smov (!%p222_p3, %s2069_s19), 1  ;;  %2601 = vmatprep.subr.bf16.mxu0 %v2812_v8 }
   0xe   : > { %s2797_s7 = smul.u32 80, %s3595_s19  ;;  %v471_v24 = vrot.slane %v470_v21, 4  ;;  %s2339_s9 = sshll.u32 %s3595_s19, 6 }
   0xf   : > { %2506 = vmatpush3.bf16.msra.mxu1 %v2811_v5  ;;  %s231_s12 = scalar_lea.vmem %s3586_s4, %s2339_s9  ;;  %s2077_s13 = sshll.u32 %s3595_s19, 1 }
  0x10   : > { %2602 = vmatpush3.bf16.msra.mxu0 %v2812_v8  ;;  %2507 = vmatprep.subr.bf16.mxu1 %v2813_v10  ;;  %s2978_s20 = scalar_lea.vmem %s3582_s0, %s2797_s7  ;;  %v3015_v42 = vsel %vm3008_vm4, %v471_v24, %v475_v25  ;;  %v3095_v24 = vld [vmem:[%s3585_s3] sm:$0xff]   ;;  %s235_s16 = scalar_lea.vmem %s3587_s5, %s2077_s13 }
  0x11   : > { %2603 = vmatprep.subr.bf16.mxu0 %v2814_v13  ;;  %v239_v26 = vld [vmem:[%s2978_s20 + $0x8] ss:$56 sps:$4 sm:$0xff]   ;;  %v240_v27 = vld [vmem:[%s2978_s20 + $0xc] sm:$0x1]  ;;  %v254_v28 = vld [vmem:[%s2978_s20 + $0x44] sm:$0x1] }
  0x12   : > { %v261_v31 = vunpack.c.l.bf16 %v239_v26  ;;  %v262_v32 = vunpack.c.l.bf16 %v240_v27  ;;  %v275_v33 = vunpack.c.h.bf16 %v239_v26  ;;  %v276_v34 = vunpack.c.l.bf16 %v254_v28  ;;  %v241_v41 = vld [vmem:[%s2978_s20 + $0x10] ss:$8 sps:$4 sm:$0xff]   ;;  %v242_v43 = vld [vmem:[%s2978_s20 + $0x14] sm:$0x1]  ;;  %v244_v44 = vld [vmem:[%s2978_s20 + $0x1c] sm:$0x1] }
  0x13   : > { %2508 = vmatpush3.bf16.msra.mxu1 %v2813_v10  ;;  %v263_v45 = vunpack.c.l.bf16 %v241_v41  ;;  %v265_v46 = vunpack.c.h.bf16 %v241_v41  ;;  %v3031_v52 = vld [vmem:[%s2978_s20 + $0x20] ss:$8 sps:$4 sm:$0xff]   ;;  %v264_v53 = vunpack.c.l.bf16 %v242_v43  ;;  %v266_v54 = vunpack.c.l.bf16 %v244_v44 }
  0x14   : > { %2604 = vmatpush3.bf16.msra.mxu0 %v2814_v13  ;;  %2509 = vmatprep.subr.bf16.mxu1 %v2815_v18  ;;  %v287_v36 = vmul.f32 %v2994_v29, %v261_v31  ;;  %v288_v37 = vmul.f32 %v2994_v29, %v262_v32  ;;  %v301_v38 = vmul.f32 %v2994_v29, %v275_v33  ;;  %v267_v2 = vunpack.c.l.bf16 %v3031_v52  ;;  %v3100_v25 = vld [vmem:[%s3585_s3 + $0x140] sm:$0xff]  }
  0x15   : > { %2605 = vmatprep.subr.bf16.mxu0 %v2816_v20  ;;  %v302_v39 = vmul.f32 %v2994_v29, %v276_v34  ;;  %v289_v55 = vmul.f32 %v2994_v29, %v263_v45  ;;  %v291_v56 = vmul.f32 %v2994_v29, %v265_v46  ;;  %v290_v63 = vmul.f32 %v2994_v29, %v264_v53 }
  0x16   : > { %v3023_v48 = vadd.f32 %v2999_v30, %v287_v36  ;;  %v314_v49 = vadd.f32 %v2999_v30, %v288_v37  ;;  %v3027_v50 = vadd.f32 %v2999_v30, %v301_v38  ;;  %v292_v0 = vmul.f32 %v2994_v29, %v266_v54 }
  0x17   : > { %2510 = vmatpush3.bf16.msra.mxu1 %v2815_v18  ;;  %v328_v51 = vadd.f32 %v2999_v30, %v302_v39  ;;  %v315_v1 = vadd.f32 %v2999_v30, %v289_v55  ;;  %v316_v16 = vadd.f32 %v2999_v30, %v290_v63  ;;  %v317_v17 = vadd.f32 %v2999_v30, %v291_v56 }
  0x18   : > { %2606 = vmatpush3.bf16.msra.mxu0 %v2816_v20  ;;  %2511 = vmatprep.subr.bf16.mxu1 %v2817_v22  ;;  %v333_v59 = vmax.f32 %v3023_v48, 0.0  ;;  %v334_v60 = vmax.f32 %v314_v49, 0.0  ;;  %v347_v61 = vmax.f32 %v3027_v50, 0.0  ;;  %v318_v18 = vadd.f32 %v2999_v30, %v292_v0  ;;  %v2838_v50 = vld [vmem:[%s3585_s3 + $0x178] sm:$0xff]  }
  0x19   : > { %2607 = vmatprep.subr.bf16.mxu0 %v2818_v23  ;;  %v348_v62 = vmax.f32 %v328_v51, 0.0  ;;  %v3086_v19 = vmax.f32 %v315_v1, 0.0  ;;  %v336_v28 = vmax.f32 %v316_v16, 0.0  ;;  %v3104_v31 = vmax.f32 %v317_v17, 0.0 }
  0x1a   : > { %v3051_v3 = vsel %vm354_vm0, %v333_v59, 0.0  ;;  %v3055_v4 = vsel %vm361_vm1, %v334_v60, 0.0  ;;  %v3061_v5 = vsel %vm354_vm0, %v347_v61, 0.0  ;;  %v338_v38 = vmax.f32 %v318_v18, 0.0 }
  0x1b   : > { %2512 = vmatpush3.bf16.msra.mxu1 %v2817_v22  ;;  %v3065_v8 = vsel %vm361_vm1, %v348_v62, 0.0  ;;  %v3069_v10 = vpack.c.bf16 %v3051_v3, %v3051_v3  ;;  %v3073_v12 = vpack.c.bf16 %v3055_v4, %v3055_v4  ;;  %v3077_v13 = vpack.c.bf16 %v3061_v5, %v3061_v5 }
  0x1c   : > { %2608 = vmatpush3.bf16.msra.mxu0 %v2818_v23  ;;  %2513 = vmatprep.subr.bf16.mxu1 %v2819_v35  ;;  %v3081_v14 = vpack.c.bf16 %v3065_v8, %v3065_v8  ;;  %v378_v39 = vsel %vm354_vm0, %v3086_v19, 0.0  ;;  %v379_v43 = vsel %vm361_vm1, %v336_v28, 0.0  ;;  %v380_v44 = vsel %vm354_vm0, %v3104_v31, 0.0 }
  0x1d   : > { %2609 = vmatprep.subr.bf16.mxu0 %v2820_v47  ;;  %v478_v20 = vshrl.u32 %v3069_v10, 16  ;;  %v481_v21 = vshll.u32 %v3069_v10, 16  ;;  %v487_v22 = vshll.u32 %v3073_v12, 16  ;;  %v1183_v23 = vshrl.u32 %v3077_v13, 16 }
  0x1e   : > { %v1186_v26 = vshll.u32 %v3077_v13, 16  ;;  %v1192_v27 = vshll.u32 %v3081_v14, 16  ;;  %v3115_v45 = vpack.c.bf16 %v378_v39, %v378_v39  ;;  %v3119_v49 = vpack.c.bf16 %v379_v43, %v379_v43 }
  0x1f   : > { %2514 = vmatpush3.bf16.msra.mxu1 %v2819_v35  ;;  %v480_v32 = vrot.slane %v478_v20, 4  ;;  %v483_v33 = vrot.slane %v481_v21, 5  ;;  %v489_v34 = vrot.slane %v487_v22, 5  ;;  %v1185_v35 = vrot.slane %v1183_v23, 4  ;;  %v248_v23 = vld [vmem:[%s2978_s20 + $0x2c] sm:$0x1] }
  0x20   : > { %2610 = vmatpush3.bf16.msra.mxu0 %v2820_v47  ;;  %2515 = vmatprep.subr.bf16.mxu1 %v2821_v57  ;;  %v1188_v36 = vrot.slane %v1186_v26, 5  ;;  %v1194_v37 = vrot.slane %v1192_v27, 5  ;;  %v381_v47 = vsel %vm361_vm1, %v338_v38, 0.0  ;;  %v3121_v51 = vpack.c.bf16 %v380_v44, %v380_v44  ;;  %v250_v38 = vld [vmem:[%s2978_s20 + $0x34] sm:$0x1] }
  0x21   : > { %2611 = vmatprep.subr.bf16.mxu0 %v2822_v58  ;;  %v484_v41 = vor.u32 %v483_v33, %v480_v32  ;;  %v3124_v54 = vpack.c.bf16 %v381_v47, %v381_v47  ;;  %v492_v55 = vshrl.u32 %v3115_v45, 16  ;;  %v495_v56 = vshll.u32 %v3115_v45, 16 }
  0x22   : > { %v1189_v46 = vor.u32 %v1188_v36, %v1185_v35  ;;  %v501_v60 = vshll.u32 %v3119_v49, 16  ;;  %v506_v62 = vshrl.u32 %v3121_v51, 16  ;;  %v509_v63 = vshll.u32 %v3121_v51, 16 }
  0x23   : > { %2516 = vmatpush3.bf16.msra.mxu1 %v2821_v57  ;;  %v485_v53 = vrot.slane %v484_v41, 4  ;;  %v246_v57 = vld [vmem:[%s2978_s20 + $0x24] sm:$0x1]  ;;  %v494_v1 = vrot.slane %v492_v55, 4  ;;  %v497_v16 = vrot.slane %v495_v56, 5  ;;  %v515_v17 = vshll.u32 %v3124_v54, 16 }
  0x24   : > { %2612 = vmatpush3.bf16.msra.mxu0 %v2822_v58  ;;  %2525 = vmatprep.subr.bf16.mxu1 %v3095_v24  ;;  %v1190_v58 = vrot.slane %v1189_v46, 4  ;;  %v503_v21 = vrot.slane %v501_v60, 5  ;;  %v508_v22 = vrot.slane %v506_v62, 4  ;;  %v511_v28 = vrot.slane %v509_v63, 5 }
  0x25   : > { %2621 = vmatprep.subr.bf16.mxu0 %v3100_v25  ;;  %v490_v0 = vsel %vm3008_vm4, %v485_v53, %v489_v34  ;;  %v498_v27 = vor.u32 %v497_v16, %v494_v1  ;;  %v517_v32 = vrot.slane %v515_v17, 5  ;;  %v268_v33 = vunpack.c.l.bf16 %v246_v57 }
  0x26   : > { %v2112_v18 = vcombine.low %v3015_v42, %v490_v0  ;;  %v3138_v20 = vsel %vm3008_vm4, %v1190_v58, %v1194_v37  ;;  %v293_v34 = vmul.f32 %v2994_v29, %v267_v2  ;;  %v269_v35 = vunpack.c.h.bf16 %v3031_v52  ;;  %v3148_v37 = vld [vmem:[%s2978_s20 + $0x30] ss:$8 sps:$4 sm:$0xff]  }
  0x27   : > { %v2302_v26 = vcombine.low %v3138_v20, %v3015_v42  ;;  %v270_v36 = vunpack.c.l.bf16 %v248_v23  ;;  %v499_v39 = vrot.slane %v498_v27, 4  ;;  %v512_v41 = vor.u32 %v511_v28, %v508_v22  ;;  %v2825_v27 = vld [vmem:[%s3585_s3 + $0x8] sm:$0xff]  }
  0x28   : > { %2517 = vmatprep.mubr.bf16.mxu1 %v2112_v18  ;;  %v271_v43 = vunpack.c.l.bf16 %v3148_v37  ;;  %v272_v44 = vunpack.c.l.bf16 %v250_v38  ;;  %v294_v46 = vmul.f32 %v2994_v29, %v268_v33  ;;  %v319_v47 = vadd.f32 %v2999_v30, %v293_v34 }
  0x29   : > { %v295_v53 = vmul.f32 %v2994_v29, %v269_v35  ;;  %v296_v2 = vmul.f32 %v2994_v29, %v270_v36  ;;  %v504_v52 = vsel %vm3008_vm4, %v499_v39, %v503_v21  ;;  %v513_v55 = vrot.slane %v512_v41, 4  ;;  %v252_v21 = vld [vmem:[%s2978_s20 + $0x3c] sm:$0x1] }
  0x2a   : > { %v297_v56 = vmul.f32 %v2994_v29, %v271_v43  ;;  %v298_v57 = vmul.f32 %v2994_v29, %v272_v44  ;;  %v2218_v58 = vcombine.low %v490_v0, %v504_v52  ;;  %v320_v60 = vadd.f32 %v2999_v30, %v294_v46 }
  0x2b   : > { %v3161_v62 = vmax.f32 %v319_v47, 0.0  ;;  %v321_v63 = vadd.f32 %v2999_v30, %v295_v53  ;;  %v3166_v1 = vsel %vm3008_vm4, %v513_v55, %v517_v32  ;;  %v322_v16 = vadd.f32 %v2999_v30, %v296_v2  ;;  %v2827_v47 = vld [vmem:[%s3585_s3 + $0x10] sm:$0xff]  }
  0x2c   : > { %v323_v17 = vadd.f32 %v2999_v30, %v297_v56  ;;  %v324_v18 = vadd.f32 %v2999_v30, %v298_v57  ;;  %v3173_v22 = vcombine.low %v504_v52, %v3166_v1  ;;  %2613 = vmatprep.mubr.bf16.mxu0 %v2218_v58  ;;  %v340_v0 = vmax.f32 %v320_v60, 0.0 }
  0x2d   : > { %v382_v23 = vsel %vm354_vm0, %v3161_v62, 0.0  ;;  %v3181_v28 = vmax.f32 %v321_v63, 0.0  ;;  %v342_v33 = vmax.f32 %v322_v16, 0.0  ;;  %v273_v39 = vunpack.c.h.bf16 %v3148_v37 }
  0x2e   : > { %v3183_v32 = vpack.c.bf16 %v382_v23, %v382_v23  ;;  %v3185_v34 = vmax.f32 %v323_v17, 0.0  ;;  %v344_v35 = vmax.f32 %v324_v18, 0.0  ;;  %2518 = vmatmul.mubr.bf16.vlgmr.msra.gmra.mrb[0].mxu1 %v3173_v22  ;;  %v383_v36 = vsel %vm361_vm1, %v340_v0, 0.0 }
  0x2f   : > { %v384_v38 = vsel %vm354_vm0, %v3181_v28, 0.0  ;;  %v274_v41 = vunpack.c.l.bf16 %v252_v21  ;;  %2526 = vmatpush3.bf16.msra.mxu1 %v3095_v24  ;;  %v3195_v43 = vpack.c.bf16 %v383_v36, %v383_v36  ;;  %v385_v53 = vsel %vm361_vm1, %v342_v33, 0.0  ;;  %v2829_v33 = vld [vmem:[%s3585_s3 + $0x18] sm:$0xff]  }
  0x30   : > { %v520_v44 = vshrl.u32 %v3183_v32, 16  ;;  %v523_v46 = vshll.u32 %v3183_v32, 16  ;;  %2527 = vmatprep.subr.bf16.mxu1 %v2825_v27  ;;  %v3204_v2 = vpack.c.bf16 %v384_v38, %v384_v38  ;;  %v3206_v37 = vpack.c.bf16 %v385_v53, %v385_v53 }
  0x31   : > { %v386_v24 = vsel %vm354_vm0, %v3185_v34, 0.0  ;;  %v387_v52 = vsel %vm361_vm1, %v344_v35, 0.0  ;;  %v529_v57 = vshll.u32 %v3195_v43, 16 }
  0x32   : > { %v522_v55 = vrot.slane %v520_v44, 4  ;;  %v525_v56 = vrot.slane %v523_v46, 5  ;;  %v3214_v58 = vpack.c.bf16 %v386_v24, %v386_v24  ;;  %v534_v60 = vshrl.u32 %v3204_v2, 16 }
  0x33   : > { %v537_v63 = vshll.u32 %v3204_v2, 16  ;;  %v543_v16 = vshll.u32 %v3206_v37, 16  ;;  %v3219_v17 = vpack.c.bf16 %v387_v52, %v387_v52  ;;  %v531_v21 = vrot.slane %v529_v57, 5  ;;  %2528 = vmatpush3.bf16.msra.mxu1 %v2825_v27  ;;  %v2826_v57 = vld [vmem:[%s3585_s3 + $0x148] sm:$0xff]  }
  0x34   : > { %v526_v18 = vor.u32 %v525_v56, %v522_v55  ;;  %v548_v0 = vshrl.u32 %v3214_v58, 16  ;;  %v551_v23 = vshll.u32 %v3214_v58, 16  ;;  %2529 = vmatprep.subr.bf16.mxu1 %v2827_v47  ;;  %v536_v35 = vrot.slane %v534_v60, 4 }
  0x35   : > { %v539_v36 = vrot.slane %v537_v63, 5  ;;  %v557_v38 = vshll.u32 %v3219_v17, 16  ;;  %v299_v24 = vmul.f32 %v2994_v29, %v273_v39  ;;  %v545_v27 = vrot.slane %v543_v16, 5  ;;  %v2831_v39 = vld [vmem:[%s3585_s3 + $0x20] sm:$0xff]  }
  0x36   : > { %v527_v44 = vrot.slane %v526_v18, 4  ;;  %v550_v46 = vrot.slane %v548_v0, 4  ;;  %v553_v53 = vrot.slane %v551_v23, 5  ;;  %v300_v55 = vmul.f32 %v2994_v29, %v274_v41 }
  0x37   : > { %v540_v52 = vor.u32 %v539_v36, %v536_v35  ;;  %2530 = vmatpush3.bf16.msra.mxu1 %v2827_v47  ;;  %v559_v63 = vrot.slane %v557_v38, 5  ;;  %v325_v18 = vadd.f32 %v2999_v30, %v299_v24  ;;  %v2830_v24 = vld [vmem:[%s3585_s3 + $0x158] sm:$0xff]   ;;  %v2142_v9 = vrot.slane %v3214_v58, 9 }
  0x38   : > { %v532_v56 = vsel %vm3008_vm4, %v527_v44, %v531_v21  ;;  %v554_v60 = vor.u32 %v553_v53, %v550_v46  ;;  %2531 = vmatprep.subr.bf16.mxu1 %v2829_v33  ;;  %v326_v41 = vadd.f32 %v2999_v30, %v300_v55  ;;  %v2137_v53 = vrot.slane %v3069_v10, 9 }
  0x39   : > { %v2219_v0 = vcombine.low %v3166_v1, %v532_v56  ;;  %v541_v29 = vrot.slane %v540_v52, 4  ;;  %v3240_v21 = vmax.f32 %v325_v18, 0.0  ;;  %v2828_v1 = vld [vmem:[%s3585_s3 + $0x150] sm:$0xff]   ;;  %v851_v55 = vrot.slane %v3073_v12, 5 }
  0x3a   : > { %v555_v16 = vrot.slane %v554_v60, 4  ;;  %v346_v23 = vmax.f32 %v326_v41, 0.0  ;;  %v2835_v52 = vld [vmem:[%s3585_s3 + $0x30] sm:$0xff]   ;;  %v855_v60 = vrot.slane %v3119_v49, 5  ;;  %v2832_v49 = vld [vmem:[%s3585_s3 + $0x160] sm:$0xff]  }
  0x3b   : > { %2614 = vmatmul.mubr.bf16.vlgmr.msra.gmra.mrb[0].mxu0 %v2219_v0  ;;  %v546_v47 = vsel %vm3008_vm4, %v541_v29, %v545_v27  ;;  %2532 = vmatpush3.bf16.msra.mxu1 %v2829_v33  ;;  %v388_v36 = vsel %vm354_vm0, %v3240_v21, 0.0  ;;  %v3341_v48 = vpack.c.bf16 %v347_v61, %v3240_v21  ;;  %v2139_v61 = vrot.slane %v3121_v51, 9  ;;  %v2846_v0 = vld [vmem:[%s3585_s3 + $0x198] sm:$0xff]  }
  0x3c   : > { %2622 = vmatpush3.bf16.msra.mxu0 %v3100_v25  ;;  %v3248_v35 = vcombine.low %v532_v56, %v546_v47  ;;  %v560_v30 = vsel %vm3008_vm4, %v555_v16, %v559_v63  ;;  %2533 = vmatprep.subr.bf16.mxu1 %v2831_v39  ;;  %v2833_v25 = vld [vmem:[%s3585_s3 + $0x28] sm:$0xff]   ;;  %v389_v44 = vsel %vm361_vm1, %v346_v23, 0.0  ;;  %v3260_v33 = vpack.c.bf16 %v388_v36, %v388_v36 }
  0x3d   : > { %2623 = vmatprep.subr.bf16.mxu0 %v2826_v57  ;;  %v2220_v38 = vcombine.low %v546_v47, %v560_v30  ;;  %v3263_v46 = vpack.c.bf16 %v389_v44, %v389_v44  ;;  %v2138_v56 = vrot.slane %v3115_v45, 9  ;;  %v395_v45 = vpack.c.bf16 %v3055_v4, %v3051_v3 }
  0x3e   : > { %2521 = vmatprep.mubr.bf16.mxu1 %v3248_v35  ;;  %v562_v15 = vshrl.u32 %v3260_v33, 16  ;;  %v565_v27 = vshll.u32 %v3260_v33, 16  ;;  %v2230_v4 = vrot.slane %v3077_v13, 9  ;;  %v1345_v16 = vrot.slane %v3081_v14, 5 }
  0x3f   : > { %2617 = vmatprep.mubr.bf16.mxu0 %v2220_v38  ;;  %2534 = vmatpush3.bf16.msra.mxu1 %v2831_v39  ;;  %v571_v10 = vshll.u32 %v3263_v46, 16  ;;  %v3294_v39 = vsel %vm3280_vm7, %v2137_v53, %v851_v55  ;;  %v3298_v41 = vsel %vm3280_vm7, %v2138_v56, %v855_v60  ;;  %v2136_v47 = vrot.slane %v2945_v7, 9  ;;  %v2834_v38 = vld [vmem:[%s3585_s3 + $0x168] sm:$0xff]  }
  0x40   : > { %2624 = vmatpush3.bf16.msra.mxu0 %v2826_v57  ;;  %2535 = vmatprep.subr.bf16.mxu1 %v2833_v25  ;;  %v564_v63 = vrot.slane %v562_v15, 4  ;;  %v567_v18 = vrot.slane %v565_v27, 5  ;;  %v2837_v57 = vld [vmem:[%s3585_s3 + $0x38] sm:$0xff]   ;;  %v847_v23 = vrot.slane %v2958_v11, 5  ;;  %v2124_v36 = vcombine.low %v2887_v6, %v395_v45  ;;  %v2839_v11 = vld [vmem:[%s3585_s3 + $0x80] sm:$0xff]   ;;  %v2841_v15 = vld [vmem:[%s3585_s3 + $0x88] sm:$0xff]  }
  0x41   : > { %2625 = vmatprep.subr.bf16.mxu0 %v2828_v1  ;;  %v573_v12 = vrot.slane %v571_v10, 5  ;;  %v3320_v40 = vsel %vm3280_vm7, %v2230_v4, %v1345_v16  ;;  %v2374_v53 = vpack.c.bf16 %v3161_v62, %v3104_v31  ;;  %v859_v27 = vrot.slane %v3124_v54, 5  ;;  %v2849_v4 = vld [vmem:[%s3585_s3 + $0xa8] sm:$0xff]   ;;  %v2851_v16 = vld [vmem:[%s3585_s3 + $0xb0] sm:$0xff]  }
  0x42   : > { %v568_v29 = vor.u32 %v567_v18, %v564_v63  ;;  %v3324_v14 = vsel %vm3280_vm7, %v2136_v47, %v847_v23  ;;  %v2140_v56 = vrot.slane %v3183_v32, 9  ;;  %v863_v10 = vrot.slane %v3195_v43, 5  ;;  %v2848_v47 = vld [vmem:[%s3585_s3 + $0x1a0] sm:$0xff]   ;;  %v2853_v23 = vld [vmem:[%s3585_s3 + $0xb8] sm:$0xff]  }
  0x43   : > { %2536 = vmatpush3.bf16.msra.mxu1 %v2833_v25  ;;  %v2247_v25 = vcombine.low %v3294_v39, %v3298_v41  ;;  %v2328_v44 = vcombine.low %v3320_v40, %v3324_v14  ;;  %v2141_v51 = vrot.slane %v3204_v2, 9  ;;  %v867_v54 = vrot.slane %v3206_v37, 5  ;;  %v2843_v2 = vld [vmem:[%s3585_s3 + $0x90] sm:$0xff]   ;;  %v2840_v37 = vld [vmem:[%s3585_s3 + $0x180] sm:$0xff]  }
  0x44   : > { %2626 = vmatpush3.bf16.msra.mxu0 %v2828_v1  ;;  %2537 = vmatprep.subr.bf16.mxu1 %v2835_v52  ;;  %v569_v3 = vrot.slane %v568_v29, 4  ;;  %v871_v60 = vrot.slane %v3219_v17, 5  ;;  %v860_v32 = vsel %vm3280_vm7, %v2139_v61, %v859_v27  ;;  %v864_v43 = vsel %vm3280_vm7, %v2140_v56, %v863_v10  ;;  %v2845_v29 = vld [vmem:[%s3585_s3 + $0x98] sm:$0xff]   ;;  %v2858_v61 = vld [vmem:[%s3585_s3 + $0x1c8] sm:$0xff]   ;;  %v2863_v56 = vld [vmem:[%s3585_s3 + $0xe0] sm:$0xff]  }
  0x45   : > { %2627 = vmatprep.subr.bf16.mxu0 %v2830_v24  ;;  %v868_v58 = vsel %vm3280_vm7, %v2141_v51, %v867_v54  ;;  %v3399_v63 = vpack.c.bf16 %v3240_v21, %v3185_v34  ;;  %v2248_v18 = vcombine.low %v860_v32, %v864_v43  ;;  %v875_v45 = vrot.slane %v3263_v46, 5  ;;  %v2860_v10 = vld [vmem:[%s3585_s3 + $0x1d0] sm:$0xff]   ;;  %v2869_v51 = vld [vmem:[%s3585_s3 + $0xf8] sm:$0xff]   ;;  %v2866_v54 = vld [vmem:[%s3585_s3 + $0x1e8] sm:$0xff]  }
  0x46   : > { %v574_v1 = vsel %vm3008_vm4, %v569_v3, %v573_v12  ;;  %v3395_v17 = vsel %vm3280_vm7, %v2142_v9, %v871_v60  ;;  %v2143_v12 = vrot.slane %v3260_v33, 9  ;;  %v2847_v33 = vld [vmem:[%s3585_s3 + $0xa0] sm:$0xff]   ;;  %v2844_v3 = vld [vmem:[%s3585_s3 + $0x190] sm:$0xff]   ;;  %v402_v27 = vpack.c.bf16 %v3065_v8, %v3061_v5  ;;  %v2865_v8 = vld [vmem:[%s3585_s3 + $0xe8] sm:$0xff]  }
  0x47   : > { %v3312_v13 = vcombine.low %v560_v30, %v574_v1  ;;  %2538 = vmatpush3.bf16.msra.mxu1 %v2835_v52  ;;  %v2221_v7 = vcombine.low %v574_v1, %v3138_v20  ;;  %v3329_v30 = vpack.c.bf16 %v3086_v19, %v333_v59  ;;  %v2836_v59 = vld [vmem:[%s3585_s3 + $0x170] sm:$0xff]   ;;  %v3348_v52 = vpack.c.bf16 %v3104_v31, %v3086_v19  ;;  %v2850_v1 = vld [vmem:[%s3585_s3 + $0x1a8] sm:$0xff]   ;;  %v2871_v9 = vld [vmem:[%s3585_s3 + $0x200] sm:$0xff]  }
  0x48   : > { %2628 = vmatpush3.bf16.msra.mxu0 %v2830_v24  ;;  %2539 = vmatprep.subr.bf16.mxu1 %v2837_v57  ;;  %v2377_v24 = vpack.c.bf16 %v3185_v34, %v3181_v28  ;;  %v3367_v19 = vpack.c.bf16 %v3181_v28, %v3161_v62  ;;  %v2249_v21 = vcombine.low %v868_v58, %v3395_v17  ;;  %v2872_v60 = vld [vmem:[%s3585_s3 + $0x208] sm:$0xff]   ;;  %v2874_v31 = vld [vmem:[%s3585_s3 + $0x218] sm:$0xff]   ;;  %v2875_v62 = vld [vmem:[%s3585_s3 + $0x220] sm:$0xff]  }
  0x49   : > { %2629 = vmatprep.subr.bf16.mxu0 %v2832_v49  ;;  %2522 = vmatmul.mubr.bf16.gmra.mrb[4].mxu1 %v3312_v13  ;;  %v876_v46 = vsel %vm3280_vm7, %v2143_v12, %v875_v45  ;;  %v2275_v5 = vcombine.low %v402_v27, %v2887_v6  ;;  %v2864_v6 = vld [vmem:[%s3585_s3 + $0x1e0] sm:$0xff]   ;;  %v2876_v28 = vld [vmem:[%s3585_s3 + $0x228] sm:$0xff]   ;;  %v2877_v34 = vld [vmem:[%s3585_s3 + $0x230] sm:$0xff]  }
  0x4a   : > { %2618 = vmatmul.mubr.bf16.gmra.mrb[4].mxu0 %v2221_v7  ;;  %2541 = vmatprep.mubr.bf16.mxu1 %v2124_v36  ;;  %v2855_v36 = vld [vmem:[%s3585_s3 + $0xc0] sm:$0xff]   ;;  %v3454_v7 = vcombine.low %v864_v43, %v868_v58  ;;  %v2873_v43 = vld [vmem:[%s3585_s3 + $0x210] sm:$0xff]  }
  0x4b   : > { %2637 = vmatprep.mubr.bf16.mxu0 %v2247_v25  ;;  %2540 = vmatpush3.bf16.msra.mxu1 %v2837_v57  ;;  %v2160_v57 = vcombine.low %v3324_v14, %v3294_v39  ;;  %v2250_v39 = vcombine.low %v876_v46, %v3320_v40  ;;  %v2852_v25 = vld [vmem:[%s3585_s3 + $0x1b0] sm:$0xff]  }
  0x4c   : > { %2630 = vmatpush3.bf16.msra.mxu0 %v2832_v49  ;;  %2549 = vmatprep.subr.bf16.mxu1 %v2839_v11  ;;  %v2842_v49 = vld [vmem:[%s3585_s3 + $0x188] sm:$0xff]  }
  0x4d   : > { %2631 = vmatprep.subr.bf16.mxu0 %v2834_v38 }
  0x50   : > { %2632 = vmatpush3.bf16.msra.mxu0 %v2834_v38  ;;  %v3452_v38 = vcombine.low %v3298_v41, %v860_v32  ;;  %v2859_v41 = vld [vmem:[%s3585_s3 + $0xd0] sm:$0xff]   ;;  %v2870_v32 = vld [vmem:[%s3585_s3 + $0x1f8] sm:$0xff]  }
  0x51   : > { %2633 = vmatprep.subr.bf16.mxu0 %v2836_v59  ;;  %2542 = vmatmul.mubr.msk.bf16.vlgmr.msra.gmra.mrb[0].mxu1 %vm3361_vm8, %v3348_v52 }
  0x52   : > { %2550 = vmatpush3.bf16.msra.mxu1 %v2839_v11  ;;  %2545 = vmatprep.mubr.msk.bf16.mxu1 %vm3361_vm8, %v3367_v19  ;;  %v2857_v11 = vld [vmem:[%s3585_s3 + $0xc8] sm:$0xff]  }
  0x53   : > { %2551 = vmatprep.subr.bf16.mxu1 %v2841_v15 }
  0x54   : > { %2634 = vmatpush3.bf16.msra.mxu0 %v2836_v59  ;;  %v2854_v59 = vld [vmem:[%s3585_s3 + $0x1b8] sm:$0xff]  }
  0x55   : > { %2635 = vmatprep.subr.bf16.mxu0 %v2838_v50 }
  0x56   : > { %2552 = vmatpush3.bf16.msra.mxu1 %v2841_v15  ;;  %v3471_v15 = vcombine.low %v3395_v17, %v876_v46 }
  0x57   : > { %2553 = vmatprep.subr.bf16.mxu1 %v2843_v2 }
  0x58   : > { %2636 = vmatpush3.bf16.msra.mxu0 %v2838_v50  ;;  %v2861_v50 = vld [vmem:[%s3585_s3 + $0xd8] sm:$0xff]  }
  0x59   : > { %2645 = vmatprep.subr.bf16.mxu0 %v2840_v37  ;;  %2546 = vmatmul.mubr.msk.bf16.gmra.mrb[4].mxu1 %vm3361_vm8, %v3399_v63 }
  0x5a   : > { %2554 = vmatpush3.bf16.msra.mxu1 %v2843_v2  ;;  %2565 = vmatprep.mubr.bf16.mxu1 %v2160_v57 }
  0x5b   : > { %2638 = vmatmul.mubr.bf16.vlgmr.msra.gmra.mrb[0].mxu0 %v2248_v18  ;;  %2555 = vmatprep.subr.bf16.mxu1 %v2845_v29 }
  0x5c   : > { %2646 = vmatpush3.bf16.msra.mxu0 %v2840_v37  ;;  %2641 = vmatprep.mubr.bf16.mxu0 %v2249_v21 }
  0x5d   : > { %2647 = vmatprep.subr.bf16.mxu0 %v2842_v49 }
  0x5e   : > { %2556 = vmatpush3.bf16.msra.mxu1 %v2845_v29 }
  0x5f   : > { %2557 = vmatprep.subr.bf16.mxu1 %v2847_v33 }
  0x60   : > { %2648 = vmatpush3.bf16.msra.mxu0 %v2842_v49 }
  0x61   : > { %2649 = vmatprep.subr.bf16.mxu0 %v2844_v3 }
  0x62   : > { %2558 = vmatpush3.bf16.msra.mxu1 %v2847_v33 }
  0x63   : > { %2642 = vmatmul.mubr.bf16.gmra.mrb[4].mxu0 %v2250_v39  ;;  %2559 = vmatprep.subr.bf16.mxu1 %v2849_v4 }
  0x64   : > { %2650 = vmatpush3.bf16.msra.mxu0 %v2844_v3  ;;  %2661 = vmatprep.mubr.msk.bf16.mxu0 %vm3361_vm8, %v3348_v52  ;;  %v2856_v52 = vld [vmem:[%s3585_s3 + $0x1c0] sm:$0xff]  }
  0x65   : > { %2651 = vmatprep.subr.bf16.mxu0 %v2846_v0 }
  0x66   : > { %2560 = vmatpush3.bf16.msra.mxu1 %v2849_v4 }
  0x67   : > { %2561 = vmatprep.subr.bf16.mxu1 %v2851_v16 }
  0x68   : > { %2652 = vmatpush3.bf16.msra.mxu0 %v2846_v0 }
  0x69   : > { %2653 = vmatprep.subr.bf16.mxu0 %v2848_v47 }
  0x6a   : > { %2562 = vmatpush3.bf16.msra.mxu1 %v2851_v16 }
  0x6b   : > { %2563 = vmatprep.subr.bf16.mxu1 %v2853_v23 }
  0x6c   : > { %2654 = vmatpush3.bf16.msra.mxu0 %v2848_v47 }
  0x6d   : > { %2655 = vmatprep.subr.bf16.mxu0 %v2850_v1 }
  0x6e   : > { %2564 = vmatpush3.bf16.msra.mxu1 %v2853_v23 }
  0x6f   : > { %2573 = vmatprep.subr.bf16.mxu1 %v2855_v36 }
  0x70   : > { %2656 = vmatpush3.bf16.msra.mxu0 %v2850_v1 }
  0x71   : > { %2657 = vmatprep.subr.bf16.mxu0 %v2852_v25  ;;  %2566 = vmatmul.mubr.bf16.vlgmr.msra.gmra.mrb[0].mxu1 %v3452_v38 }
  0x72   : > { %2574 = vmatpush3.bf16.msra.mxu1 %v2855_v36  ;;  %2569 = vmatprep.mubr.bf16.mxu1 %v3454_v7 }
  0x73   : > { %2575 = vmatprep.subr.bf16.mxu1 %v2857_v11 }
  0x74   : > { %2658 = vmatpush3.bf16.msra.mxu0 %v2852_v25 }
  0x75   : > { %2659 = vmatprep.subr.bf16.mxu0 %v2854_v59 }
  0x76   : > { %2576 = vmatpush3.bf16.msra.mxu1 %v2857_v11 }
  0x77   : > { %2577 = vmatprep.subr.bf16.mxu1 %v2859_v41 }
  0x78   : > { %2660 = vmatpush3.bf16.msra.mxu0 %v2854_v59 }
  0x79   : > { %2669 = vmatprep.subr.bf16.mxu0 %v2856_v52  ;;  %2570 = vmatmul.mubr.bf16.gmra.mrb[4].mxu1 %v3471_v15 }
  0x7a   : > { %2578 = vmatpush3.bf16.msra.mxu1 %v2859_v41  ;;  %2589 = vmatprep.mubr.msk.bf16.mxu1 %vm3361_vm8, %v3329_v30  ;;  %v2867_v30 = vld [vmem:[%s3585_s3 + $0xf0] sm:$0xff]  }
  0x7b   : > { %2662 = vmatmul.mubr.msk.bf16.vlgmr.msra.gmra.mrb[0].mxu0 %vm3361_vm8, %v3367_v19  ;;  %2579 = vmatprep.subr.bf16.mxu1 %v2861_v50  ;;  %v2862_v19 = vld [vmem:[%s3585_s3 + $0x1d8] sm:$0xff]  }
  0x7c   : > { %2670 = vmatpush3.bf16.msra.mxu0 %v2856_v52  ;;  %2665 = vmatprep.mubr.msk.bf16.mxu0 %vm3361_vm8, %v3399_v63 }
  0x7d   : > { %2671 = vmatprep.subr.bf16.mxu0 %v2858_v61 }
  0x7e   : > { %2580 = vmatpush3.bf16.msra.mxu1 %v2861_v50 }
  0x7f   : > { %2581 = vmatprep.subr.bf16.mxu1 %v2863_v56 }
  0x80   : > { %2672 = vmatpush3.bf16.msra.mxu0 %v2858_v61 }
  0x81   : > { %2673 = vmatprep.subr.bf16.mxu0 %v2860_v10 }
  0x82   : > { %2582 = vmatpush3.bf16.msra.mxu1 %v2863_v56 }
  0x83   : > { %2666 = vmatmul.mubr.bf16.gmra.mrb[4].mxu0 %v2275_v5  ;;  %2583 = vmatprep.subr.bf16.mxu1 %v2865_v8 }
  0x84   : > { %2674 = vmatpush3.bf16.msra.mxu0 %v2860_v10  ;;  %2685 = vmatprep.mubr.bf16.mxu0 %v3173_v22  ;;  %v2868_v22 = vld [vmem:[%s3585_s3 + $0x1f0] sm:$0xff]  }
  0x85   : > { %2675 = vmatprep.subr.bf16.mxu0 %v2862_v19 }
  0x86   : > { %2584 = vmatpush3.bf16.msra.mxu1 %v2865_v8 }
  0x87   : > { %2585 = vmatprep.subr.bf16.mxu1 %v2867_v30 }
  0x88   : > { %2676 = vmatpush3.bf16.msra.mxu0 %v2862_v19 }
  0x89   : > { %2677 = vmatprep.subr.bf16.mxu0 %v2864_v6 }
  0x8a   : > { %2586 = vmatpush3.bf16.msra.mxu1 %v2867_v30 }
  0x8b   : > { %2587 = vmatprep.subr.bf16.mxu1 %v2869_v51 }
  0x8c   : > { %2678 = vmatpush3.bf16.msra.mxu0 %v2864_v6 }
  0x8d   : > { %2679 = vmatprep.subr.bf16.mxu0 %v2866_v54 }
  0x8e   : > { %2588 = vmatpush3.bf16.msra.mxu1 %v2869_v51 }
  0x8f   : > { %2717 = vmatprep.subr.bf16.mxu1 %v2871_v9 }
  0x90   : > { %2680 = vmatpush3.bf16.msra.mxu0 %v2866_v54 }
  0x91   : > { %2681 = vmatprep.subr.bf16.mxu0 %v2868_v22  ;;  %2590 = vmatmul.mubr.msk.bf16.vlgmr.msra.gmra.mrb[0].mxu1 %vm3361_vm8, %v2374_v53 }
  0x92   : > { %2725 = vmatpush3.bf16.msra.mxu1 %v2871_v9  ;;  %2593 = vmatprep.mubr.msk.bf16.mxu1 %vm3361_vm8, %v2377_v24 }
  0x93   : > { %2718 = vmatprep.subr.bf16.mxu1 %v2872_v60 }
  0x94   : > { %2682 = vmatpush3.bf16.msra.mxu0 %v2868_v22 }
  0x95   : > { %2683 = vmatprep.subr.bf16.mxu0 %v2870_v32 }
  0x96   : > { %2726 = vmatpush3.bf16.msra.mxu1 %v2872_v60 }
  0x97   : > { %2719 = vmatprep.subr.bf16.mxu1 %v2873_v43 }
  0x98   : > { %2684 = vmatpush3.bf16.msra.mxu0 %v2870_v32 }
  0x99   : > { %2693 = vmatprep.subr.bf16.mxu0 %v2871_v9  ;;  %2594 = vmatmul.mubr.msk.bf16.gmra.mrb[4].mxu1 %vm3361_vm8, %v3341_v48 }
  0x9a   : > { %2727 = vmatpush3.bf16.msra.mxu1 %v2873_v43  ;;  %2713 = vmatprep.mubr.bf16.mxu1 %v3471_v15 }
  0x9b   : > { %2686 = vmatmul.mubr.bf16.vlgmr.msra.gmra.mrb[0].mxu0 %v3248_v35  ;;  %2720 = vmatprep.subr.bf16.mxu1 %v2874_v31  ;;  %v2878_v35 = vld [vmem:[%s3585_s3 + $0x238] sm:$0xff]  }
  0x9c   : > { %2694 = vmatpush3.bf16.msra.mxu0 %v2871_v9  ;;  %2689 = vmatprep.mubr.bf16.mxu0 %v3312_v13 }
  0x9d   : > { %2695 = vmatprep.subr.bf16.mxu0 %v2872_v60 }
  0x9e   : > { %2728 = vmatpush3.bf16.msra.mxu1 %v2874_v31 }
  0x9f   : > { %2721 = vmatprep.subr.bf16.mxu1 %v2875_v62 }
  0xa0   : > { %2696 = vmatpush3.bf16.msra.mxu0 %v2872_v60 }
  0xa1   : > { %2697 = vmatprep.subr.bf16.mxu0 %v2873_v43 }
  0xa2   : > { %2729 = vmatpush3.bf16.msra.mxu1 %v2875_v62 }
  0xa3   : > { %2690 = vmatmul.mubr.bf16.gmra.mrb[4].mxu0 %v2302_v26  ;;  %2722 = vmatprep.subr.bf16.mxu1 %v2876_v28 }
  0xa4   : > { %2698 = vmatpush3.bf16.msra.mxu0 %v2873_v43  ;;  %2709 = vmatprep.mubr.bf16.mxu0 %v3452_v38 }
  0xa5   : > { %2699 = vmatprep.subr.bf16.mxu0 %v2874_v31 }
  0xa6   : > { %2730 = vmatpush3.bf16.msra.mxu1 %v2876_v28 }
  0xa7   : > { %2723 = vmatprep.subr.bf16.mxu1 %v2877_v34 }
  0xa8   : > { %2700 = vmatpush3.bf16.msra.mxu0 %v2874_v31 }
  0xa9   : > { %2701 = vmatprep.subr.bf16.mxu0 %v2875_v62 }
  0xaa   : > { %2731 = vmatpush3.bf16.msra.mxu1 %v2877_v34 }
  0xab   : > { %2724 = vmatprep.subr.bf16.mxu1 %v2878_v35 }
  0xac   : > { %2702 = vmatpush3.bf16.msra.mxu0 %v2875_v62 }
  0xad   : > { %2703 = vmatprep.subr.bf16.mxu0 %v2876_v28 }
  0xae   : > { %2732 = vmatpush3.bf16.msra.mxu1 %v2878_v35 }
  0xb0   : > { %2704 = vmatpush3.bf16.msra.mxu0 %v2876_v28 }
  0xb1   : > { %2705 = vmatprep.subr.bf16.mxu0 %v2877_v34  ;;  %2714 = vmatmul.mubr.bf16.vlgmr.msra.gmra.mrb[8].mxu1 %v2328_v44 }
  0xb4   : > { %2706 = vmatpush3.bf16.msra.mxu0 %v2877_v34 }
  0xb5   : > { %2707 = vmatprep.subr.bf16.mxu0 %v2878_v35 }
  0xb8   : > { %2708 = vmatpush3.bf16.msra.mxu0 %v2878_v35 }
  0xbb   : > { %2710 = vmatmul.mubr.bf16.vlgmr.msra.gmra.mrb[0].mxu0 %v3454_v7 }
 0x164   : > { %v2591_v42 = vpop.f32.mrb[0].mxu1 }
 0x165   : > { %v1140_v20 = vpop.f32.mrb[1].mxu1 }
 0x166   : > { %v2592_v26 = vpop.f32.mrb[2].mxu1 }
 0x167   : > { %v1143_v13 = vpop.f32.mrb[3].mxu1 }
 0x16c   : > { %v2595_v53 = vpop.f32.mrb[4].mxu1 }
 0x16d   : > { %v1156_v24 = vpop.f32.mrb[5].mxu1 }
 0x16e   : > { %v2596_v48 = vpop.f32.mrb[6].mxu1 }
 0x16f   : > { %v1159_v55 = vpop.f32.mrb[7].mxu1 }
 0x176   : > { %v2691_v2 = vpop.f32.mrb[4].mxu0 }
 0x177   : > { %v2737_v37 = vadd.f32 %v2691_v2, %v2595_v53  ;;  %v1771_v58 = vpop.f32.mrb[5].mxu0 }
 0x178   : > { %v2739_v17 = vadd.f32 %v1771_v58, %v1156_v24  ;;  %v2692_v40 = vpop.f32.mrb[6].mxu0 }
 0x179   : > { %v2741_v14 = vadd.f32 %v2692_v40, %v2596_v48  ;;  %v1774_v44 = vpop.f32.mrb[7].mxu0 }
 0x17a   : > { %v2743_v63 = vadd.f32 %v1774_v44, %v1159_v55 }
 0x184   : > { %v2715_v18 = vpop.f32.mrb[8].mxu1 }
 0x185   : > { %v2738_v29 = vadd.f32 %v2737_v37, %v2715_v18  ;;  %v1916_v12 = vpop.f32.mrb[9].mxu1 }
 0x186   : > { %v2740_v45 = vadd.f32 %v2739_v17, %v1916_v12  ;;  %v2716_v49 = vpop.f32.mrb[10].mxu1 }
 0x187   : > { %1981 = vst [vmem:[%s231_s12 + $0x30] sm:$0xff] %v2738_v29  ;;  %v2742_v21 = vadd.f32 %v2741_v14, %v2716_v49  ;;  %v1919_v57 = vpop.f32.mrb[11].mxu1  ;;  %v1959_v5 = vmul.f32 %v2738_v29, %v2738_v29 }
 0x188   : > { %1979 = vst [vmem:[%s231_s12 + $0x20] sm:$0xff] %v2740_v45  ;;  %v2744_v33 = vadd.f32 %v2743_v63, %v1919_v57  ;;  %v1957_v15 = vmul.f32 %v2740_v45, %v2740_v45 }
 0x189   : > { %1982 = vst [vmem:[%s231_s12 + $0x38] sm:$0xff] %v2742_v21  ;;  %v1960_v30 = vmul.f32 %v2742_v21, %v2742_v21 }
 0x18a   : > { %1980 = vst [vmem:[%s231_s12 + $0x28] sm:$0xff] %v2744_v33  ;;  %v1958_v56 = vmul.f32 %v2744_v33, %v2744_v33 }
 0x18e   : > { %v2711_v46 = vpop.f32.mrb[0].mxu0 }
 0x18f   : > { %v2733_v3 = vadd.f32 %v2711_v46, %v2591_v42  ;;  %v1900_v39 = vpop.f32.mrb[1].mxu0 }
 0x190   : > { %v2734_v4 = vadd.f32 %v1900_v39, %v1140_v20  ;;  %v2712_v0 = vpop.f32.mrb[2].mxu0 }
 0x191   : > { %1977 = vst [vmem:[%s231_s12 + $0x10] sm:$0xff] %v2733_v3  ;;  %v2735_v16 = vadd.f32 %v2712_v0, %v2592_v26  ;;  %v1903_v47 = vpop.f32.mrb[3].mxu0  ;;  %v1955_v38 = vmul.f32 %v2733_v3, %v2733_v3 }
 0x192   : > { %1975 = vst [vmem:[%s231_s12] sm:$0xff] %v2734_v4  ;;  %v2736_v23 = vadd.f32 %v1903_v47, %v1143_v13  ;;  %v1953_v1 = vmul.f32 %v2734_v4, %v2734_v4 }
 0x193   : > { %1978 = vst [vmem:[%s231_s12 + $0x18] sm:$0xff] %v2735_v16  ;;  %v1956_v59 = vmul.f32 %v2735_v16, %v2735_v16 }
 0x194   : > { %v1939_v36 = vadd.f32 %v2736_v23, %v2734_v4  ;;  %v1954_v25 = vmul.f32 %v2736_v23, %v2736_v23  ;;  %1976 = vst [vmem:[%s231_s12 + $0x8] sm:$0xff] %v2736_v23 }
 0x196   : > { %v1940_v7 = vadd.f32 %v2733_v3, %v1939_v36  ;;  %v1961_v11 = vadd.f32 %v1954_v25, %v1953_v1 }
 0x198   : > { %v1962_v41 = vadd.f32 %v1961_v11, %v1955_v38  ;;  %v1941_v52 = vadd.f32 %v2735_v16, %v1940_v7 }
 0x19a   : > { %v1942_v50 = vadd.f32 %v2740_v45, %v1941_v52  ;;  %v1963_v61 = vadd.f32 %v1962_v41, %v1956_v59 }
 0x19c   : > { %v1943_v27 = vadd.f32 %v2744_v33, %v1942_v50  ;;  %v1964_v10 = vadd.f32 %v1963_v61, %v1957_v15 }
 0x19e   : > { %v1944_v8 = vadd.f32 %v2738_v29, %v1943_v27  ;;  %v1965_v19 = vadd.f32 %v1964_v10, %v1958_v56 }
 0x1a0   : > { %v1945_v6 = vadd.f32 %v2742_v21, %v1944_v8  ;;  %v1966_v51 = vadd.f32 %v1965_v19, %v1959_v5 }
 0x1a2   : > { %v1946_v54 = vrot.slane %v1945_v6, 4  ;;  %v1967_v9 = vadd.f32 %v1966_v51, %v1960_v30 }
 0x1a4   : > { %v1947_v22 = vadd.f32 %v1946_v54, %v1945_v6  ;;  %v1968_v60 = vrot.slane %v1967_v9, 4 }
 0x1a6   : > { %v1948_v32 = vrot.slane %v1947_v22, 2  ;;  %v1969_v43 = vadd.f32 %v1968_v60, %v1967_v9 }
 0x1a8   : > { %v1949_v31 = vadd.f32 %v1948_v32, %v1947_v22  ;;  %v1970_v62 = vrot.slane %v1969_v43, 2 }
 0x1aa   : > { %v1950_v28 = vrot.slane %v1949_v31, 1  ;;  %v1971_v34 = vadd.f32 %v1970_v62, %v1969_v43 }
 0x1ac   : > { %v1951_v35 = vadd.f32 %v1950_v28, %v1949_v31  ;;  %v1972_v42 = vrot.slane %v1971_v34, 1 }
 0x1ae   : > { %1952 = vst [vmem:[%s235_s16] sm:$0x1] %v1951_v35  ;;  %v1973_v20 = vadd.f32 %v1972_v42, %v1971_v34 }
 0x1b0   : > { %1974 = vst [vmem:[%s235_s16 + $0x1] sm:$0x1] %v1973_v20 }
 0x1b1 PF: > { %s16_s18 = sadd.s32 1, %s2885_s18  }
 0x1b2   : > { %p13_p4 = scmp.ge.s32.totalorder %s16_s18, 4  }
 0x1b4   :  { %15 = sbr.rel (!%p13_p4) target bundleno = 1 (0x1), region = 86 }

// kernel: basic_block_forward.3
= control target key start
LH: loop header
LB: loop body
LE: loop exit
PB: predicated region body
PF: predicated region fallthrough
CT: control target
= control target key end

     0   :  { %s2740_s21 = smov 0   ;;  %s3178_s0 = inlined_call_operand.vmem [shape: bf16[2,4,10,10,4], index: 0, kind: input, shape index: {}]   ;;  %s3179_s1 = inlined_call_operand.vmem [shape: bf16[9,4,128], index: 1, kind: input, shape index: {}]   ;;  %s3180_s2 = inlined_call_operand.vmem [shape: bf16[4,128], index: 2, kind: input, shape index: {}]   ;;  %s3181_s3 = inlined_call_operand.vmem [shape: bf16[2,10,10,128], index: 3, kind: output, shape index: {0}]   ;;  %s3182_s4 = inlined_call_operand.vmem [shape: f32[2,8,8,128], index: 4, kind: output, shape index: {1}]   ;;  %s3183_s5 = inlined_call_operand.vmem [shape: f32[2,2,128], index: 5, kind: output, shape index: {2}]   ;;  %s3184_s6 = inlined_call_operand.vmem [shape: f32[2,2,128], index: 6, kind: output, shape index: {3}]  }
   0x1 LB: > { %s2203_s22 = sadd.s32 4294967295, %s2702_s21   ;;  %p2207_p0 = scmp.ge.s32.totalorder %s2702_s21, 1  ;;  %s2702_s21 = sphi %s2740_s21, %s17_s21  }
   0x2   : > { %p219_p1 = scmp.lt.s32.totalorder %s2702_s21, 3 }
   0x4   : > { %p220_p2 = pnand %p2207_p0, %p219_p1 }
   0x5   : > { %vm339_vm0 = vcmask (!%p220_p2), 1041408   ;;  %v2273_v0 = vld [vmem:[%s3179_s1 + $0x8] sm:$0x3] (!%p220_p2)  ;;  %v2222_v1 = vld [vmem:[%s3179_s1 + $0x2] sm:$0x3] (!%p220_p2)  ;;  %p262_p3 = scmp.lt.s32.totalorder (!%p220_p2), %s2203_s22, 1 }
   0x6   : > { %223 = sbr.rel (%p220_p2) target bundleno = 348 (0x15c), region = 32  ;;  %2651 = vmatprep.subr.msk.bf16.mxu0 (!%p220_p2), %vm339_vm0, %v2273_v0  ;;  %2647 = vmatprep.subr.msk.bf16.mxu1 (!%p220_p2), %vm339_vm0, %v2222_v1  ;;  %v904_v2 = vsel (!%p220_p2), %vm339_vm0, %v2273_v0, 0  ;;  %v341_v3 = vsel (!%p220_p2), %vm339_vm0, %v2222_v1, 0  ;;  %v2298_v4 = vld [vmem:[%s3179_s1 + $0xa] sm:$0x3] (!%p220_p2)  ;;  %vm326_vm1 = vcmask (!%p220_p2), 31744  }
   0x7   : > { %2524 = vmatpush3.bf16.msra.mxu0 (!%p220_p2), %v904_v2  ;;  %2484 = vmatpush3.bf16.msra.mxu1 (!%p220_p2), %v341_v3  ;;  %v294_v5 = vld [vmem:[%s3179_s1] sm:$0x3] (!%p220_p2)  ;;  %v2315_v6 = vld [vmem:[%s3179_s1 + $0xc] sm:$0x3] (!%p220_p2)  ;;  %v1134_v7 = vsel (!%p220_p2), %vm339_vm0, %v2298_v4, 0  ;;  %v2704_v44 = vmov (!%p220_p2), 0  }
   0x8   : > { %2652 = vmatprep.subr.msk.bf16.mxu0 (!%p220_p2), %vm339_vm0, %v2298_v4  ;;  %2648 = vmatprep.subr.msk.bf16.mxu1 (!%p220_p2), %vm339_vm0, %v294_v5  ;;  %v441_v8 = vsel (!%p220_p2), %vm339_vm0, %v294_v5, 0  ;;  %v2780_v9 = vsel (!%p220_p2), %vm339_vm0, %v2315_v6, 0  ;;  %v2239_v14 = vld [vmem:[%s3179_s1 + $0x4] sm:$0x3] (!%p220_p2)  ;;  %vm524_vm2 = vsmask.f32 (!%p220_p2), 3328 }
   0x9   : > { %vm525_vm3 = vsmask.f32 (!%p220_p2), 7440  ;;  %v666_v56 = vsel (!%p220_p2), %vm339_vm0, %v2239_v14, 0  ;;  %v2825_v58 = vld [vmem:[%s3179_s1 + $0xe] sm:$0x3] (!%p220_p2)  ;;  %vm1846_vm5 = vcmask (!%p220_p2), 1043456  }
   0xa   : > { %vm2816_vm4 = vmor (!%p220_p2), %vm524_vm2, %vm525_vm3  ;;  %v2830_v59 = vld [vmem:[%s3179_s1 + $0x6] sm:$0x3] (!%p220_p2)  ;;  %vm1847_vm6 = vsmask.f32 (!%p220_p2), 7938  ;;  %vm1852_vm7 = vcmask (!%p220_p2), 1040384  }
   0xb   : > { %vm1853_vm8 = vsmask.f32 (!%p220_p2), 256  ;;  %vm3047_vm9 = vmand (!%p220_p2), %vm1846_vm5, %vm1847_vm6 }
   0xc   : > { %vm3056_vm10 = vmand (!%p220_p2), %vm1852_vm7, %vm1853_vm8 }
   0xd   : > { %s3192_s22 = smov (!%p262_p3, %s2203_s22), 1 }
   0xe   : > { %s2657_s9 = smul.u32 320, %s3192_s22  ;;  %s2424_s29 = sshll.u32 %s3192_s22, 6 }
   0xf   : > { %s2658_s25 = smul.u32 80, %s3192_s22  ;;  %s3028_s8 = scalar_lea.vmem %s3182_s4, %s2424_s29 }
  0x10   : > { %s2775_s12 = scalar_lea.vmem %s3178_s0, %s2657_s9  ;;  %s2212_s9 = sshll.u32 %s3192_s22, 1 }
  0x11   : > { %v2668_v10 = vld [vmem:[%s2775_s12 + $0x50] ss:$8 sps:$4 sm:$0xff]   ;;  %v2670_v12 = vld [vmem:[%s2775_s12 + $0x60] ss:$8 sps:$4 sm:$0xff]   ;;  %v2283_v21 = vld [vmem:[%s2775_s12 + $0xa4] sm:$0x1]  ;;  %s2994_s28 = scalar_lea.vmem %s3181_s3, %s2658_s25  ;;  %s284_s15 = scalar_lea.vmem %s3184_s6, %s2212_s9 }
  0x12   : > { %v2669_v11 = vld [vmem:[%s2775_s12 + $0xf0] ss:$8 sps:$4 sm:$0xff]   ;;  %2485 = vmatprep.mubr.msk.bf16.mxu1 %vm326_vm1, %v2668_v10  ;;  %v2671_v13 = vld [vmem:[%s2775_s12 + $0x100] ss:$8 sps:$4 sm:$0xff]   ;;  %v2285_v23 = vld [vmem:[%s2775_s12 + $0xac] sm:$0x1] }
  0x13   : > { %2525 = vmatprep.mubr.msk.bf16.mxu0 %vm326_vm1, %v2669_v11  ;;  %2486 = vmatmul.mubr.msk.bf16.vlgmr.msra.gmra.mrb[0].mxu1 %vm326_vm1, %v2670_v12  ;;  %v2672_v15 = vld [vmem:[%s2775_s12 + $0x70] ss:$8 sps:$4 sm:$0xff]   ;;  %v2674_v17 = vld [vmem:[%s2775_s12 + $0x80] ss:$8 sps:$4 sm:$0xff]   ;;  %v1005_v26 = vshll.u32 %v2283_v21, 16  ;;  %v1019_v29 = vshll.u32 %v2285_v23, 16 }
  0x14   : > { %2526 = vmatmul.mubr.msk.bf16.vlgmr.msra.gmra.mrb[0].mxu0 %vm326_vm1, %v2671_v13  ;;  %2494 = vmatpush3.bf16.msra.mxu1 %v441_v8  ;;  %v2673_v16 = vld [vmem:[%s2775_s12 + $0x110] ss:$8 sps:$4 sm:$0xff]   ;;  %v2675_v18 = vld [vmem:[%s2775_s12 + $0x120] ss:$8 sps:$4 sm:$0xff]   ;;  %v2287_v37 = vld [vmem:[%s2775_s12 + $0xb4] sm:$0x1] }
  0x15   : > { %2534 = vmatpush3.bf16.msra.mxu0 %v1134_v7  ;;  %2489 = vmatprep.mubr.msk.bf16.mxu1 %vm326_vm1, %v2672_v15  ;;  %v2676_v19 = vld [vmem:[%s2775_s12] ss:$8 sps:$4 sm:$0xff]   ;;  %v1007_v32 = vrot.slane %v1005_v26, 5  ;;  %v1021_v35 = vrot.slane %v1019_v29, 5  ;;  %v2286_v36 = vld [vmem:[%s2775_s12 + $0xb0] sm:$0xf] }
  0x16   : > { %2529 = vmatprep.mubr.msk.bf16.mxu0 %vm326_vm1, %v2673_v16  ;;  %2653 = vmatprep.subr.msk.bf16.mxu0 %vm339_vm0, %v2315_v6  ;;  %v2282_v20 = vld [vmem:[%s2775_s12 + $0xa0] sm:$0xf]  ;;  %v2284_v22 = vld [vmem:[%s2775_s12 + $0xa8] sm:$0xf]  ;;  %v2677_v39 = vld [vmem:[%s2775_s12 + $0x10] ss:$8 sps:$4 sm:$0xff]  }
  0x17   : > { %2649 = vmatprep.subr.msk.bf16.mxu1 %vm339_vm0, %v2239_v14  ;;  %v996_v24 = vshrl.u32 %v2282_v20, 16  ;;  %v999_v25 = vshll.u32 %v2282_v20, 16  ;;  %v1010_v27 = vshrl.u32 %v2284_v22, 16  ;;  %v1013_v28 = vshll.u32 %v2284_v22, 16  ;;  %v2288_v40 = vld [vmem:[%s2775_s12 + $0xb8] sm:$0xf] }
  0x18   : > { %v2289_v41 = vld [vmem:[%s2775_s12 + $0xbc] sm:$0x1]  ;;  %v1024_v42 = vshrl.u32 %v2286_v36, 16  ;;  %v1027_v43 = vshll.u32 %v2286_v36, 16  ;;  %v1033_v46 = vshll.u32 %v2287_v37, 16  ;;  %v1038_v47 = vshrl.u32 %v2288_v40, 16 }
  0x19   : > { %v998_v30 = vrot.slane %v996_v24, 4  ;;  %v1001_v31 = vrot.slane %v999_v25, 5  ;;  %v1012_v33 = vrot.slane %v1010_v27, 4  ;;  %v1015_v34 = vrot.slane %v1013_v28, 5  ;;  %v2678_v57 = vld [vmem:[%s2775_s12 + $0x20] ss:$8 sps:$4 sm:$0xff]  }
  0x1a   : > { %v1041_v48 = vshll.u32 %v2288_v40, 16  ;;  %v1026_v50 = vrot.slane %v1024_v42, 4  ;;  %v1029_v51 = vrot.slane %v1027_v43, 5  ;;  %v1047_v52 = vshll.u32 %v2289_v41, 16  ;;  %v2290_v0 = vld [vmem:[%s2775_s12 + $0xc0] sm:$0xf] }
  0x1b   : > { %2490 = vmatmul.mubr.msk.bf16.gmra.mrb[4].mxu1 %vm326_vm1, %v2674_v17  ;;  %v1002_v38 = vor.u32 %v1001_v31, %v998_v30  ;;  %v1016_v45 = vor.u32 %v1015_v34, %v1012_v33  ;;  %v1040_v54 = vrot.slane %v1038_v47, 4  ;;  %v1035_v62 = vrot.slane %v1033_v46, 5  ;;  %v2291_v1 = vld [vmem:[%s2775_s12 + $0xc4] sm:$0x1]  ;;  %v2292_v4 = vld [vmem:[%s2775_s12 + $0xc8] sm:$0xf] }
  0x1c   : > { %2530 = vmatmul.mubr.msk.bf16.gmra.mrb[4].mxu0 %vm326_vm1, %v2675_v18  ;;  %2495 = vmatprep.mubr.msk.bf16.mxu1 %vm326_vm1, %v2676_v19  ;;  %v1043_v55 = vrot.slane %v1041_v48, 5  ;;  %v1030_v61 = vor.u32 %v1029_v51, %v1026_v50  ;;  %v1049_v63 = vrot.slane %v1047_v52, 5  ;;  %v2293_v5 = vld [vmem:[%s2775_s12 + $0xcc] sm:$0x1]  ;;  %v1052_v6 = vshrl.u32 %v2290_v0, 16  ;;  %1713 = vst [vmem:[%s2994_s28] sm:$0xf] %v2704_v44 }
  0x1d   : > { %v1003_v49 = vrot.slane %v1002_v38, 4  ;;  %v1017_v53 = vrot.slane %v1016_v45, 4  ;;  %v1055_v7 = vshll.u32 %v2290_v0, 16  ;;  %v1061_v11 = vshll.u32 %v2291_v1, 16  ;;  %v2679_v20 = vld [vmem:[%s2775_s12 + $0x30] ss:$8 sps:$4 sm:$0xff]  }
  0x1e   : > { %v1044_v3 = vor.u32 %v1043_v55, %v1040_v54  ;;  %v1031_v10 = vrot.slane %v1030_v61, 4  ;;  %v1066_v12 = vshrl.u32 %v2292_v4, 16  ;;  %v1054_v14 = vrot.slane %v1052_v6, 4  ;;  %v2294_v26 = vld [vmem:[%s2775_s12 + $0xd0] sm:$0xf] }
  0x1f   : > { %v1008_v60 = vsel %vm2816_vm4, %v1003_v49, %v1007_v32  ;;  %v1022_v2 = vsel %vm2816_vm4, %v1017_v53, %v1021_v35  ;;  %v1057_v15 = vrot.slane %v1055_v7, 5  ;;  %v1069_v16 = vshll.u32 %v2292_v4, 16  ;;  %v2295_v27 = vld [vmem:[%s2775_s12 + $0xd4] sm:$0x1]  ;;  %v2296_v30 = vld [vmem:[%s2775_s12 + $0xd8] sm:$0xf] }
  0x20   : > { %v2299_v8 = vcombine.low %v1008_v60, %v1022_v2  ;;  %v1045_v13 = vrot.slane %v1044_v3, 4  ;;  %v1036_v17 = vsel %vm2816_vm4, %v1031_v10, %v1035_v62  ;;  %v1068_v18 = vrot.slane %v1066_v12, 4  ;;  %v2297_v31 = vld [vmem:[%s2775_s12 + $0xdc] sm:$0x1]  ;;  %v508_v37 = vld [vmem:[%s2775_s12] sm:$0xf] }
  0x21   : > { %v1075_v19 = vshll.u32 %v2293_v5, 16  ;;  %v2848_v21 = vsel %vm339_vm0, %v2825_v58, 0  ;;  %v1058_v23 = vor.u32 %v1057_v15, %v1054_v14  ;;  %v1063_v24 = vrot.slane %v1061_v11, 5  ;;  %v509_v42 = vld [vmem:[%s2775_s12 + $0x4] sm:$0x1] }
  0x22   : > { %2535 = vmatprep.mubr.msk.bf16.mxu0 %vm326_vm1, %v2299_v8  ;;  %v1050_v22 = vsel %vm2816_vm4, %v1045_v13, %v1049_v63  ;;  %v1071_v25 = vrot.slane %v1069_v16, 5  ;;  %v1080_v32 = vshrl.u32 %v2294_v26, 16  ;;  %v1083_v35 = vshll.u32 %v2294_v26, 16  ;;  %v510_v48 = vld [vmem:[%s2775_s12 + $0x8] sm:$0xf] }
  0x23   : > { %2496 = vmatmul.mubr.msk.bf16.vlgmr.msra.gmra.mrb[0].mxu1 %vm326_vm1, %v2677_v39  ;;  %v2300_v28 = vcombine.low %v1036_v17, %v1050_v22  ;;  %v1077_v29 = vrot.slane %v1075_v19, 5  ;;  %v1059_v33 = vrot.slane %v1058_v23, 4  ;;  %v1089_v36 = vshll.u32 %v2295_v27, 16  ;;  %v511_v52 = vld [vmem:[%s2775_s12 + $0xc] sm:$0x1] }
  0x24   : > { %2504 = vmatpush3.bf16.msra.mxu1 %v666_v56  ;;  %2499 = vmatprep.mubr.msk.bf16.mxu1 %vm326_vm1, %v2678_v57  ;;  %v1072_v34 = vor.u32 %v1071_v25, %v1068_v18  ;;  %v1082_v38 = vrot.slane %v1080_v32, 4  ;;  %v1094_v39 = vshrl.u32 %v2296_v30, 16  ;;  %v1097_v40 = vshll.u32 %v2296_v30, 16  ;;  %v512_v63 = vld [vmem:[%s2775_s12 + $0x10] sm:$0xf] }
  0x25   : > { %2650 = vmatprep.subr.msk.bf16.mxu1 %vm339_vm0, %v2830_v59  ;;  %2536 = vmatmul.mubr.msk.bf16.vlgmr.msra.gmra.mrb[0].mxu0 %vm326_vm1, %v2300_v28  ;;  %v1103_v41 = vshll.u32 %v2297_v31, 16  ;;  %v1064_v43 = vsel %vm2816_vm4, %v1059_v33, %v1063_v24  ;;  %v1085_v46 = vrot.slane %v1083_v35, 5  ;;  %v1091_v47 = vrot.slane %v1089_v36, 5  ;;  %v513_v4 = vld [vmem:[%s2775_s12 + $0x14] sm:$0x1] }
  0x26   : > { %2544 = vmatpush3.bf16.msra.mxu0 %v2780_v9  ;;  %v1073_v45 = vrot.slane %v1072_v34, 4  ;;  %v1096_v49 = vrot.slane %v1094_v39, 4  ;;  %v1099_v50 = vrot.slane %v1097_v40, 5  ;;  %v528_v53 = vshrl.u32 %v508_v37, 16  ;;  %v2680_v7 = vld [vmem:[%s2775_s12 + $0x8] ss:$8 sps:$4 sm:$0xff]  }
  0x27   : > { %v1105_v51 = vrot.slane %v1103_v41, 5  ;;  %2654 = vmatprep.subr.msk.bf16.mxu0 %vm339_vm0, %v2825_v58  ;;  %v1086_v54 = vor.u32 %v1085_v46, %v1082_v38  ;;  %v531_v55 = vshll.u32 %v508_v37, 16  ;;  %v537_v56 = vshll.u32 %v509_v42, 16  ;;  %v514_v8 = vld [vmem:[%s2775_s12 + $0x18] sm:$0xf] }
  0x28   : > { %v1078_v9 = vsel %vm2816_vm4, %v1073_v45, %v1077_v29  ;;  %v1100_v60 = vor.u32 %v1099_v50, %v1096_v49  ;;  %v530_v61 = vrot.slane %v528_v53, 4  ;;  %v542_v62 = vshrl.u32 %v510_v48, 16  ;;  %v515_v14 = vld [vmem:[%s2775_s12 + $0x1c] sm:$0x1]  ;;  %v516_v25 = vld [vmem:[%s2775_s12 + $0x20] sm:$0xf] }
  0x29   : > { %v2301_v57 = vcombine.low %v1064_v43, %v1078_v9  ;;  %v1087_v0 = vrot.slane %v1086_v54, 4  ;;  %v533_v1 = vrot.slane %v531_v55, 5  ;;  %v539_v2 = vrot.slane %v537_v56, 5  ;;  %v517_v30 = vld [vmem:[%s2775_s12 + $0x24] sm:$0x1] }
  0x2a   : > { %v545_v3 = vshll.u32 %v510_v48, 16  ;;  %v1101_v58 = vrot.slane %v1100_v60, 4  ;;  %v544_v5 = vrot.slane %v542_v62, 4  ;;  %v551_v6 = vshll.u32 %v511_v52, 16  ;;  %v518_v34 = vld [vmem:[%s2775_s12 + $0x28] sm:$0xf] }
  0x2b   : > { %2500 = vmatmul.mubr.msk.bf16.gmra.mrb[4].mxu1 %vm326_vm1, %v2679_v20  ;;  %2539 = vmatprep.mubr.msk.bf16.mxu0 %vm326_vm1, %v2301_v57  ;;  %v556_v10 = vshrl.u32 %v512_v63, 16  ;;  %v1092_v11 = vsel %vm2816_vm4, %v1087_v0, %v1091_v47  ;;  %v534_v12 = vor.u32 %v533_v1, %v530_v61  ;;  %v559_v15 = vshll.u32 %v512_v63, 16  ;;  %v519_v35 = vld [vmem:[%s2775_s12 + $0x2c] sm:$0x1]  ;;  %v2681_v43 = vld [vmem:[%s2775_s12 + $0x18] ss:$8 sps:$4 sm:$0xff]  }
  0x2c   : > { %v547_v13 = vrot.slane %v545_v3, 5  ;;  %v1106_v16 = vsel %vm2816_vm4, %v1101_v58, %v1105_v51  ;;  %v553_v17 = vrot.slane %v551_v6, 5  ;;  %v565_v19 = vshll.u32 %v513_v4, 16  ;;  %v2682_v51 = vld [vmem:[%s2775_s12 + $0x28] ss:$8 sps:$4 sm:$0xff]  }
  0x2d   : > { %v558_v18 = vrot.slane %v556_v10, 4  ;;  %v2302_v20 = vcombine.low %v1092_v11, %v1106_v16  ;;  %v535_v22 = vrot.slane %v534_v12, 4  ;;  %v561_v24 = vrot.slane %v559_v15, 5  ;;  %v520_v52 = vld [vmem:[%s2775_s12 + $0x30] sm:$0xf] }
  0x2e   : > { %v548_v23 = vor.u32 %v547_v13, %v544_v5  ;;  %v567_v26 = vrot.slane %v565_v19, 5  ;;  %v570_v27 = vshrl.u32 %v514_v8, 16  ;;  %v573_v28 = vshll.u32 %v514_v8, 16  ;;  %v521_v56 = vld [vmem:[%s2775_s12 + $0x34] sm:$0x1] }
  0x2f   : > { %v579_v29 = vshll.u32 %v515_v14, 16  ;;  %2540 = vmatmul.mubr.msk.bf16.gmra.mrb[4].mxu0 %vm326_vm1, %v2302_v20  ;;  %v540_v31 = vsel %vm2816_vm4, %v535_v22, %v539_v2  ;;  %v562_v33 = vor.u32 %v561_v24, %v558_v18  ;;  %v584_v36 = vshrl.u32 %v516_v25, 16  ;;  %v522_v63 = vld [vmem:[%s2775_s12 + $0x38] sm:$0xf]  ;;  %v523_v0 = vld [vmem:[%s2775_s12 + $0x3c] sm:$0x1] }
  0x30   : > { %v549_v32 = vrot.slane %v548_v23, 4  ;;  %2545 = vmatprep.mubr.msk.bf16.mxu0 %vm326_vm1, %v2680_v7  ;;  %v572_v37 = vrot.slane %v570_v27, 4  ;;  %v575_v38 = vrot.slane %v573_v28, 5  ;;  %v587_v40 = vshll.u32 %v516_v25, 16  ;;  %v2357_v1 = vld [vmem:[%s3179_s1 + $0x10] sm:$0x3] }
  0x31   : > { %v581_v39 = vrot.slane %v579_v29, 5  ;;  %v563_v42 = vrot.slane %v562_v33, 4  ;;  %v586_v45 = vrot.slane %v584_v36, 4  ;;  %v593_v46 = vshll.u32 %v517_v30, 16  ;;  %v1908_v15 = vld [vmem:[%s3180_s2] sm:$0x3] }
  0x32   : > { %v554_v41 = vsel %vm2816_vm4, %v549_v32, %v553_v17  ;;  %v576_v48 = vor.u32 %v575_v38, %v572_v37  ;;  %v589_v49 = vrot.slane %v587_v40, 5  ;;  %v598_v50 = vshrl.u32 %v518_v34, 16  ;;  %v2683_v20 = vld [vmem:[%s2775_s12 + $0x38] ss:$8 sps:$4 sm:$0xff]   ;;  %v2687_v36 = vld [vmem:[%s2775_s12 + $0x68] ss:$8 sps:$4 sm:$0xff]  }
  0x33   : > { %v2240_v47 = vcombine.low %v540_v31, %v554_v41  ;;  %v785_v53 = vsel %vm339_vm0, %v2830_v59, 0  ;;  %v595_v9 = vrot.slane %v593_v46, 5  ;;  %v601_v54 = vshll.u32 %v518_v34, 16  ;;  %v2685_v23 = vld [vmem:[%s2775_s12 + $0x58] ss:$8 sps:$4 sm:$0xff]  }
  0x34   : > { %v607_v55 = vshll.u32 %v519_v35, 16  ;;  %v568_v57 = vsel %vm2816_vm4, %v563_v42, %v567_v26  ;;  %v577_v60 = vrot.slane %v576_v48, 4  ;;  %v590_v61 = vor.u32 %v589_v49, %v586_v45  ;;  %v2684_v34 = vld [vmem:[%s2775_s12 + $0xa0] ss:$8 sps:$4 sm:$0xff]   ;;  %v2342_v38 = vld [vmem:[%s2775_s12 + $0xc] sm:$0x1] }
  0x35   : > { %2505 = vmatprep.mubr.msk.bf16.mxu1 %vm326_vm1, %v2240_v47  ;;  %v600_v62 = vrot.slane %v598_v50, 4  ;;  %v603_v2 = vrot.slane %v601_v54, 5  ;;  %v612_v3 = vshrl.u32 %v520_v52, 16  ;;  %v615_v4 = vshll.u32 %v520_v52, 16  ;;  %v2341_v37 = vld [vmem:[%s2775_s12 + $0x8] sm:$0xf] }
  0x36   : > { %v609_v59 = vrot.slane %v607_v55, 5  ;;  %v582_v58 = vsel %vm2816_vm4, %v577_v60, %v581_v39  ;;  %v591_v5 = vrot.slane %v590_v61, 4  ;;  %v621_v6 = vshll.u32 %v521_v56, 16  ;;  %v2343_v39 = vld [vmem:[%s2775_s12 + $0x10] sm:$0xf] }
  0x37   : > { %v626_v7 = vshrl.u32 %v522_v63, 16  ;;  %v2241_v8 = vcombine.low %v568_v57, %v582_v58  ;;  %2546 = vmatmul.mubr.msk.bf16.vlgmr.msra.gmra.mrb[0].mxu0 %vm326_vm1, %v2681_v43  ;;  %v604_v10 = vor.u32 %v603_v2, %v600_v62  ;;  %v614_v11 = vrot.slane %v612_v3, 4  ;;  %v2344_v40 = vld [vmem:[%s2775_s12 + $0x14] sm:$0x1]  ;;  %v2689_v46 = vld [vmem:[%s2775_s12 + $0x78] ss:$8 sps:$4 sm:$0xff]  }
  0x38   : > { %v617_v12 = vrot.slane %v615_v4, 5  ;;  %2554 = vmatpush3.bf16.msra.mxu0 %v2848_v21  ;;  %2549 = vmatprep.mubr.msk.bf16.mxu0 %vm326_vm1, %v2682_v51  ;;  %v629_v14 = vshll.u32 %v522_v63, 16  ;;  %v596_v16 = vsel %vm2816_vm4, %v591_v5, %v595_v9  ;;  %v635_v19 = vshll.u32 %v523_v0, 16  ;;  %v2686_v49 = vld [vmem:[%s2775_s12 + $0xb0] ss:$8 sps:$4 sm:$0xff]  }
  0x39   : > { %v628_v13 = vrot.slane %v626_v7, 4  ;;  %2506 = vmatmul.mubr.msk.bf16.vlgmr.msra.gmra.mrb[0].mxu1 %vm326_vm1, %v2241_v8  ;;  %v605_v17 = vrot.slane %v604_v10, 4  ;;  %2655 = vmatprep.subr.msk.bf16.mxu0 %vm339_vm0, %v2357_v1  ;;  %v623_v21 = vrot.slane %v621_v6, 5  ;;  %v1602_v31 = vsel %vm339_vm0, %v2357_v1, 0  ;;  %v2345_v9 = vld [vmem:[%s2775_s12 + $0x18] sm:$0xf] }
  0x3a   : > { %v618_v18 = vor.u32 %v617_v12, %v614_v11  ;;  %2514 = vmatpush3.bf16.msra.mxu1 %v785_v53  ;;  %v631_v22 = vrot.slane %v629_v14, 5  ;;  %v637_v28 = vrot.slane %v635_v19, 5  ;;  %v1942_v32 = vsel %vm339_vm0, %v1908_v15, 0  ;;  %v2688_v54 = vld [vmem:[%s2775_s12 + $0xc0] ss:$8 sps:$4 sm:$0xff]  }
  0x3b   : > { %v610_v24 = vsel %vm2816_vm4, %v605_v17, %v609_v59  ;;  %2656 = vmatprep.subr.msk.bf16.mxu1 %vm339_vm0, %v1908_v15  ;;  %v1464_v41 = vshrl.u32 %v2341_v37, 16  ;;  %v1467_v42 = vshll.u32 %v2341_v37, 16  ;;  %v1473_v43 = vshll.u32 %v2342_v38, 16  ;;  %v2346_v57 = vld [vmem:[%s2775_s12 + $0x1c] sm:$0x1] }
  0x3c   : > { %v619_v25 = vrot.slane %v618_v18, 4  ;;  %v2242_v26 = vcombine.low %v596_v16, %v610_v24  ;;  %v632_v27 = vor.u32 %v631_v22, %v628_v13  ;;  %v1478_v45 = vshrl.u32 %v2343_v39, 16  ;;  %v2347_v60 = vld [vmem:[%s2775_s12 + $0x20] sm:$0xf]  ;;  %v2348_v62 = vld [vmem:[%s2775_s12 + $0x24] sm:$0x1] }
  0x3d   : > { %v1481_v47 = vshll.u32 %v2343_v39, 16  ;;  %v1487_v48 = vshll.u32 %v2344_v40, 16  ;;  %v1466_v50 = vrot.slane %v1464_v41, 4  ;;  %v1469_v51 = vrot.slane %v1467_v42, 5  ;;  %v2691_v8 = vld [vmem:[%s2775_s12 + $0x88] ss:$8 sps:$4 sm:$0xff]  }
  0x3e   : > { %2509 = vmatprep.mubr.msk.bf16.mxu1 %vm326_vm1, %v2242_v26  ;;  %v624_v29 = vsel %vm2816_vm4, %v619_v25, %v623_v21  ;;  %v633_v30 = vrot.slane %v632_v27, 4  ;;  %v1475_v52 = vrot.slane %v1473_v43, 5  ;;  %v1480_v53 = vrot.slane %v1478_v45, 4  ;;  %v2349_v16 = vld [vmem:[%s2775_s12 + $0x28] sm:$0xf] }
  0x3f   : > { %2550 = vmatmul.mubr.msk.bf16.gmra.mrb[4].mxu0 %vm326_vm1, %v2683_v20  ;;  %v1483_v55 = vrot.slane %v1481_v47, 5  ;;  %v1489_v56 = vrot.slane %v1487_v48, 5  ;;  %v1470_v61 = vor.u32 %v1469_v51, %v1466_v50  ;;  %v1492_v63 = vshrl.u32 %v2345_v9, 16  ;;  %v2350_v17 = vld [vmem:[%s2775_s12 + $0x2c] sm:$0x1] }
  0x40   : > { %v638_v33 = vsel %vm2816_vm4, %v633_v30, %v637_v28  ;;  %2555 = vmatprep.mubr.msk.bf16.mxu0 %vm326_vm1, %v2685_v23  ;;  %v1495_v0 = vshll.u32 %v2345_v9, 16  ;;  %v1501_v1 = vshll.u32 %v2346_v57, 16  ;;  %v1506_v59 = vshrl.u32 %v2347_v60, 16  ;;  %v2351_v18 = vld [vmem:[%s2775_s12 + $0x30] sm:$0xf] }
  0x41   : > { %v2243_v35 = vcombine.low %v624_v29, %v638_v33  ;;  %v1484_v2 = vor.u32 %v1483_v55, %v1480_v53  ;;  %v1509_v3 = vshll.u32 %v2347_v60, 16  ;;  %v1515_v4 = vshll.u32 %v2348_v62, 16  ;;  %v2352_v21 = vld [vmem:[%s2775_s12 + $0x34] sm:$0x1]  ;;  %v2690_v24 = vld [vmem:[%s2775_s12 + $0xd0] ss:$8 sps:$4 sm:$0xff]  }
  0x42   : > { %v1471_v58 = vrot.slane %v1470_v61, 4  ;;  %v1494_v5 = vrot.slane %v1492_v63, 4  ;;  %v1497_v6 = vrot.slane %v1495_v0, 5  ;;  %v1503_v7 = vrot.slane %v1501_v1, 5  ;;  %v2692_v29 = vld [vmem:[%s2775_s12 + $0xf0] ss:$8 sps:$4 sm:$0xff]  }
  0x43   : > { %2510 = vmatmul.mubr.msk.bf16.gmra.mrb[4].mxu1 %vm326_vm1, %v2243_v35  ;;  %v1485_v10 = vrot.slane %v1484_v2, 4  ;;  %v1508_v11 = vrot.slane %v1506_v59, 4  ;;  %v1511_v12 = vrot.slane %v1509_v3, 5  ;;  %v1517_v13 = vrot.slane %v1515_v4, 5  ;;  %v2353_v38 = vld [vmem:[%s2775_s12 + $0x38] sm:$0xf] }
  0x44   : > { %2515 = vmatprep.mubr.msk.bf16.mxu1 %vm326_vm1, %v2684_v34  ;;  %v1476_v14 = vsel %vm2816_vm4, %v1471_v58, %v1475_v52  ;;  %v1498_v15 = vor.u32 %v1497_v6, %v1494_v5  ;;  %v1520_v22 = vshrl.u32 %v2349_v16, 16  ;;  %v1523_v23 = vshll.u32 %v2349_v16, 16  ;;  %v2354_v42 = vld [vmem:[%s2775_s12 + $0x3c] sm:$0x1]  ;;  %v2355_v43 = vld [vmem:[%s2775_s12 + $0x40] sm:$0xf] }
  0x45   : > { %v1490_v19 = vsel %vm2816_vm4, %v1485_v10, %v1489_v56  ;;  %v1512_v20 = vor.u32 %v1511_v12, %v1508_v11  ;;  %v1529_v27 = vshll.u32 %v2350_v17, 16  ;;  %v1534_v28 = vshrl.u32 %v2351_v18, 16  ;;  %v2356_v47 = vld [vmem:[%s2775_s12 + $0x44] sm:$0x1]  ;;  %v2693_v2 = vld [vmem:[%s2775_s12 + $0x100] ss:$8 sps:$4 sm:$0xff]  }
  0x46   : > { %v2358_v25 = vcombine.low %v1476_v14, %v1490_v19  ;;  %v1499_v26 = vrot.slane %v1498_v15, 4  ;;  %v1537_v33 = vshll.u32 %v2351_v18, 16  ;;  %v1543_v37 = vshll.u32 %v2352_v21, 16  ;;  %v2694_v5 = vld [vmem:[%s2775_s12 + $0x110] ss:$8 sps:$4 sm:$0xff]  }
  0x47   : > { %2556 = vmatmul.mubr.msk.bf16.vlgmr.msra.gmra.mrb[0].mxu0 %vm326_vm1, %v2687_v36  ;;  %v1513_v30 = vrot.slane %v1512_v20, 4  ;;  %v1531_v35 = vrot.slane %v1529_v27, 5  ;;  %v1536_v36 = vrot.slane %v1534_v28, 4  ;;  %v1548_v45 = vshrl.u32 %v2353_v38, 16  ;;  %v2695_v11 = vld [vmem:[%s2775_s12 + $0x120] ss:$8 sps:$4 sm:$0xff]   ;;  %s280_s12 = scalar_lea.vmem %s3183_s5, %s2212_s9 }
  0x48   : > { %2564 = vmatpush3.bf16.msra.mxu0 %v1602_v31  ;;  %2559 = vmatprep.mubr.msk.bf16.mxu0 %vm326_vm1, %v2689_v46  ;;  %v1522_v31 = vrot.slane %v1520_v22, 4  ;;  %v1504_v34 = vsel %vm2816_vm4, %v1499_v26, %v1503_v7  ;;  %v1539_v41 = vrot.slane %v1537_v33, 5  ;;  %v1545_v46 = vrot.slane %v1543_v37, 5  ;;  %1719 = vst [vmem:[%s2994_s28 + $0x18] sm:$0xf] %v2704_v44 }
  0x49   : > { %v1518_v39 = vsel %vm2816_vm4, %v1513_v30, %v1517_v13  ;;  %v1551_v48 = vshll.u32 %v2353_v38, 16  ;;  %v1550_v52 = vrot.slane %v1548_v45, 4  ;;  %v1562_v53 = vshrl.u32 %v2355_v43, 16  ;;  %1720 = vst [vmem:[%s2994_s28 + $0x1c] sm:$0x1] %v2704_v44 }
  0x4a   : > { %v1540_v51 = vor.u32 %v1539_v41, %v1536_v36  ;;  %v2359_v9 = vcombine.low %v1504_v34, %v1518_v39  ;;  %v1565_v55 = vshll.u32 %v2355_v43, 16  ;;  %v1571_v56 = vshll.u32 %v2356_v47, 16  ;;  %1714 = vst [vmem:[%s2994_s28 + $0x4] sm:$0x1] %v2704_v44  ;;  %1715 = vst [vmem:[%s2994_s28 + $0x8] sm:$0xf] %v2704_v44 }
  0x4b   : > { %2516 = vmatmul.mubr.msk.bf16.vlgmr.msra.gmra.mrb[0].mxu1 %vm326_vm1, %v2686_v49  ;;  %v1557_v49 = vshll.u32 %v2354_v42, 16  ;;  %v1564_v61 = vrot.slane %v1562_v53, 4  ;;  %1716 = vst [vmem:[%s2994_s28 + $0xc] sm:$0x1] %v2704_v44  ;;  %1717 = vst [vmem:[%s2994_s28 + $0x10] sm:$0xf] %v2704_v44 }
  0x4c   : > { %2574 = vmatpush3.bf16.msra.mxu1 %v1942_v32  ;;  %2519 = vmatprep.mubr.msk.bf16.mxu1 %vm326_vm1, %v2688_v54  ;;  %v1525_v32 = vrot.slane %v1523_v23, 5  ;;  %v1553_v54 = vrot.slane %v1551_v48, 5  ;;  %v1541_v60 = vrot.slane %v1540_v51, 4  ;;  %v1567_v0 = vrot.slane %v1565_v55, 5  ;;  %1718 = vst [vmem:[%s2994_s28 + $0x14] sm:$0x1] %v2704_v44 }
  0x4d   : > { %v1559_v63 = vrot.slane %v1557_v49, 5  ;;  %v1573_v58 = vrot.slane %v1571_v56, 5  ;;  %1721 = vst [vmem:[%s2994_s28 + $0x20] sm:$0xf] %v2704_v44  ;;  %1722 = vst [vmem:[%s2994_s28 + $0x24] sm:$0x1] %v2704_v44 }
  0x4e   : > { %v1526_v40 = vor.u32 %v1525_v32, %v1522_v31  ;;  %v1554_v62 = vor.u32 %v1553_v54, %v1550_v52  ;;  %v1546_v1 = vsel %vm2816_vm4, %v1541_v60, %v1545_v46  ;;  %v1568_v4 = vor.u32 %v1567_v0, %v1564_v61  ;;  %1723 = vst [vmem:[%s2994_s28 + $0x28] sm:$0xf] %v2704_v44 }
  0x4f   : > { %2560 = vmatmul.mubr.msk.bf16.gmra.mrb[4].mxu0 %vm326_vm1, %v2691_v8  ;;  %1724 = vst [vmem:[%s2994_s28 + $0x2c] sm:$0x1] %v2704_v44  ;;  %1725 = vst [vmem:[%s2994_s28 + $0x30] sm:$0xf] %v2704_v44  ;;  %v2382_v43 = vld [vmem:[%s2994_s28 + $0x18] sm:$0xf] }
  0x50   : > { %2565 = vmatprep.mubr.msk.bf16.mxu0 %vm326_vm1, %v2358_v25  ;;  %v1527_v50 = vrot.slane %v1526_v40, 4  ;;  %v1555_v3 = vrot.slane %v1554_v62, 4  ;;  %v1569_v7 = vrot.slane %v1568_v4, 4  ;;  %1726 = vst [vmem:[%s2994_s28 + $0x34] sm:$0x1] %v2704_v44 }
  0x51   : > { %1727 = vst [vmem:[%s2994_s28 + $0x38] sm:$0xf] %v2704_v44  ;;  %1728 = vst [vmem:[%s2994_s28 + $0x3c] sm:$0x1] %v2704_v44 }
  0x52   : > { %v1532_v57 = vsel %vm2816_vm4, %v1527_v50, %v1531_v35  ;;  %v1560_v6 = vsel %vm2816_vm4, %v1555_v3, %v1559_v63  ;;  %v1574_v8 = vsel %vm2816_vm4, %v1569_v7, %v1573_v58  ;;  %1729 = vst [vmem:[%s2994_s28 + $0x40] sm:$0xf] %v2704_v44  ;;  %1730 = vst [vmem:[%s2994_s28 + $0x44] sm:$0x1] %v2704_v44  ;;  %v2384_v50 = vld [vmem:[%s2994_s28 + $0x1c] sm:$0x1] }
  0x53   : > { %2520 = vmatmul.mubr.msk.bf16.gmra.mrb[4].mxu1 %vm326_vm1, %v2690_v24  ;;  %v2360_v59 = vcombine.low %v1532_v57, %v1546_v1  ;;  %v2361_v10 = vcombine.low %v1560_v6, %v1574_v8  ;;  %1731 = vst [vmem:[%s2994_s28 + $0x48] sm:$0xf] %v2704_v44  ;;  %1732 = vst [vmem:[%s2994_s28 + $0x4c] sm:$0x1] %v2704_v44  ;;  %v2374_v57 = vld [vmem:[%s2994_s28 + $0x8] sm:$0xf] }
  0x54   : > { %2575 = vmatprep.mubr.msk.bf16.mxu1 %vm326_vm1, %v2692_v29  ;;  %v2376_v60 = vld [vmem:[%s2994_s28 + $0xc] sm:$0x1]  ;;  %v2388_v6 = vld [vmem:[%s2994_s28 + $0x24] sm:$0x1] }
  0x57   : > { %2566 = vmatmul.mubr.msk.bf16.vlgmr.msra.gmra.mrb[0].mxu0 %vm326_vm1, %v2359_v9 }
  0x58   : > { %2569 = vmatprep.mubr.msk.bf16.mxu0 %vm326_vm1, %v2360_v59 }
  0x5b   : > { %2576 = vmatmul.mubr.msk.bf16.vlgmr.msra.gmra.mrb[8].mxu1 %vm326_vm1, %v2693_v2 }
  0x5c   : > { %2579 = vmatprep.mubr.msk.bf16.mxu1 %vm326_vm1, %v2694_v5  ;;  %v2386_v5 = vld [vmem:[%s2994_s28 + $0x20] sm:$0xf] }
  0x5f   : > { %2570 = vmatmul.mubr.msk.bf16.gmra.mrb[4].mxu0 %vm326_vm1, %v2361_v10 }
  0x63   : > { %2580 = vmatmul.mubr.msk.bf16.gmra.mrb[12].mxu1 %vm326_vm1, %v2695_v11 }
 0x11e   : > { %v2517_v12 = vpop.f32.mrb[0].mxu1 }
 0x11f   : > { %v821_v13 = vpop.f32.mrb[1].mxu1 }
 0x120   : > { %v2518_v14 = vpop.f32.mrb[2].mxu1 }
 0x121   : > { %v824_v15 = vpop.f32.mrb[3].mxu1 }
 0x126   : > { %v3016_v16 = vpop.f32.mrb[4].mxu1 }
 0x127   : > { %v3018_v17 = vpop.f32.mrb[5].mxu1 }
 0x128   : > { %v3020_v18 = vpop.f32.mrb[6].mxu1 }
 0x129   : > { %v3022_v19 = vpop.f32.mrb[7].mxu1 }
 0x12a   : > { %v2567_v20 = vpop.f32.mrb[0].mxu0 }
 0x12b   : > { %v2583_v21 = vadd.f32 %v2567_v20, %v2517_v12  ;;  %v1638_v22 = vpop.f32.mrb[1].mxu0 }
 0x12c   : > { %v2584_v23 = vadd.f32 %v1638_v22, %v821_v13  ;;  %v2568_v24 = vpop.f32.mrb[2].mxu0 }
 0x12d   : > { %v2427_v25 = vpack.c.bf16 %v2583_v21, %v2583_v21  ;;  %v3030_v26 = vadd.f32 %v2568_v24, %v2518_v14  ;;  %v1641_v27 = vpop.f32.mrb[3].mxu0  ;;  %v1693_v31 = vmul.f32 %v2583_v21, %v2583_v21 }
 0x12e   : > { %v3032_v28 = vpop.f32.mrb[8].mxu1  ;;  %v2425_v29 = vpack.c.bf16 %v2584_v23, %v2584_v23  ;;  %v2586_v30 = vadd.f32 %v1641_v27, %v824_v15  ;;  %v1691_v34 = vmul.f32 %v2584_v23, %v2584_v23 }
 0x12f   : > { %v1782_v32 = vshrl.u32 %v2427_v25, 16  ;;  %v1785_v33 = vshll.u32 %v2427_v25, 16  ;;  %2047 = vst [vmem:[%s3028_s8 + $0x10] sm:$0xff] %v3032_v28  ;;  %v1978_v35 = vpop.f32.mrb[9].mxu1  ;;  %v3038_v36 = vmul.f32 %v3032_v28, %v3032_v28  ;;  %v2428_v39 = vpack.c.bf16 %v3030_v26, %v3030_v26 }
 0x130   : > { %v1766_v37 = vshrl.u32 %v2425_v29, 16  ;;  %v1769_v38 = vshll.u32 %v2425_v29, 16  ;;  %2045 = vst [vmem:[%s3028_s8] sm:$0xff] %v1978_v35  ;;  %v3043_v40 = vpop.f32.mrb[10].mxu1  ;;  %v2023_v45 = vmul.f32 %v1978_v35, %v1978_v35  ;;  %v1677_v46 = vadd.f32 %v2586_v30, %v2584_v23  ;;  %v2378_v29 = vld [vmem:[%s2994_s28 + $0x10] sm:$0xf] }
 0x131   : > { %v1784_v41 = vrot.slane %v1782_v32, 7  ;;  %2048 = vst [vmem:[%s3028_s8 + $0x18] sm:$0xff] %v3043_v40  ;;  %v1692_v47 = vmul.f32 %v2586_v30, %v2586_v30  ;;  %v1981_v48 = vpop.f32.mrb[11].mxu1  ;;  %v1790_v52 = vshrl.u32 %v2428_v39, 16  ;;  %v1793_v53 = vshll.u32 %v2428_v39, 16 }
 0x132   : > { %v1768_v51 = vrot.slane %v1766_v37, 7  ;;  %v2426_v9 = vpack.c.bf16 %v2586_v30, %v2586_v30  ;;  %2046 = vst [vmem:[%s3028_s8 + $0x8] sm:$0xff] %v1981_v48  ;;  %v2571_v54 = vpop.f32.mrb[4].mxu0  ;;  %v1678_v61 = vadd.f32 %v2583_v21, %v1677_v46  ;;  %v2009_v20 = vadd.f32 %v1981_v48, %v1978_v35  ;;  %v2380_v30 = vld [vmem:[%s2994_s28 + $0x14] sm:$0x1] }
 0x133   : > { %v1787_v55 = vor.u32 %v1785_v33, %v1784_v41  ;;  %v1788_v56 = vrot.slane %v1784_v41, 4  ;;  %v1699_v62 = vadd.f32 %v1692_v47, %v1691_v34  ;;  %v1654_v63 = vpop.f32.mrb[5].mxu0  ;;  %v1792_v2 = vrot.slane %v1790_v52, 7 }
 0x134   : > { %v1771_v0 = vor.u32 %v1769_v38, %v1768_v51  ;;  %v1772_v1 = vrot.slane %v1768_v51, 4  ;;  %v1774_v59 = vshrl.u32 %v2426_v9, 16  ;;  %v2572_v3 = vpop.f32.mrb[6].mxu0  ;;  %v1777_v8 = vshll.u32 %v2426_v9, 16 }
 0x135   : > { %v1865_v4 = vsel %vm3047_vm9, %v1787_v55, %v2382_v43  ;;  %v1868_v58 = vsel %vm3056_vm10, %v1788_v56, %v2384_v50  ;;  %v1700_v7 = vadd.f32 %v1699_v62, %v1693_v31  ;;  %v1657_v10 = vpop.f32.mrb[7].mxu0  ;;  %v1795_v12 = vor.u32 %v1793_v53, %v1792_v2 }
 0x136   : > { %2383 = vst [vmem:[%s2994_s28 + $0x18] sm:$0xf] %v1865_v4  ;;  %2385 = vst [vmem:[%s2994_s28 + $0x1c] sm:$0x1] %v1868_v58  ;;  %v1850_v11 = vsel %vm3047_vm9, %v1771_v0, %v2374_v57  ;;  %v1856_v44 = vsel %vm3056_vm10, %v1772_v1, %v2376_v60  ;;  %v1796_v13 = vrot.slane %v1792_v2, 4  ;;  %v3076_v14 = vpop.f32.mrb[12].mxu1  ;;  %v2024_v21 = vmul.f32 %v1981_v48, %v1981_v48 }
 0x137   : > { %2375 = vst [vmem:[%s2994_s28 + $0x8] sm:$0xf] %v1850_v11  ;;  %2377 = vst [vmem:[%s2994_s28 + $0xc] sm:$0x1] %v1856_v44  ;;  %v1776_v15 = vrot.slane %v1774_v59, 7  ;;  %v3081_v22 = vadd.f32 %v2571_v54, %v3016_v16  ;;  %v1994_v23 = vpop.f32.mrb[13].mxu1  ;;  %v1694_v24 = vmul.f32 %v3030_v26, %v3030_v26  ;;  %v1871_v25 = vsel %vm3047_vm9, %v1795_v12, %v2386_v5 }
 0x138   : > { %2051 = vst [vmem:[%s3028_s8 + $0x30] sm:$0xff] %v3076_v14  ;;  %v1874_v27 = vsel %vm3056_vm10, %v1796_v13, %v2388_v6  ;;  %v2588_v31 = vadd.f32 %v1654_v63, %v3018_v17  ;;  %2049 = vst [vmem:[%s3028_s8 + $0x20] sm:$0xff] %v1994_v23  ;;  %v3095_v16 = vpop.f32.mrb[14].mxu1  ;;  %v2010_v34 = vadd.f32 %v3032_v28, %v2009_v20  ;;  %v2398_v60 = vld [vmem:[%s2994_s28 + $0x38] sm:$0xf] }
 0x139   : > { %2387 = vst [vmem:[%s2994_s28 + $0x20] sm:$0xf] %v1871_v25  ;;  %2389 = vst [vmem:[%s2994_s28 + $0x24] sm:$0x1] %v1874_v27  ;;  %v1779_v32 = vor.u32 %v1777_v8, %v1776_v15  ;;  %v1780_v33 = vrot.slane %v1776_v15, 4  ;;  %v2031_v35 = vadd.f32 %v2024_v21, %v2023_v45  ;;  %v3102_v37 = vpop.f32.mrb[15].mxu1  ;;  %v2026_v38 = vmul.f32 %v3043_v40, %v3043_v40 }
 0x13a   : > { %2052 = vst [vmem:[%s3028_s8 + $0x38] sm:$0xff] %v3095_v16  ;;  %v2431_v17 = vpack.c.bf16 %v3081_v22, %v3081_v22  ;;  %v1679_v39 = vadd.f32 %v3030_v26, %v1678_v61  ;;  %v1695_v41 = vmul.f32 %v2588_v31, %v2588_v31  ;;  %2050 = vst [vmem:[%s3028_s8 + $0x28] sm:$0xff] %v3102_v37  ;;  %v2400_v61 = vld [vmem:[%s2994_s28 + $0x3c] sm:$0x1]  ;;  %v2390_v4 = vld [vmem:[%s2994_s28 + $0x28] sm:$0xf] }
 0x13b   : > { %v1859_v43 = vsel %vm3047_vm9, %v1779_v32, %v2378_v29  ;;  %v1862_v28 = vsel %vm3056_vm10, %v1780_v33, %v2380_v30  ;;  %v2032_v45 = vadd.f32 %v2031_v35, %v3038_v36  ;;  %v1701_v46 = vadd.f32 %v1700_v7, %v1694_v24  ;;  %v2392_v58 = vld [vmem:[%s2994_s28 + $0x2c] sm:$0x1]  ;;  %v2402_v30 = vld [vmem:[%s2994_s28 + $0x40] sm:$0xf] }
 0x13c   : > { %2379 = vst [vmem:[%s2994_s28 + $0x10] sm:$0xf] %v1859_v43  ;;  %2381 = vst [vmem:[%s2994_s28 + $0x14] sm:$0x1] %v1862_v28  ;;  %v1814_v47 = vshrl.u32 %v2431_v17, 16  ;;  %v3120_v26 = vmul.f32 %v3076_v14, %v3076_v14  ;;  %v1680_v48 = vadd.f32 %v2588_v31, %v1679_v39  ;;  %v2429_v50 = vpack.c.bf16 %v2588_v31, %v2588_v31 }
 0x13d   : > { %v1702_v51 = vadd.f32 %v1701_v46, %v1695_v41  ;;  %v2011_v52 = vadd.f32 %v3043_v40, %v2010_v34  ;;  %v2027_v53 = vmul.f32 %v1994_v23, %v1994_v23  ;;  %v2033_v9 = vadd.f32 %v2032_v45, %v2026_v38  ;;  %v2394_v41 = vld [vmem:[%s2994_s28 + $0x30] sm:$0xf]  ;;  %v2396_v43 = vld [vmem:[%s2994_s28 + $0x34] sm:$0x1] }
 0x13e   : > { %v1816_v36 = vrot.slane %v1814_v47, 7  ;;  %v1817_v54 = vshll.u32 %v2431_v17, 16  ;;  %v1798_v55 = vshrl.u32 %v2429_v50, 16  ;;  %v2589_v56 = vadd.f32 %v2572_v3, %v3020_v18 }
 0x13f   : > { %v1697_v57 = vmul.f32 %v3081_v22, %v3081_v22  ;;  %v2012_v62 = vadd.f32 %v2011_v52, %v1994_v23  ;;  %v2034_v63 = vadd.f32 %v2033_v9, %v2027_v53  ;;  %v2590_v0 = vadd.f32 %v1657_v10, %v3022_v19 }
 0x140   : > { %v1819_v40 = vor.u32 %v1817_v54, %v1816_v36  ;;  %v1820_v1 = vrot.slane %v1816_v36, 4  ;;  %v1800_v2 = vrot.slane %v1798_v55, 7  ;;  %v1801_v59 = vshll.u32 %v2429_v50, 16 }
 0x141   : > { %v2432_v5 = vpack.c.bf16 %v2589_v56, %v2589_v56  ;;  %v1681_v6 = vadd.f32 %v2590_v0, %v1680_v48  ;;  %v1696_v18 = vmul.f32 %v2590_v0, %v2590_v0  ;;  %v2430_v3 = vpack.c.bf16 %v2590_v0, %v2590_v0 }
 0x142   : > { %v1889_v7 = vsel %vm3047_vm9, %v1819_v40, %v2398_v60  ;;  %v1892_v8 = vsel %vm3056_vm10, %v1820_v1, %v2400_v61  ;;  %v1803_v19 = vor.u32 %v1801_v59, %v1800_v2  ;;  %v1804_v10 = vrot.slane %v1800_v2, 4 }
 0x143   : > { %2399 = vst [vmem:[%s2994_s28 + $0x38] sm:$0xf] %v1889_v7  ;;  %2401 = vst [vmem:[%s2994_s28 + $0x3c] sm:$0x1] %v1892_v8  ;;  %v1698_v11 = vmul.f32 %v2589_v56, %v2589_v56  ;;  %v1822_v44 = vshrl.u32 %v2432_v5, 16  ;;  %v1682_v12 = vadd.f32 %v3081_v22, %v1681_v6  ;;  %v1703_v13 = vadd.f32 %v1702_v51, %v1696_v18 }
 0x144   : > { %v1877_v15 = vsel %vm3047_vm9, %v1803_v19, %v2390_v4  ;;  %v1880_v20 = vsel %vm3056_vm10, %v1804_v10, %v2392_v58  ;;  %v1825_v21 = vshll.u32 %v2432_v5, 16  ;;  %v1806_v23 = vshrl.u32 %v2430_v3, 16  ;;  %v2404_v22 = vld [vmem:[%s2994_s28 + $0x44] sm:$0x1] }
 0x145   : > { %2391 = vst [vmem:[%s2994_s28 + $0x28] sm:$0xf] %v1877_v15  ;;  %2393 = vst [vmem:[%s2994_s28 + $0x2c] sm:$0x1] %v1880_v20  ;;  %v1824_v24 = vrot.slane %v1822_v44, 7  ;;  %v1683_v25 = vadd.f32 %v2589_v56, %v1682_v12  ;;  %v1704_v27 = vadd.f32 %v1703_v13, %v1697_v57  ;;  %v2013_v29 = vadd.f32 %v2012_v62, %v3102_v37 }
 0x146   : > { %v2030_v31 = vmul.f32 %v3095_v16, %v3095_v16  ;;  %v1808_v32 = vrot.slane %v1806_v23, 7  ;;  %v1809_v33 = vshll.u32 %v2430_v3, 16  ;;  %v2028_v34 = vmul.f32 %v3102_v37, %v3102_v37 }
 0x147   : > { %v1827_v35 = vor.u32 %v1825_v21, %v1824_v24  ;;  %v1828_v38 = vrot.slane %v1824_v24, 4  ;;  %v1684_v17 = vrot.slane %v1683_v25, 4  ;;  %v1705_v39 = vadd.f32 %v1704_v27, %v1698_v11 }
 0x148   : > { %v1811_v28 = vor.u32 %v1809_v33, %v1808_v32  ;;  %v1812_v45 = vrot.slane %v1808_v32, 4  ;;  %v2014_v46 = vadd.f32 %v3076_v14, %v2013_v29  ;;  %v2035_v47 = vadd.f32 %v2034_v63, %v2028_v34 }
 0x149   : > { %v1895_v48 = vsel %vm3047_vm9, %v1827_v35, %v2402_v30  ;;  %v1898_v37 = vsel %vm3056_vm10, %v1828_v38, %v2404_v22  ;;  %v1685_v50 = vadd.f32 %v1684_v17, %v1683_v25  ;;  %v1706_v51 = vrot.slane %v1705_v39, 4 }
 0x14a   : > { %2403 = vst [vmem:[%s2994_s28 + $0x40] sm:$0xf] %v1895_v48  ;;  %2405 = vst [vmem:[%s2994_s28 + $0x44] sm:$0x1] %v1898_v37  ;;  %v1883_v52 = vsel %vm3047_vm9, %v1811_v28, %v2394_v41  ;;  %v1886_v53 = vsel %vm3056_vm10, %v1812_v45, %v2396_v43  ;;  %v2015_v14 = vadd.f32 %v3095_v16, %v2014_v46 }
 0x14b   : > { %v2036_v9 = vadd.f32 %v2035_v47, %v3120_v26  ;;  %v1686_v36 = vrot.slane %v1685_v50, 2  ;;  %v1707_v54 = vadd.f32 %v1706_v51, %v1705_v39  ;;  %2395 = vst [vmem:[%s2994_s28 + $0x30] sm:$0xf] %v1883_v52  ;;  %2397 = vst [vmem:[%s2994_s28 + $0x34] sm:$0x1] %v1886_v53 }
 0x14c   : > { %v2016_v55 = vrot.slane %v2015_v14, 4 }
 0x14d   : > { %v2037_v56 = vadd.f32 %v2036_v9, %v2030_v31  ;;  %v1687_v57 = vadd.f32 %v1686_v36, %v1685_v50  ;;  %v1708_v60 = vrot.slane %v1707_v54, 2 }
 0x14e   : > { %v2017_v61 = vadd.f32 %v2016_v55, %v2015_v14 }
 0x14f   : > { %v2038_v62 = vrot.slane %v2037_v56, 4  ;;  %v1688_v42 = vrot.slane %v1687_v57, 1  ;;  %v1709_v63 = vadd.f32 %v1708_v60, %v1707_v54 }
 0x150   : > { %v2018_v49 = vrot.slane %v2017_v61, 2 }
 0x151   : > { %v2039_v16 = vadd.f32 %v2038_v62, %v2037_v56  ;;  %v1689_v26 = vadd.f32 %v1688_v42, %v1687_v57  ;;  %v1710_v0 = vrot.slane %v1709_v63, 1 }
 0x152   : > { %v2019_v40 = vadd.f32 %v2018_v49, %v2017_v61 }
 0x153   : > { %v2040_v1 = vrot.slane %v2039_v16, 2  ;;  %v1711_v2 = vadd.f32 %v1710_v0, %v1709_v63  ;;  %1690 = vst [vmem:[%s280_s12] sm:$0x1] %v1689_v26 }
 0x154   : > { %v2020_v59 = vrot.slane %v2019_v40, 1 }
 0x155   : > { %v2041_v4 = vadd.f32 %v2040_v1, %v2039_v16  ;;  %1712 = vst [vmem:[%s280_s12 + $0x1] sm:$0x1] %v1711_v2 }
 0x156   : > { %v2021_v58 = vadd.f32 %v2020_v59, %v2019_v40 }
 0x157   : > { %v2042_v5 = vrot.slane %v2041_v4, 1 }
 0x158   : > { %2022 = vst [vmem:[%s284_s15] sm:$0x1] %v2021_v58 }
 0x159   : > { %v2043_v6 = vadd.f32 %v2042_v5, %v2041_v4 }
 0x15b   : > { %2044 = vst [vmem:[%s284_s15 + $0x1] sm:$0x1] %v2043_v6 }
 0x15c PF: > { %s17_s21 = sadd.s32 1, %s2702_s21  }
 0x15d   : > { %p14_p4 = scmp.ge.s32.totalorder %s17_s21, 4  }
 0x15f   :  { %16 = sbr.rel (!%p14_p4) target bundleno = 1 (0x1), region = 112 }

</bundles_post_ra>
